<compile_context>
chip_gen: v6e
topology: v6e:2x2x1
jax: 0.10.0
libtpu: 0.0.40
codegen_flags: <defaults>
</compile_context>

<pallas_src>
import functools

import jax
import jax.numpy as jnp
from jax import lax
from jax.experimental import pallas as pl
from jax.experimental.pallas import tpu as pltpu


def _sigmoid(x):
    # One EUP tanh per gate instead of exp + divide: shorter per-step critical path.
    return 0.5 * jnp.tanh(0.5 * x) + 0.5


def _lstm_chunk_kernel(x_ref, wih_ref, whh_ref, b_ref, h_out_ref,
                       xp_sc, h_sc, c_sc, *, seq_len):
    # x_ref:    (tt, Bb, E)  streamed embedding chunk (time-major)
    # wih_ref:  (E, 4H)      input weight  W_ih^T (VMEM resident)
    # whh_ref:  (H, 4H)      recurrent weight W_hh^T (VMEM resident)
    # b_ref:    (1, 4H)      b_ih + b_hh (VMEM resident)
    # h_out_ref:(Bb, H)      final hidden state for this batch block
    # xp_sc:    (tt, Bb, 4H) per-chunk pre-projected gate inputs
    # h_sc/c_sc:(Bb, H)      state carried across time chunks
    tt, _Bb, _E = x_ref.shape
    H = h_sc.shape[-1]
    t_blk = pl.program_id(1)

    @pl.when(t_blk == 0)
    def _():
        h_sc[...] = jnp.zeros_like(h_sc)
        c_sc[...] = jnp.zeros_like(c_sc)

    # ---- input projection for the whole chunk (independent of h -> off the serial chain) ----
    def proj_step(t, carry):
        xp_sc[t] = (jnp.dot(x_ref[t], wih_ref[...],
                            preferred_element_type=jnp.float32) + b_ref[...])
        return carry

    lax.fori_loop(0, tt, proj_step, 0, unroll=True)

    # ---- serial recurrence; h/c live in vregs as loop carry ----
    # TODO(synk): hold W_hh^T stationary in the MXU via pltpu.matmul_push_rhs/matmul_acc_lhs/
    #             matmul_pop to avoid re-pushing the (H, 4H) weights every timestep.
    needs_mask = (seq_len % tt) != 0  # only the last chunk can contain padded timesteps

    def step(t, carry):
        h, c = carry
        gates = xp_sc[t] + jnp.dot(h, whh_ref[...],
                                   preferred_element_type=jnp.float32)  # (Bb, 4H)
        i_g = _sigmoid(gates[:, 0 * H:1 * H])
        f_g = _sigmoid(gates[:, 1 * H:2 * H])
        g_g = jnp.tanh(gates[:, 2 * H:3 * H])
        o_g = _sigmoid(gates[:, 3 * H:4 * H])
        c_new = f_g * c + i_g * g_g
        h_new = o_g * jnp.tanh(c_new)
        if needs_mask:
            valid = (t_blk * tt + t) < seq_len
            h_new = jnp.where(valid, h_new, h)
            c_new = jnp.where(valid, c_new, c)
        return (h_new, c_new)

    h, c = lax.fori_loop(0, tt, step, (h_sc[...], c_sc[...]), unroll=True)

    # Persist state across time chunks (one store per chunk, not per step).
    h_sc[...] = h
    c_sc[...] = c

    @pl.when(t_blk == pl.num_programs(1) - 1)
    def _():
        h_out_ref[...] = h.astype(h_out_ref.dtype)


def smiles_featurizer_pallas(tokens, embed_w, w_ih, w_hh, b_ih, b_hh,
                             *, time_chunk=32, batch_block=128):
    """tokens: (B, T) int32. Returns h_n of shape (B, H) float32.

    Weight layout matches torch.nn.LSTM: w_ih (4H, E), w_hh (4H, H), biases (4H,).
    """
    B, T = tokens.shape
    E = embed_w.shape[1]
    H = w_hh.shape[1]
    G = 4 * H

    # Embedding gather stays in XLA: 128 B/token of HBM traffic instead of the 2 KiB/token a
    # materialized 4H pre-projection would cost. The input projection happens inside the kernel.
    x_emb = jnp.take(embed_w, tokens, axis=0).astype(jnp.float32)   # (B, T, E)
    x_emb = jnp.transpose(x_emb, (1, 0, 2))                         # (T, B, E) time-major

    # Batch: pad to a sublane multiple and tile into MXU-row-sized blocks ('parallel' axis).
    Bb = min(batch_block, max(8, -(-B // 8) * 8))
    Bp = -(-B // Bb) * Bb
    # Time: chunk so input DMAs pipeline against the recurrence and VMEM stays bounded.
    tt = min(time_chunk, T)
    nt = -(-T // tt)
    T_pad = nt * tt

    pad_t, pad_b = T_pad - T, Bp - B
    if pad_t or pad_b:
        x_emb = jnp.pad(x_emb, ((0, pad_t), (0, pad_b), (0, 0)))

    # TODO(synk): cast x_emb / wih_t / whh_t to bfloat16 (keep f32 state & accumulation) to halve
    #             HBM traffic and use the bf16 MXU path; requires loosening the f32 tolerance check.
    wih_t = jnp.transpose(w_ih)                  # (E, 4H)
    whh_t = jnp.transpose(w_hh)                  # (H, 4H)
    bias = (b_ih + b_hh).reshape(1, G)           # both LSTM biases folded into one row

    nb = Bp // Bb
    kernel = functools.partial(_lstm_chunk_kernel, seq_len=T)

    grid_spec = pltpu.PrefetchScalarGridSpec(
        num_scalar_prefetch=0,
        grid=(nb, nt),                                            # (batch blocks, time chunks)
        in_specs=[
            pl.BlockSpec((tt, Bb, E), lambda b, t: (t, b, 0)),    # streamed embedding chunk
            pl.BlockSpec((E, G), lambda b, t: (0, 0)),            # W_ih^T   (resident)
            pl.BlockSpec((H, G), lambda b, t: (0, 0)),            # W_hh^T   (resident)
            pl.BlockSpec((1, G), lambda b, t: (0, 0)),            # bias     (resident)
        ],
        out_specs=pl.BlockSpec((Bb, H), lambda b, t: (b, 0)),     # h_n per batch block
        scratch_shapes=[
            pltpu.VMEM((tt, Bb, G), jnp.float32),  # per-chunk pre-projected gate inputs
            pltpu.VMEM((Bb, H), jnp.float32),      # h carried across time chunks
            pltpu.VMEM((Bb, H), jnp.float32),      # c carried across time chunks
        ],
    )

    h_pad = pl.pallas_call(
        kernel,
        out_shape=jax.ShapeDtypeStruct((Bp, H), jnp.float32),
        grid_spec=grid_spec,
        compiler_params=pltpu.CompilerParams(
            dimension_semantics=("parallel", "arbitrary"),
            vmem_limit_bytes=32 * 1024 * 1024,
        ),
    )(x_emb, wih_t, whh_t, bias)

    return h_pad[:B]


def smiles_featurizer_ref(tokens, embed_w, w_ih, w_hh, b_ih, b_hh):
    """Pure-JAX reference matching torch.nn.LSTM semantics (gate order i,f,g,o)."""
    B, T = tokens.shape
    H = w_hh.shape[1]
    x_emb = jnp.take(embed_w, tokens, axis=0)  # (B, T, E)

    def step(carry, x_t):
        h, c = carry
        gates = x_t @ w_ih.T + b_ih + h @ w_hh.T + b_hh
        i_g = jax.nn.sigmoid(gates[:, 0 * H:1 * H])
        f_g = jax.nn.sigmoid(gates[:, 1 * H:2 * H])
        g_g = jnp.tanh(gates[:, 2 * H:3 * H])
        o_g = jax.nn.sigmoid(gates[:, 3 * H:4 * H])
        c = f_g * c + i_g * g_g
        h = o_g * jnp.tanh(c)
        return (h, c), None

    h0 = jnp.zeros((B, H), jnp.float32)
    c0 = jnp.zeros((B, H), jnp.float32)
    (h_n, _), _ = lax.scan(step, (h0, c0), jnp.transpose(x_emb, (1, 0, 2)))
    return h_n


if __name__ == "__main__":
    vocab_size, embed_dim, hidden_dim = 64, 32, 128
    B, T = 2, 8

    key = jax.random.PRNGKey(0)
    k_tok, k_emb, k_wih, k_whh, k_bih, k_bhh = jax.random.split(key, 6)

    tokens = jax.random.randint(k_tok, (B, T), 0, vocab_size, dtype=jnp.int32)

    # Deterministic parameter init (mimics nn.Embedding normal init and LSTM uniform(-1/sqrt(H), 1/sqrt(H))).
    embed_w = jax.random.normal(k_emb, (vocab_size, embed_dim), jnp.float32)
    bound = 1.0 / jnp.sqrt(jnp.float32(hidden_dim))
    w_ih = jax.random.uniform(k_wih, (4 * hidden_dim, embed_dim), jnp.float32, -bound, bound)
    w_hh = jax.random.uniform(k_whh, (4 * hidden_dim, hidden_dim), jnp.float32, -bound, bound)
    b_ih = jax.random.uniform(k_bih, (4 * hidden_dim,), jnp.float32, -bound, bound)
    b_hh = jax.random.uniform(k_bhh, (4 * hidden_dim,), jnp.float32, -bound, bound)

    h_pallas = smiles_featurizer_pallas(tokens, embed_w, w_ih, w_hh, b_ih, b_hh)
    h_pallas = jax.block_until_ready(h_pallas)

    h_ref = smiles_featurizer_ref(tokens, embed_w, w_ih, w_hh, b_ih, b_hh)
    assert h_pallas.shape == (B, hidden_dim)
    assert jnp.allclose(h_pallas, h_ref, atol=1e-5, rtol=1e-4), "mismatch vs reference"

    print("KERNEL_OK")
</pallas_src>

<mosaic_0001>
module attributes {stable_mosaic.version = 11 : i64} {
  func.func @_lstm_chunk_kernel(%arg0: i32, %arg1: i32, %arg2: memref<8x8x32xf32, #tpu.memory_space<vmem>>, %arg3: memref<32x512xf32, #tpu.memory_space<vmem>>, %arg4: memref<128x512xf32, #tpu.memory_space<vmem>>, %arg5: memref<1x512xf32, #tpu.memory_space<vmem>>, %arg6: memref<8x128xf32, #tpu.memory_space<vmem>>, %arg7: memref<8x8x512xf32, #tpu.memory_space<vmem>>, %arg8: memref<8x128xf32, #tpu.memory_space<vmem>>, %arg9: memref<8x128xf32, #tpu.memory_space<vmem>>) attributes {dimension_semantics = [#tpu.dimension_semantics<parallel>, #tpu.dimension_semantics<arbitrary>], iteration_bounds = array<i64: 1, 1>, scalar_prefetch = 0 : i64, scratch_operands = 3 : i64, tpu.core_type = #tpu.core_type<tc>, window_params = [{transform_indices = @transform_0, window_bounds = array<i64: 8, 8, 32>}, {pipeline_mode = #tpu.pipeline_mode<synchronous>, transform_indices = @transform_1, window_bounds = array<i64: 32, 512>}, {pipeline_mode = #tpu.pipeline_mode<synchronous>, transform_indices = @transform_2, window_bounds = array<i64: 128, 512>}, {pipeline_mode = #tpu.pipeline_mode<synchronous>, transform_indices = @transform_3, window_bounds = array<i64: 1, 512>}, {transform_indices = @transform_4, window_bounds = array<i64: 8, 128>}]} {
    %c0_i32 = arith.constant 0 : i32
    %0 = arith.cmpi eq, %arg1, %c0_i32 : i32
    %1 = arith.extui %0 : i1 to i32
    %c0_i32_0 = arith.constant 0 : i32
    %2 = arith.cmpi ne, %1, %c0_i32_0 : i32
    scf.if %2 {
      %cst_203 = arith.constant 0.000000e+00 : f32
      %402 = vector.broadcast %cst_203 : f32 to vector<8x128xf32>
      %c0_204 = arith.constant 0 : index
      %c0_205 = arith.constant 0 : index
      %403 = vector.load %arg8[%c0_204, %c0_205] : memref<8x128xf32, #tpu.memory_space<vmem>>, vector<8x128xf32>
      tpu.vector_store %arg8[%c0_204, %c0_205], %402 {strides = array<i32>} : memref<8x128xf32, #tpu.memory_space<vmem>>, vector<8x128xf32>,
      %cst_206 = arith.constant 0.000000e+00 : f32
      %404 = vector.broadcast %cst_206 : f32 to vector<8x128xf32>
      %c0_207 = arith.constant 0 : index
      %c0_208 = arith.constant 0 : index
      %405 = vector.load %arg9[%c0_207, %c0_208] : memref<8x128xf32, #tpu.memory_space<vmem>>, vector<8x128xf32>
      tpu.vector_store %arg9[%c0_207, %c0_208], %404 {strides = array<i32>} : memref<8x128xf32, #tpu.memory_space<vmem>>, vector<8x128xf32>,
    } else {
    }
    %c0_i32_1 = arith.constant 0 : i32
    %3 = arith.index_cast %c0_i32_1 : i32 to index
    %c0 = arith.constant 0 : index
    %c0_2 = arith.constant 0 : index
    %4 = vector.load %arg2[%3, %c0, %c0_2] : memref<8x8x32xf32, #tpu.memory_space<vmem>>, vector<1x8x32xf32>
    %5 = vector.shape_cast %4 : vector<1x8x32xf32> to vector<8x32xf32>
    %c0_3 = arith.constant 0 : index
    %c0_4 = arith.constant 0 : index
    %6 = vector.load %arg3[%c0_3, %c0_4] : memref<32x512xf32, #tpu.memory_space<vmem>>, vector<32x512xf32>
    %cst = arith.constant dense<0.000000e+00> : vector<8x512xf32>
    %7 = tpu.matmul %5, %6, %cst {dimension_numbers = #tpu.dot_dimension_numbers<[1], [0], [0], [1], [0, 0, 1, 1], [], []>} : vector<8x32xf32>, vector<32x512xf32>, vector<8x512xf32> -> vector<8x512xf32>
    %c0_5 = arith.constant 0 : index
    %c0_6 = arith.constant 0 : index
    %8 = vector.load %arg5[%c0_5, %c0_6] : memref<1x512xf32, #tpu.memory_space<vmem>>, vector<1x512xf32>
    %9 = vector.broadcast %8 : vector<1x512xf32> to vector<8x512xf32>
    %10 = arith.addf %7, %9 : vector<8x512xf32>
    %11 = arith.index_cast %c0_i32_1 : i32 to index
    %c0_7 = arith.constant 0 : index
    %c0_8 = arith.constant 0 : index
    %12 = vector.load %arg7[%11, %c0_7, %c0_8] : memref<8x8x512xf32, #tpu.memory_space<vmem>>, vector<1x8x512xf32>
    %13 = vector.shape_cast %12 : vector<1x8x512xf32> to vector<8x512xf32>
    %14 = vector.shape_cast %10 : vector<8x512xf32> to vector<1x8x512xf32>
    tpu.vector_store %arg7[%11, %c0_7, %c0_8], %14 {strides = array<i32>} : memref<8x8x512xf32, #tpu.memory_space<vmem>>, vector<1x8x512xf32>,
    %c1_i32 = arith.constant 1 : i32
    %15 = arith.index_cast %c1_i32 : i32 to index
    %c0_9 = arith.constant 0 : index
    %c0_10 = arith.constant 0 : index
    %16 = vector.load %arg2[%15, %c0_9, %c0_10] : memref<8x8x32xf32, #tpu.memory_space<vmem>>, vector<1x8x32xf32>
    %17 = vector.shape_cast %16 : vector<1x8x32xf32> to vector<8x32xf32>
    %c0_11 = arith.constant 0 : index
    %c0_12 = arith.constant 0 : index
    %18 = vector.load %arg3[%c0_11, %c0_12] : memref<32x512xf32, #tpu.memory_space<vmem>>, vector<32x512xf32>
    %cst_13 = arith.constant dense<0.000000e+00> : vector<8x512xf32>
    %19 = tpu.matmul %17, %18, %cst_13 {dimension_numbers = #tpu.dot_dimension_numbers<[1], [0], [0], [1], [0, 0, 1, 1], [], []>} : vector<8x32xf32>, vector<32x512xf32>, vector<8x512xf32> -> vector<8x512xf32>
    %c0_14 = arith.constant 0 : index
    %c0_15 = arith.constant 0 : index
    %20 = vector.load %arg5[%c0_14, %c0_15] : memref<1x512xf32, #tpu.memory_space<vmem>>, vector<1x512xf32>
    %21 = vector.broadcast %20 : vector<1x512xf32> to vector<8x512xf32>
    %22 = arith.addf %19, %21 : vector<8x512xf32>
    %23 = arith.index_cast %c1_i32 : i32 to index
    %c0_16 = arith.constant 0 : index
    %c0_17 = arith.constant 0 : index
    %24 = vector.load %arg7[%23, %c0_16, %c0_17] : memref<8x8x512xf32, #tpu.memory_space<vmem>>, vector<1x8x512xf32>
    %25 = vector.shape_cast %24 : vector<1x8x512xf32> to vector<8x512xf32>
    %26 = vector.shape_cast %22 : vector<8x512xf32> to vector<1x8x512xf32>
    tpu.vector_store %arg7[%23, %c0_16, %c0_17], %26 {strides = array<i32>} : memref<8x8x512xf32, #tpu.memory_space<vmem>>, vector<1x8x512xf32>,
    %c2_i32 = arith.constant 2 : i32
    %27 = arith.index_cast %c2_i32 : i32 to index
    %c0_18 = arith.constant 0 : index
    %c0_19 = arith.constant 0 : index
    %28 = vector.load %arg2[%27, %c0_18, %c0_19] : memref<8x8x32xf32, #tpu.memory_space<vmem>>, vector<1x8x32xf32>
    %29 = vector.shape_cast %28 : vector<1x8x32xf32> to vector<8x32xf32>
    %c0_20 = arith.constant 0 : index
    %c0_21 = arith.constant 0 : index
    %30 = vector.load %arg3[%c0_20, %c0_21] : memref<32x512xf32, #tpu.memory_space<vmem>>, vector<32x512xf32>
    %cst_22 = arith.constant dense<0.000000e+00> : vector<8x512xf32>
    %31 = tpu.matmul %29, %30, %cst_22 {dimension_numbers = #tpu.dot_dimension_numbers<[1], [0], [0], [1], [0, 0, 1, 1], [], []>} : vector<8x32xf32>, vector<32x512xf32>, vector<8x512xf32> -> vector<8x512xf32>
    %c0_23 = arith.constant 0 : index
    %c0_24 = arith.constant 0 : index
    %32 = vector.load %arg5[%c0_23, %c0_24] : memref<1x512xf32, #tpu.memory_space<vmem>>, vector<1x512xf32>
    %33 = vector.broadcast %32 : vector<1x512xf32> to vector<8x512xf32>
    %34 = arith.addf %31, %33 : vector<8x512xf32>
    %35 = arith.index_cast %c2_i32 : i32 to index
    %c0_25 = arith.constant 0 : index
    %c0_26 = arith.constant 0 : index
    %36 = vector.load %arg7[%35, %c0_25, %c0_26] : memref<8x8x512xf32, #tpu.memory_space<vmem>>, vector<1x8x512xf32>
    %37 = vector.shape_cast %36 : vector<1x8x512xf32> to vector<8x512xf32>
    %38 = vector.shape_cast %34 : vector<8x512xf32> to vector<1x8x512xf32>
    tpu.vector_store %arg7[%35, %c0_25, %c0_26], %38 {strides = array<i32>} : memref<8x8x512xf32, #tpu.memory_space<vmem>>, vector<1x8x512xf32>,
    %c3_i32 = arith.constant 3 : i32
    %39 = arith.index_cast %c3_i32 : i32 to index
    %c0_27 = arith.constant 0 : index
    %c0_28 = arith.constant 0 : index
    %40 = vector.load %arg2[%39, %c0_27, %c0_28] : memref<8x8x32xf32, #tpu.memory_space<vmem>>, vector<1x8x32xf32>
    %41 = vector.shape_cast %40 : vector<1x8x32xf32> to vector<8x32xf32>
    %c0_29 = arith.constant 0 : index
    %c0_30 = arith.constant 0 : index
    %42 = vector.load %arg3[%c0_29, %c0_30] : memref<32x512xf32, #tpu.memory_space<vmem>>, vector<32x512xf32>
    %cst_31 = arith.constant dense<0.000000e+00> : vector<8x512xf32>
    %43 = tpu.matmul %41, %42, %cst_31 {dimension_numbers = #tpu.dot_dimension_numbers<[1], [0], [0], [1], [0, 0, 1, 1], [], []>} : vector<8x32xf32>, vector<32x512xf32>, vector<8x512xf32> -> vector<8x512xf32>
    %c0_32 = arith.constant 0 : index
    %c0_33 = arith.constant 0 : index
    %44 = vector.load %arg5[%c0_32, %c0_33] : memref<1x512xf32, #tpu.memory_space<vmem>>, vector<1x512xf32>
    %45 = vector.broadcast %44 : vector<1x512xf32> to vector<8x512xf32>
    %46 = arith.addf %43, %45 : vector<8x512xf32>
    %47 = arith.index_cast %c3_i32 : i32 to index
    %c0_34 = arith.constant 0 : index
    %c0_35 = arith.constant 0 : index
    %48 = vector.load %arg7[%47, %c0_34, %c0_35] : memref<8x8x512xf32, #tpu.memory_space<vmem>>, vector<1x8x512xf32>
    %49 = vector.shape_cast %48 : vector<1x8x512xf32> to vector<8x512xf32>
    %50 = vector.shape_cast %46 : vector<8x512xf32> to vector<1x8x512xf32>
    tpu.vector_store %arg7[%47, %c0_34, %c0_35], %50 {strides = array<i32>} : memref<8x8x512xf32, #tpu.memory_space<vmem>>, vector<1x8x512xf32>,
    %c4_i32 = arith.constant 4 : i32
    %51 = arith.index_cast %c4_i32 : i32 to index
    %c0_36 = arith.constant 0 : index
    %c0_37 = arith.constant 0 : index
    %52 = vector.load %arg2[%51, %c0_36, %c0_37] : memref<8x8x32xf32, #tpu.memory_space<vmem>>, vector<1x8x32xf32>
    %53 = vector.shape_cast %52 : vector<1x8x32xf32> to vector<8x32xf32>
    %c0_38 = arith.constant 0 : index
    %c0_39 = arith.constant 0 : index
    %54 = vector.load %arg3[%c0_38, %c0_39] : memref<32x512xf32, #tpu.memory_space<vmem>>, vector<32x512xf32>
    %cst_40 = arith.constant dense<0.000000e+00> : vector<8x512xf32>
    %55 = tpu.matmul %53, %54, %cst_40 {dimension_numbers = #tpu.dot_dimension_numbers<[1], [0], [0], [1], [0, 0, 1, 1], [], []>} : vector<8x32xf32>, vector<32x512xf32>, vector<8x512xf32> -> vector<8x512xf32>
    %c0_41 = arith.constant 0 : index
    %c0_42 = arith.constant 0 : index
    %56 = vector.load %arg5[%c0_41, %c0_42] : memref<1x512xf32, #tpu.memory_space<vmem>>, vector<1x512xf32>
    %57 = vector.broadcast %56 : vector<1x512xf32> to vector<8x512xf32>
    %58 = arith.addf %55, %57 : vector<8x512xf32>
    %59 = arith.index_cast %c4_i32 : i32 to index
    %c0_43 = arith.constant 0 : index
    %c0_44 = arith.constant 0 : index
    %60 = vector.load %arg7[%59, %c0_43, %c0_44] : memref<8x8x512xf32, #tpu.memory_space<vmem>>, vector<1x8x512xf32>
    %61 = vector.shape_cast %60 : vector<1x8x512xf32> to vector<8x512xf32>
    %62 = vector.shape_cast %58 : vector<8x512xf32> to vector<1x8x512xf32>
    tpu.vector_store %arg7[%59, %c0_43, %c0_44], %62 {strides = array<i32>} : memref<8x8x512xf32, #tpu.memory_space<vmem>>, vector<1x8x512xf32>,
    %c5_i32 = arith.constant 5 : i32
    %63 = arith.index_cast %c5_i32 : i32 to index
    %c0_45 = arith.constant 0 : index
    %c0_46 = arith.constant 0 : index
    %64 = vector.load %arg2[%63, %c0_45, %c0_46] : memref<8x8x32xf32, #tpu.memory_space<vmem>>, vector<1x8x32xf32>
    %65 = vector.shape_cast %64 : vector<1x8x32xf32> to vector<8x32xf32>
    %c0_47 = arith.constant 0 : index
    %c0_48 = arith.constant 0 : index
    %66 = vector.load %arg3[%c0_47, %c0_48] : memref<32x512xf32, #tpu.memory_space<vmem>>, vector<32x512xf32>
    %cst_49 = arith.constant dense<0.000000e+00> : vector<8x512xf32>
    %67 = tpu.matmul %65, %66, %cst_49 {dimension_numbers = #tpu.dot_dimension_numbers<[1], [0], [0], [1], [0, 0, 1, 1], [], []>} : vector<8x32xf32>, vector<32x512xf32>, vector<8x512xf32> -> vector<8x512xf32>
    %c0_50 = arith.constant 0 : index
    %c0_51 = arith.constant 0 : index
    %68 = vector.load %arg5[%c0_50, %c0_51] : memref<1x512xf32, #tpu.memory_space<vmem>>, vector<1x512xf32>
    %69 = vector.broadcast %68 : vector<1x512xf32> to vector<8x512xf32>
    %70 = arith.addf %67, %69 : vector<8x512xf32>
    %71 = arith.index_cast %c5_i32 : i32 to index
    %c0_52 = arith.constant 0 : index
    %c0_53 = arith.constant 0 : index
    %72 = vector.load %arg7[%71, %c0_52, %c0_53] : memref<8x8x512xf32, #tpu.memory_space<vmem>>, vector<1x8x512xf32>
    %73 = vector.shape_cast %72 : vector<1x8x512xf32> to vector<8x512xf32>
    %74 = vector.shape_cast %70 : vector<8x512xf32> to vector<1x8x512xf32>
    tpu.vector_store %arg7[%71, %c0_52, %c0_53], %74 {strides = array<i32>} : memref<8x8x512xf32, #tpu.memory_space<vmem>>, vector<1x8x512xf32>,
    %c6_i32 = arith.constant 6 : i32
    %75 = arith.index_cast %c6_i32 : i32 to index
    %c0_54 = arith.constant 0 : index
    %c0_55 = arith.constant 0 : index
    %76 = vector.load %arg2[%75, %c0_54, %c0_55] : memref<8x8x32xf32, #tpu.memory_space<vmem>>, vector<1x8x32xf32>
    %77 = vector.shape_cast %76 : vector<1x8x32xf32> to vector<8x32xf32>
    %c0_56 = arith.constant 0 : index
    %c0_57 = arith.constant 0 : index
    %78 = vector.load %arg3[%c0_56, %c0_57] : memref<32x512xf32, #tpu.memory_space<vmem>>, vector<32x512xf32>
    %cst_58 = arith.constant dense<0.000000e+00> : vector<8x512xf32>
    %79 = tpu.matmul %77, %78, %cst_58 {dimension_numbers = #tpu.dot_dimension_numbers<[1], [0], [0], [1], [0, 0, 1, 1], [], []>} : vector<8x32xf32>, vector<32x512xf32>, vector<8x512xf32> -> vector<8x512xf32>
    %c0_59 = arith.constant 0 : index
    %c0_60 = arith.constant 0 : index
    %80 = vector.load %arg5[%c0_59, %c0_60] : memref<1x512xf32, #tpu.memory_space<vmem>>, vector<1x512xf32>
    %81 = vector.broadcast %80 : vector<1x512xf32> to vector<8x512xf32>
    %82 = arith.addf %79, %81 : vector<8x512xf32>
    %83 = arith.index_cast %c6_i32 : i32 to index
    %c0_61 = arith.constant 0 : index
    %c0_62 = arith.constant 0 : index
    %84 = vector.load %arg7[%83, %c0_61, %c0_62] : memref<8x8x512xf32, #tpu.memory_space<vmem>>, vector<1x8x512xf32>
    %85 = vector.shape_cast %84 : vector<1x8x512xf32> to vector<8x512xf32>
    %86 = vector.shape_cast %82 : vector<8x512xf32> to vector<1x8x512xf32>
    tpu.vector_store %arg7[%83, %c0_61, %c0_62], %86 {strides = array<i32>} : memref<8x8x512xf32, #tpu.memory_space<vmem>>, vector<1x8x512xf32>,
    %c7_i32 = arith.constant 7 : i32
    %87 = arith.index_cast %c7_i32 : i32 to index
    %c0_63 = arith.constant 0 : index
    %c0_64 = arith.constant 0 : index
    %88 = vector.load %arg2[%87, %c0_63, %c0_64] : memref<8x8x32xf32, #tpu.memory_space<vmem>>, vector<1x8x32xf32>
    %89 = vector.shape_cast %88 : vector<1x8x32xf32> to vector<8x32xf32>
    %c0_65 = arith.constant 0 : index
    %c0_66 = arith.constant 0 : index
    %90 = vector.load %arg3[%c0_65, %c0_66] : memref<32x512xf32, #tpu.memory_space<vmem>>, vector<32x512xf32>
    %cst_67 = arith.constant dense<0.000000e+00> : vector<8x512xf32>
    %91 = tpu.matmul %89, %90, %cst_67 {dimension_numbers = #tpu.dot_dimension_numbers<[1], [0], [0], [1], [0, 0, 1, 1], [], []>} : vector<8x32xf32>, vector<32x512xf32>, vector<8x512xf32> -> vector<8x512xf32>
    %c0_68 = arith.constant 0 : index
    %c0_69 = arith.constant 0 : index
    %92 = vector.load %arg5[%c0_68, %c0_69] : memref<1x512xf32, #tpu.memory_space<vmem>>, vector<1x512xf32>
    %93 = vector.broadcast %92 : vector<1x512xf32> to vector<8x512xf32>
    %94 = arith.addf %91, %93 : vector<8x512xf32>
    %95 = arith.index_cast %c7_i32 : i32 to index
    %c0_70 = arith.constant 0 : index
    %c0_71 = arith.constant 0 : index
    %96 = vector.load %arg7[%95, %c0_70, %c0_71] : memref<8x8x512xf32, #tpu.memory_space<vmem>>, vector<1x8x512xf32>
    %97 = vector.shape_cast %96 : vector<1x8x512xf32> to vector<8x512xf32>
    %98 = vector.shape_cast %94 : vector<8x512xf32> to vector<1x8x512xf32>
    tpu.vector_store %arg7[%95, %c0_70, %c0_71], %98 {strides = array<i32>} : memref<8x8x512xf32, #tpu.memory_space<vmem>>, vector<1x8x512xf32>,
    %c8_i32 = arith.constant 8 : i32
    %c0_72 = arith.constant 0 : index
    %c0_73 = arith.constant 0 : index
    %99 = vector.load %arg8[%c0_72, %c0_73] : memref<8x128xf32, #tpu.memory_space<vmem>>, vector<8x128xf32>
    %c0_74 = arith.constant 0 : index
    %c0_75 = arith.constant 0 : index
    %100 = vector.load %arg9[%c0_74, %c0_75] : memref<8x128xf32, #tpu.memory_space<vmem>>, vector<8x128xf32>
    %c0_i32_76 = arith.constant 0 : i32
    %101 = arith.index_cast %c0_i32_76 : i32 to index
    %c0_77 = arith.constant 0 : index
    %c0_78 = arith.constant 0 : index
    %102 = vector.load %arg7[%101, %c0_77, %c0_78] : memref<8x8x512xf32, #tpu.memory_space<vmem>>, vector<1x8x512xf32>
    %103 = vector.shape_cast %102 : vector<1x8x512xf32> to vector<8x512xf32>
    %c0_79 = arith.constant 0 : index
    %c0_80 = arith.constant 0 : index
    %104 = vector.load %arg4[%c0_79, %c0_80] : memref<128x512xf32, #tpu.memory_space<vmem>>, vector<128x512xf32>
    %cst_81 = arith.constant dense<0.000000e+00> : vector<8x512xf32>
    %105 = tpu.matmul %99, %104, %cst_81 {dimension_numbers = #tpu.dot_dimension_numbers<[1], [0], [0], [1], [0, 0, 1, 1], [], []>} : vector<8x128xf32>, vector<128x512xf32>, vector<8x512xf32> -> vector<8x512xf32>
    %106 = arith.addf %103, %105 : vector<8x512xf32>
    %107 = vector.extract_strided_slice %106 {offsets = [0, 0], sizes = [8, 128], strides = [1, 1]} : vector<8x512xf32> to vector<8x128xf32>
    %cst_82 = arith.constant 5.000000e-01 : f32
    %108 = vector.broadcast %cst_82 : f32 to vector<8x128xf32>
    %109 = arith.mulf %108, %107 : vector<8x128xf32>
    %110 = math.tanh %109 : vector<8x128xf32>
    %cst_83 = arith.constant 5.000000e-01 : f32
    %111 = vector.broadcast %cst_83 : f32 to vector<8x128xf32>
    %112 = arith.mulf %111, %110 : vector<8x128xf32>
    %cst_84 = arith.constant 5.000000e-01 : f32
    %113 = vector.broadcast %cst_84 : f32 to vector<8x128xf32>
    %114 = arith.addf %112, %113 : vector<8x128xf32>
    %115 = vector.extract_strided_slice %106 {offsets = [0, 128], sizes = [8, 128], strides = [1, 1]} : vector<8x512xf32> to vector<8x128xf32>
    %cst_85 = arith.constant 5.000000e-01 : f32
    %116 = vector.broadcast %cst_85 : f32 to vector<8x128xf32>
    %117 = arith.mulf %116, %115 : vector<8x128xf32>
    %118 = math.tanh %117 : vector<8x128xf32>
    %cst_86 = arith.constant 5.000000e-01 : f32
    %119 = vector.broadcast %cst_86 : f32 to vector<8x128xf32>
    %120 = arith.mulf %119, %118 : vector<8x128xf32>
    %cst_87 = arith.constant 5.000000e-01 : f32
    %121 = vector.broadcast %cst_87 : f32 to vector<8x128xf32>
    %122 = arith.addf %120, %121 : vector<8x128xf32>
    %123 = vector.extract_strided_slice %106 {offsets = [0, 256], sizes = [8, 128], strides = [1, 1]} : vector<8x512xf32> to vector<8x128xf32>
    %124 = math.tanh %123 : vector<8x128xf32>
    %125 = vector.extract_strided_slice %106 {offsets = [0, 384], sizes = [8, 128], strides = [1, 1]} : vector<8x512xf32> to vector<8x128xf32>
    %cst_88 = arith.constant 5.000000e-01 : f32
    %126 = vector.broadcast %cst_88 : f32 to vector<8x128xf32>
    %127 = arith.mulf %126, %125 : vector<8x128xf32>
    %128 = math.tanh %127 : vector<8x128xf32>
    %cst_89 = arith.constant 5.000000e-01 : f32
    %129 = vector.broadcast %cst_89 : f32 to vector<8x128xf32>
    %130 = arith.mulf %129, %128 : vector<8x128xf32>
    %cst_90 = arith.constant 5.000000e-01 : f32
    %131 = vector.broadcast %cst_90 : f32 to vector<8x128xf32>
    %132 = arith.addf %130, %131 : vector<8x128xf32>
    %133 = arith.mulf %122, %100 : vector<8x128xf32>
    %134 = arith.mulf %114, %124 : vector<8x128xf32>
    %135 = arith.addf %133, %134 : vector<8x128xf32>
    %136 = math.tanh %135 : vector<8x128xf32>
    %137 = arith.mulf %132, %136 : vector<8x128xf32>
    %c1_i32_91 = arith.constant 1 : i32
    %138 = arith.index_cast %c1_i32_91 : i32 to index
    %c0_92 = arith.constant 0 : index
    %c0_93 = arith.constant 0 : index
    %139 = vector.load %arg7[%138, %c0_92, %c0_93] : memref<8x8x512xf32, #tpu.memory_space<vmem>>, vector<1x8x512xf32>
    %140 = vector.shape_cast %139 : vector<1x8x512xf32> to vector<8x512xf32>
    %c0_94 = arith.constant 0 : index
    %c0_95 = arith.constant 0 : index
    %141 = vector.load %arg4[%c0_94, %c0_95] : memref<128x512xf32, #tpu.memory_space<vmem>>, vector<128x512xf32>
    %cst_96 = arith.constant dense<0.000000e+00> : vector<8x512xf32>
    %142 = tpu.matmul %137, %141, %cst_96 {dimension_numbers = #tpu.dot_dimension_numbers<[1], [0], [0], [1], [0, 0, 1, 1], [], []>} : vector<8x128xf32>, vector<128x512xf32>, vector<8x512xf32> -> vector<8x512xf32>
    %143 = arith.addf %140, %142 : vector<8x512xf32>
    %144 = vector.extract_strided_slice %143 {offsets = [0, 0], sizes = [8, 128], strides = [1, 1]} : vector<8x512xf32> to vector<8x128xf32>
    %cst_97 = arith.constant 5.000000e-01 : f32
    %145 = vector.broadcast %cst_97 : f32 to vector<8x128xf32>
    %146 = arith.mulf %145, %144 : vector<8x128xf32>
    %147 = math.tanh %146 : vector<8x128xf32>
    %cst_98 = arith.constant 5.000000e-01 : f32
    %148 = vector.broadcast %cst_98 : f32 to vector<8x128xf32>
    %149 = arith.mulf %148, %147 : vector<8x128xf32>
    %cst_99 = arith.constant 5.000000e-01 : f32
    %150 = vector.broadcast %cst_99 : f32 to vector<8x128xf32>
    %151 = arith.addf %149, %150 : vector<8x128xf32>
    %152 = vector.extract_strided_slice %143 {offsets = [0, 128], sizes = [8, 128], strides = [1, 1]} : vector<8x512xf32> to vector<8x128xf32>
    %cst_100 = arith.constant 5.000000e-01 : f32
    %153 = vector.broadcast %cst_100 : f32 to vector<8x128xf32>
    %154 = arith.mulf %153, %152 : vector<8x128xf32>
    %155 = math.tanh %154 : vector<8x128xf32>
    %cst_101 = arith.constant 5.000000e-01 : f32
    %156 = vector.broadcast %cst_101 : f32 to vector<8x128xf32>
    %157 = arith.mulf %156, %155 : vector<8x128xf32>
    %cst_102 = arith.constant 5.000000e-01 : f32
    %158 = vector.broadcast %cst_102 : f32 to vector<8x128xf32>
    %159 = arith.addf %157, %158 : vector<8x128xf32>
    %160 = vector.extract_strided_slice %143 {offsets = [0, 256], sizes = [8, 128], strides = [1, 1]} : vector<8x512xf32> to vector<8x128xf32>
    %161 = math.tanh %160 : vector<8x128xf32>
    %162 = vector.extract_strided_slice %143 {offsets = [0, 384], sizes = [8, 128], strides = [1, 1]} : vector<8x512xf32> to vector<8x128xf32>
    %cst_103 = arith.constant 5.000000e-01 : f32
    %163 = vector.broadcast %cst_103 : f32 to vector<8x128xf32>
    %164 = arith.mulf %163, %162 : vector<8x128xf32>
    %165 = math.tanh %164 : vector<8x128xf32>
    %cst_104 = arith.constant 5.000000e-01 : f32
    %166 = vector.broadcast %cst_104 : f32 to vector<8x128xf32>
    %167 = arith.mulf %166, %165 : vector<8x128xf32>
    %cst_105 = arith.constant 5.000000e-01 : f32
    %168 = vector.broadcast %cst_105 : f32 to vector<8x128xf32>
    %169 = arith.addf %167, %168 : vector<8x128xf32>
    %170 = arith.mulf %159, %135 : vector<8x128xf32>
    %171 = arith.mulf %151, %161 : vector<8x128xf32>
    %172 = arith.addf %170, %171 : vector<8x128xf32>
    %173 = math.tanh %172 : vector<8x128xf32>
    %174 = arith.mulf %169, %173 : vector<8x128xf32>
    %c2_i32_106 = arith.constant 2 : i32
    %175 = arith.index_cast %c2_i32_106 : i32 to index
    %c0_107 = arith.constant 0 : index
    %c0_108 = arith.constant 0 : index
    %176 = vector.load %arg7[%175, %c0_107, %c0_108] : memref<8x8x512xf32, #tpu.memory_space<vmem>>, vector<1x8x512xf32>
    %177 = vector.shape_cast %176 : vector<1x8x512xf32> to vector<8x512xf32>
    %c0_109 = arith.constant 0 : index
    %c0_110 = arith.constant 0 : index
    %178 = vector.load %arg4[%c0_109, %c0_110] : memref<128x512xf32, #tpu.memory_space<vmem>>, vector<128x512xf32>
    %cst_111 = arith.constant dense<0.000000e+00> : vector<8x512xf32>
    %179 = tpu.matmul %174, %178, %cst_111 {dimension_numbers = #tpu.dot_dimension_numbers<[1], [0], [0], [1], [0, 0, 1, 1], [], []>} : vector<8x128xf32>, vector<128x512xf32>, vector<8x512xf32> -> vector<8x512xf32>
    %180 = arith.addf %177, %179 : vector<8x512xf32>
    %181 = vector.extract_strided_slice %180 {offsets = [0, 0], sizes = [8, 128], strides = [1, 1]} : vector<8x512xf32> to vector<8x128xf32>
    %cst_112 = arith.constant 5.000000e-01 : f32
    %182 = vector.broadcast %cst_112 : f32 to vector<8x128xf32>
    %183 = arith.mulf %182, %181 : vector<8x128xf32>
    %184 = math.tanh %183 : vector<8x128xf32>
    %cst_113 = arith.constant 5.000000e-01 : f32
    %185 = vector.broadcast %cst_113 : f32 to vector<8x128xf32>
    %186 = arith.mulf %185, %184 : vector<8x128xf32>
    %cst_114 = arith.constant 5.000000e-01 : f32
    %187 = vector.broadcast %cst_114 : f32 to vector<8x128xf32>
    %188 = arith.addf %186, %187 : vector<8x128xf32>
    %189 = vector.extract_strided_slice %180 {offsets = [0, 128], sizes = [8, 128], strides = [1, 1]} : vector<8x512xf32> to vector<8x128xf32>
    %cst_115 = arith.constant 5.000000e-01 : f32
    %190 = vector.broadcast %cst_115 : f32 to vector<8x128xf32>
    %191 = arith.mulf %190, %189 : vector<8x128xf32>
    %192 = math.tanh %191 : vector<8x128xf32>
    %cst_116 = arith.constant 5.000000e-01 : f32
    %193 = vector.broadcast %cst_116 : f32 to vector<8x128xf32>
    %194 = arith.mulf %193, %192 : vector<8x128xf32>
    %cst_117 = arith.constant 5.000000e-01 : f32
    %195 = vector.broadcast %cst_117 : f32 to vector<8x128xf32>
    %196 = arith.addf %194, %195 : vector<8x128xf32>
    %197 = vector.extract_strided_slice %180 {offsets = [0, 256], sizes = [8, 128], strides = [1, 1]} : vector<8x512xf32> to vector<8x128xf32>
    %198 = math.tanh %197 : vector<8x128xf32>
    %199 = vector.extract_strided_slice %180 {offsets = [0, 384], sizes = [8, 128], strides = [1, 1]} : vector<8x512xf32> to vector<8x128xf32>
    %cst_118 = arith.constant 5.000000e-01 : f32
    %200 = vector.broadcast %cst_118 : f32 to vector<8x128xf32>
    %201 = arith.mulf %200, %199 : vector<8x128xf32>
    %202 = math.tanh %201 : vector<8x128xf32>
    %cst_119 = arith.constant 5.000000e-01 : f32
    %203 = vector.broadcast %cst_119 : f32 to vector<8x128xf32>
    %204 = arith.mulf %203, %202 : vector<8x128xf32>
    %cst_120 = arith.constant 5.000000e-01 : f32
    %205 = vector.broadcast %cst_120 : f32 to vector<8x128xf32>
    %206 = arith.addf %204, %205 : vector<8x128xf32>
    %207 = arith.mulf %196, %172 : vector<8x128xf32>
    %208 = arith.mulf %188, %198 : vector<8x128xf32>
    %209 = arith.addf %207, %208 : vector<8x128xf32>
    %210 = math.tanh %209 : vector<8x128xf32>
    %211 = arith.mulf %206, %210 : vector<8x128xf32>
    %c3_i32_121 = arith.constant 3 : i32
    %212 = arith.index_cast %c3_i32_121 : i32 to index
    %c0_122 = arith.constant 0 : index
    %c0_123 = arith.constant 0 : index
    %213 = vector.load %arg7[%212, %c0_122, %c0_123] : memref<8x8x512xf32, #tpu.memory_space<vmem>>, vector<1x8x512xf32>
    %214 = vector.shape_cast %213 : vector<1x8x512xf32> to vector<8x512xf32>
    %c0_124 = arith.constant 0 : index
    %c0_125 = arith.constant 0 : index
    %215 = vector.load %arg4[%c0_124, %c0_125] : memref<128x512xf32, #tpu.memory_space<vmem>>, vector<128x512xf32>
    %cst_126 = arith.constant dense<0.000000e+00> : vector<8x512xf32>
    %216 = tpu.matmul %211, %215, %cst_126 {dimension_numbers = #tpu.dot_dimension_numbers<[1], [0], [0], [1], [0, 0, 1, 1], [], []>} : vector<8x128xf32>, vector<128x512xf32>, vector<8x512xf32> -> vector<8x512xf32>
    %217 = arith.addf %214, %216 : vector<8x512xf32>
    %218 = vector.extract_strided_slice %217 {offsets = [0, 0], sizes = [8, 128], strides = [1, 1]} : vector<8x512xf32> to vector<8x128xf32>
    %cst_127 = arith.constant 5.000000e-01 : f32
    %219 = vector.broadcast %cst_127 : f32 to vector<8x128xf32>
    %220 = arith.mulf %219, %218 : vector<8x128xf32>
    %221 = math.tanh %220 : vector<8x128xf32>
    %cst_128 = arith.constant 5.000000e-01 : f32
    %222 = vector.broadcast %cst_128 : f32 to vector<8x128xf32>
    %223 = arith.mulf %222, %221 : vector<8x128xf32>
    %cst_129 = arith.constant 5.000000e-01 : f32
    %224 = vector.broadcast %cst_129 : f32 to vector<8x128xf32>
    %225 = arith.addf %223, %224 : vector<8x128xf32>
    %226 = vector.extract_strided_slice %217 {offsets = [0, 128], sizes = [8, 128], strides = [1, 1]} : vector<8x512xf32> to vector<8x128xf32>
    %cst_130 = arith.constant 5.000000e-01 : f32
    %227 = vector.broadcast %cst_130 : f32 to vector<8x128xf32>
    %228 = arith.mulf %227, %226 : vector<8x128xf32>
    %229 = math.tanh %228 : vector<8x128xf32>
    %cst_131 = arith.constant 5.000000e-01 : f32
    %230 = vector.broadcast %cst_131 : f32 to vector<8x128xf32>
    %231 = arith.mulf %230, %229 : vector<8x128xf32>
    %cst_132 = arith.constant 5.000000e-01 : f32
    %232 = vector.broadcast %cst_132 : f32 to vector<8x128xf32>
    %233 = arith.addf %231, %232 : vector<8x128xf32>
    %234 = vector.extract_strided_slice %217 {offsets = [0, 256], sizes = [8, 128], strides = [1, 1]} : vector<8x512xf32> to vector<8x128xf32>
    %235 = math.tanh %234 : vector<8x128xf32>
    %236 = vector.extract_strided_slice %217 {offsets = [0, 384], sizes = [8, 128], strides = [1, 1]} : vector<8x512xf32> to vector<8x128xf32>
    %cst_133 = arith.constant 5.000000e-01 : f32
    %237 = vector.broadcast %cst_133 : f32 to vector<8x128xf32>
    %238 = arith.mulf %237, %236 : vector<8x128xf32>
    %239 = math.tanh %238 : vector<8x128xf32>
    %cst_134 = arith.constant 5.000000e-01 : f32
    %240 = vector.broadcast %cst_134 : f32 to vector<8x128xf32>
    %241 = arith.mulf %240, %239 : vector<8x128xf32>
    %cst_135 = arith.constant 5.000000e-01 : f32
    %242 = vector.broadcast %cst_135 : f32 to vector<8x128xf32>
    %243 = arith.addf %241, %242 : vector<8x128xf32>
    %244 = arith.mulf %233, %209 : vector<8x128xf32>
    %245 = arith.mulf %225, %235 : vector<8x128xf32>
    %246 = arith.addf %244, %245 : vector<8x128xf32>
    %247 = math.tanh %246 : vector<8x128xf32>
    %248 = arith.mulf %243, %247 : vector<8x128xf32>
    %c4_i32_136 = arith.constant 4 : i32
    %249 = arith.index_cast %c4_i32_136 : i32 to index
    %c0_137 = arith.constant 0 : index
    %c0_138 = arith.constant 0 : index
    %250 = vector.load %arg7[%249, %c0_137, %c0_138] : memref<8x8x512xf32, #tpu.memory_space<vmem>>, vector<1x8x512xf32>
    %251 = vector.shape_cast %250 : vector<1x8x512xf32> to vector<8x512xf32>
    %c0_139 = arith.constant 0 : index
    %c0_140 = arith.constant 0 : index
    %252 = vector.load %arg4[%c0_139, %c0_140] : memref<128x512xf32, #tpu.memory_space<vmem>>, vector<128x512xf32>
    %cst_141 = arith.constant dense<0.000000e+00> : vector<8x512xf32>
    %253 = tpu.matmul %248, %252, %cst_141 {dimension_numbers = #tpu.dot_dimension_numbers<[1], [0], [0], [1], [0, 0, 1, 1], [], []>} : vector<8x128xf32>, vector<128x512xf32>, vector<8x512xf32> -> vector<8x512xf32>
    %254 = arith.addf %251, %253 : vector<8x512xf32>
    %255 = vector.extract_strided_slice %254 {offsets = [0, 0], sizes = [8, 128], strides = [1, 1]} : vector<8x512xf32> to vector<8x128xf32>
    %cst_142 = arith.constant 5.000000e-01 : f32
    %256 = vector.broadcast %cst_142 : f32 to vector<8x128xf32>
    %257 = arith.mulf %256, %255 : vector<8x128xf32>
    %258 = math.tanh %257 : vector<8x128xf32>
    %cst_143 = arith.constant 5.000000e-01 : f32
    %259 = vector.broadcast %cst_143 : f32 to vector<8x128xf32>
    %260 = arith.mulf %259, %258 : vector<8x128xf32>
    %cst_144 = arith.constant 5.000000e-01 : f32
    %261 = vector.broadcast %cst_144 : f32 to vector<8x128xf32>
    %262 = arith.addf %260, %261 : vector<8x128xf32>
    %263 = vector.extract_strided_slice %254 {offsets = [0, 128], sizes = [8, 128], strides = [1, 1]} : vector<8x512xf32> to vector<8x128xf32>
    %cst_145 = arith.constant 5.000000e-01 : f32
    %264 = vector.broadcast %cst_145 : f32 to vector<8x128xf32>
    %265 = arith.mulf %264, %263 : vector<8x128xf32>
    %266 = math.tanh %265 : vector<8x128xf32>
    %cst_146 = arith.constant 5.000000e-01 : f32
    %267 = vector.broadcast %cst_146 : f32 to vector<8x128xf32>
    %268 = arith.mulf %267, %266 : vector<8x128xf32>
    %cst_147 = arith.constant 5.000000e-01 : f32
    %269 = vector.broadcast %cst_147 : f32 to vector<8x128xf32>
    %270 = arith.addf %268, %269 : vector<8x128xf32>
    %271 = vector.extract_strided_slice %254 {offsets = [0, 256], sizes = [8, 128], strides = [1, 1]} : vector<8x512xf32> to vector<8x128xf32>
    %272 = math.tanh %271 : vector<8x128xf32>
    %273 = vector.extract_strided_slice %254 {offsets = [0, 384], sizes = [8, 128], strides = [1, 1]} : vector<8x512xf32> to vector<8x128xf32>
    %cst_148 = arith.constant 5.000000e-01 : f32
    %274 = vector.broadcast %cst_148 : f32 to vector<8x128xf32>
    %275 = arith.mulf %274, %273 : vector<8x128xf32>
    %276 = math.tanh %275 : vector<8x128xf32>
    %cst_149 = arith.constant 5.000000e-01 : f32
    %277 = vector.broadcast %cst_149 : f32 to vector<8x128xf32>
    %278 = arith.mulf %277, %276 : vector<8x128xf32>
    %cst_150 = arith.constant 5.000000e-01 : f32
    %279 = vector.broadcast %cst_150 : f32 to vector<8x128xf32>
    %280 = arith.addf %278, %279 : vector<8x128xf32>
    %281 = arith.mulf %270, %246 : vector<8x128xf32>
    %282 = arith.mulf %262, %272 : vector<8x128xf32>
    %283 = arith.addf %281, %282 : vector<8x128xf32>
    %284 = math.tanh %283 : vector<8x128xf32>
    %285 = arith.mulf %280, %284 : vector<8x128xf32>
    %c5_i32_151 = arith.constant 5 : i32
    %286 = arith.index_cast %c5_i32_151 : i32 to index
    %c0_152 = arith.constant 0 : index
    %c0_153 = arith.constant 0 : index
    %287 = vector.load %arg7[%286, %c0_152, %c0_153] : memref<8x8x512xf32, #tpu.memory_space<vmem>>, vector<1x8x512xf32>
    %288 = vector.shape_cast %287 : vector<1x8x512xf32> to vector<8x512xf32>
    %c0_154 = arith.constant 0 : index
    %c0_155 = arith.constant 0 : index
    %289 = vector.load %arg4[%c0_154, %c0_155] : memref<128x512xf32, #tpu.memory_space<vmem>>, vector<128x512xf32>
    %cst_156 = arith.constant dense<0.000000e+00> : vector<8x512xf32>
    %290 = tpu.matmul %285, %289, %cst_156 {dimension_numbers = #tpu.dot_dimension_numbers<[1], [0], [0], [1], [0, 0, 1, 1], [], []>} : vector<8x128xf32>, vector<128x512xf32>, vector<8x512xf32> -> vector<8x512xf32>
    %291 = arith.addf %288, %290 : vector<8x512xf32>
    %292 = vector.extract_strided_slice %291 {offsets = [0, 0], sizes = [8, 128], strides = [1, 1]} : vector<8x512xf32> to vector<8x128xf32>
    %cst_157 = arith.constant 5.000000e-01 : f32
    %293 = vector.broadcast %cst_157 : f32 to vector<8x128xf32>
    %294 = arith.mulf %293, %292 : vector<8x128xf32>
    %295 = math.tanh %294 : vector<8x128xf32>
    %cst_158 = arith.constant 5.000000e-01 : f32
    %296 = vector.broadcast %cst_158 : f32 to vector<8x128xf32>
    %297 = arith.mulf %296, %295 : vector<8x128xf32>
    %cst_159 = arith.constant 5.000000e-01 : f32
    %298 = vector.broadcast %cst_159 : f32 to vector<8x128xf32>
    %299 = arith.addf %297, %298 : vector<8x128xf32>
    %300 = vector.extract_strided_slice %291 {offsets = [0, 128], sizes = [8, 128], strides = [1, 1]} : vector<8x512xf32> to vector<8x128xf32>
    %cst_160 = arith.constant 5.000000e-01 : f32
    %301 = vector.broadcast %cst_160 : f32 to vector<8x128xf32>
    %302 = arith.mulf %301, %300 : vector<8x128xf32>
    %303 = math.tanh %302 : vector<8x128xf32>
    %cst_161 = arith.constant 5.000000e-01 : f32
    %304 = vector.broadcast %cst_161 : f32 to vector<8x128xf32>
    %305 = arith.mulf %304, %303 : vector<8x128xf32>
    %cst_162 = arith.constant 5.000000e-01 : f32
    %306 = vector.broadcast %cst_162 : f32 to vector<8x128xf32>
    %307 = arith.addf %305, %306 : vector<8x128xf32>
    %308 = vector.extract_strided_slice %291 {offsets = [0, 256], sizes = [8, 128], strides = [1, 1]} : vector<8x512xf32> to vector<8x128xf32>
    %309 = math.tanh %308 : vector<8x128xf32>
    %310 = vector.extract_strided_slice %291 {offsets = [0, 384], sizes = [8, 128], strides = [1, 1]} : vector<8x512xf32> to vector<8x128xf32>
    %cst_163 = arith.constant 5.000000e-01 : f32
    %311 = vector.broadcast %cst_163 : f32 to vector<8x128xf32>
    %312 = arith.mulf %311, %310 : vector<8x128xf32>
    %313 = math.tanh %312 : vector<8x128xf32>
    %cst_164 = arith.constant 5.000000e-01 : f32
    %314 = vector.broadcast %cst_164 : f32 to vector<8x128xf32>
    %315 = arith.mulf %314, %313 : vector<8x128xf32>
    %cst_165 = arith.constant 5.000000e-01 : f32
    %316 = vector.broadcast %cst_165 : f32 to vector<8x128xf32>
    %317 = arith.addf %315, %316 : vector<8x128xf32>
    %318 = arith.mulf %307, %283 : vector<8x128xf32>
    %319 = arith.mulf %299, %309 : vector<8x128xf32>
    %320 = arith.addf %318, %319 : vector<8x128xf32>
    %321 = math.tanh %320 : vector<8x128xf32>
    %322 = arith.mulf %317, %321 : vector<8x128xf32>
    %c6_i32_166 = arith.constant 6 : i32
    %323 = arith.index_cast %c6_i32_166 : i32 to index
    %c0_167 = arith.constant 0 : index
    %c0_168 = arith.constant 0 : index
    %324 = vector.load %arg7[%323, %c0_167, %c0_168] : memref<8x8x512xf32, #tpu.memory_space<vmem>>, vector<1x8x512xf32>
    %325 = vector.shape_cast %324 : vector<1x8x512xf32> to vector<8x512xf32>
    %c0_169 = arith.constant 0 : index
    %c0_170 = arith.constant 0 : index
    %326 = vector.load %arg4[%c0_169, %c0_170] : memref<128x512xf32, #tpu.memory_space<vmem>>, vector<128x512xf32>
    %cst_171 = arith.constant dense<0.000000e+00> : vector<8x512xf32>
    %327 = tpu.matmul %322, %326, %cst_171 {dimension_numbers = #tpu.dot_dimension_numbers<[1], [0], [0], [1], [0, 0, 1, 1], [], []>} : vector<8x128xf32>, vector<128x512xf32>, vector<8x512xf32> -> vector<8x512xf32>
    %328 = arith.addf %325, %327 : vector<8x512xf32>
    %329 = vector.extract_strided_slice %328 {offsets = [0, 0], sizes = [8, 128], strides = [1, 1]} : vector<8x512xf32> to vector<8x128xf32>
    %cst_172 = arith.constant 5.000000e-01 : f32
    %330 = vector.broadcast %cst_172 : f32 to vector<8x128xf32>
    %331 = arith.mulf %330, %329 : vector<8x128xf32>
    %332 = math.tanh %331 : vector<8x128xf32>
    %cst_173 = arith.constant 5.000000e-01 : f32
    %333 = vector.broadcast %cst_173 : f32 to vector<8x128xf32>
    %334 = arith.mulf %333, %332 : vector<8x128xf32>
    %cst_174 = arith.constant 5.000000e-01 : f32
    %335 = vector.broadcast %cst_174 : f32 to vector<8x128xf32>
    %336 = arith.addf %334, %335 : vector<8x128xf32>
    %337 = vector.extract_strided_slice %328 {offsets = [0, 128], sizes = [8, 128], strides = [1, 1]} : vector<8x512xf32> to vector<8x128xf32>
    %cst_175 = arith.constant 5.000000e-01 : f32
    %338 = vector.broadcast %cst_175 : f32 to vector<8x128xf32>
    %339 = arith.mulf %338, %337 : vector<8x128xf32>
    %340 = math.tanh %339 : vector<8x128xf32>
    %cst_176 = arith.constant 5.000000e-01 : f32
    %341 = vector.broadcast %cst_176 : f32 to vector<8x128xf32>
    %342 = arith.mulf %341, %340 : vector<8x128xf32>
    %cst_177 = arith.constant 5.000000e-01 : f32
    %343 = vector.broadcast %cst_177 : f32 to vector<8x128xf32>
    %344 = arith.addf %342, %343 : vector<8x128xf32>
    %345 = vector.extract_strided_slice %328 {offsets = [0, 256], sizes = [8, 128], strides = [1, 1]} : vector<8x512xf32> to vector<8x128xf32>
    %346 = math.tanh %345 : vector<8x128xf32>
    %347 = vector.extract_strided_slice %328 {offsets = [0, 384], sizes = [8, 128], strides = [1, 1]} : vector<8x512xf32> to vector<8x128xf32>
    %cst_178 = arith.constant 5.000000e-01 : f32
    %348 = vector.broadcast %cst_178 : f32 to vector<8x128xf32>
    %349 = arith.mulf %348, %347 : vector<8x128xf32>
    %350 = math.tanh %349 : vector<8x128xf32>
    %cst_179 = arith.constant 5.000000e-01 : f32
    %351 = vector.broadcast %cst_179 : f32 to vector<8x128xf32>
    %352 = arith.mulf %351, %350 : vector<8x128xf32>
    %cst_180 = arith.constant 5.000000e-01 : f32
    %353 = vector.broadcast %cst_180 : f32 to vector<8x128xf32>
    %354 = arith.addf %352, %353 : vector<8x128xf32>
    %355 = arith.mulf %344, %320 : vector<8x128xf32>
    %356 = arith.mulf %336, %346 : vector<8x128xf32>
    %357 = arith.addf %355, %356 : vector<8x128xf32>
    %358 = math.tanh %357 : vector<8x128xf32>
    %359 = arith.mulf %354, %358 : vector<8x128xf32>
    %c7_i32_181 = arith.constant 7 : i32
    %360 = arith.index_cast %c7_i32_181 : i32 to index
    %c0_182 = arith.constant 0 : index
    %c0_183 = arith.constant 0 : index
    %361 = vector.load %arg7[%360, %c0_182, %c0_183] : memref<8x8x512xf32, #tpu.memory_space<vmem>>, vector<1x8x512xf32>
    %362 = vector.shape_cast %361 : vector<1x8x512xf32> to vector<8x512xf32>
    %c0_184 = arith.constant 0 : index
    %c0_185 = arith.constant 0 : index
    %363 = vector.load %arg4[%c0_184, %c0_185] : memref<128x512xf32, #tpu.memory_space<vmem>>, vector<128x512xf32>
    %cst_186 = arith.constant dense<0.000000e+00> : vector<8x512xf32>
    %364 = tpu.matmul %359, %363, %cst_186 {dimension_numbers = #tpu.dot_dimension_numbers<[1], [0], [0], [1], [0, 0, 1, 1], [], []>} : vector<8x128xf32>, vector<128x512xf32>, vector<8x512xf32> -> vector<8x512xf32>
    %365 = arith.addf %362, %364 : vector<8x512xf32>
    %366 = vector.extract_strided_slice %365 {offsets = [0, 0], sizes = [8, 128], strides = [1, 1]} : vector<8x512xf32> to vector<8x128xf32>
    %cst_187 = arith.constant 5.000000e-01 : f32
    %367 = vector.broadcast %cst_187 : f32 to vector<8x128xf32>
    %368 = arith.mulf %367, %366 : vector<8x128xf32>
    %369 = math.tanh %368 : vector<8x128xf32>
    %cst_188 = arith.constant 5.000000e-01 : f32
    %370 = vector.broadcast %cst_188 : f32 to vector<8x128xf32>
    %371 = arith.mulf %370, %369 : vector<8x128xf32>
    %cst_189 = arith.constant 5.000000e-01 : f32
    %372 = vector.broadcast %cst_189 : f32 to vector<8x128xf32>
    %373 = arith.addf %371, %372 : vector<8x128xf32>
    %374 = vector.extract_strided_slice %365 {offsets = [0, 128], sizes = [8, 128], strides = [1, 1]} : vector<8x512xf32> to vector<8x128xf32>
    %cst_190 = arith.constant 5.000000e-01 : f32
    %375 = vector.broadcast %cst_190 : f32 to vector<8x128xf32>
    %376 = arith.mulf %375, %374 : vector<8x128xf32>
    %377 = math.tanh %376 : vector<8x128xf32>
    %cst_191 = arith.constant 5.000000e-01 : f32
    %378 = vector.broadcast %cst_191 : f32 to vector<8x128xf32>
    %379 = arith.mulf %378, %377 : vector<8x128xf32>
    %cst_192 = arith.constant 5.000000e-01 : f32
    %380 = vector.broadcast %cst_192 : f32 to vector<8x128xf32>
    %381 = arith.addf %379, %380 : vector<8x128xf32>
    %382 = vector.extract_strided_slice %365 {offsets = [0, 256], sizes = [8, 128], strides = [1, 1]} : vector<8x512xf32> to vector<8x128xf32>
    %383 = math.tanh %382 : vector<8x128xf32>
    %384 = vector.extract_strided_slice %365 {offsets = [0, 384], sizes = [8, 128], strides = [1, 1]} : vector<8x512xf32> to vector<8x128xf32>
    %cst_193 = arith.constant 5.000000e-01 : f32
    %385 = vector.broadcast %cst_193 : f32 to vector<8x128xf32>
    %386 = arith.mulf %385, %384 : vector<8x128xf32>
    %387 = math.tanh %386 : vector<8x128xf32>
    %cst_194 = arith.constant 5.000000e-01 : f32
    %388 = vector.broadcast %cst_194 : f32 to vector<8x128xf32>
    %389 = arith.mulf %388, %387 : vector<8x128xf32>
    %cst_195 = arith.constant 5.000000e-01 : f32
    %390 = vector.broadcast %cst_195 : f32 to vector<8x128xf32>
    %391 = arith.addf %389, %390 : vector<8x128xf32>
    %392 = arith.mulf %381, %357 : vector<8x128xf32>
    %393 = arith.mulf %373, %383 : vector<8x128xf32>
    %394 = arith.addf %392, %393 : vector<8x128xf32>
    %395 = math.tanh %394 : vector<8x128xf32>
    %396 = arith.mulf %391, %395 : vector<8x128xf32>
    %c8_i32_196 = arith.constant 8 : i32
    %c0_197 = arith.constant 0 : index
    %c0_198 = arith.constant 0 : index
    %397 = vector.load %arg8[%c0_197, %c0_198] : memref<8x128xf32, #tpu.memory_space<vmem>>, vector<8x128xf32>
    tpu.vector_store %arg8[%c0_197, %c0_198], %396 {strides = array<i32>} : memref<8x128xf32, #tpu.memory_space<vmem>>, vector<8x128xf32>,
    %c0_199 = arith.constant 0 : index
    %c0_200 = arith.constant 0 : index
    %398 = vector.load %arg9[%c0_199, %c0_200] : memref<8x128xf32, #tpu.memory_space<vmem>>, vector<8x128xf32>
    tpu.vector_store %arg9[%c0_199, %c0_200], %394 {strides = array<i32>} : memref<8x128xf32, #tpu.memory_space<vmem>>, vector<8x128xf32>,
    %c0_i32_201 = arith.constant 0 : i32
    %399 = arith.cmpi eq, %arg1, %c0_i32_201 : i32
    %400 = arith.extui %399 : i1 to i32
    %c0_i32_202 = arith.constant 0 : i32
    %401 = arith.cmpi ne, %400, %c0_i32_202 : i32
    scf.if %401 {
      %c0_203 = arith.constant 0 : index
      %c0_204 = arith.constant 0 : index
      %402 = vector.load %arg6[%c0_203, %c0_204] : memref<8x128xf32, #tpu.memory_space<vmem>>, vector<8x128xf32>
      tpu.vector_store %arg6[%c0_203, %c0_204], %396 {strides = array<i32>} : memref<8x128xf32, #tpu.memory_space<vmem>>, vector<8x128xf32>,
    } else {
    }
    return
  }
  func.func @transform_0(%arg0: i32, %arg1: i32) -> (i32, i32, i32) {
    %c0_i32 = arith.constant 0 : i32
    %c0_i32_0 = arith.constant 0 : i32
    return %arg1, %arg0, %c0_i32 : i32, i32, i32
  }
  func.func @transform_1(%arg0: i32, %arg1: i32) -> (i32, i32) {
    %c0_i32 = arith.constant 0 : i32
    %c0_i32_0 = arith.constant 0 : i32
    %c0_i32_1 = arith.constant 0 : i32
    return %c0_i32, %c0_i32_0 : i32, i32
  }
  func.func @transform_2(%arg0: i32, %arg1: i32) -> (i32, i32) {
    %c0_i32 = arith.constant 0 : i32
    %c0_i32_0 = arith.constant 0 : i32
    %c0_i32_1 = arith.constant 0 : i32
    return %c0_i32, %c0_i32_0 : i32, i32
  }
  func.func @transform_3(%arg0: i32, %arg1: i32) -> (i32, i32) {
    %c0_i32 = arith.constant 0 : i32
    %c0_i32_0 = arith.constant 0 : i32
    %c0_i32_1 = arith.constant 0 : i32
    return %c0_i32, %c0_i32_0 : i32, i32
  }
  func.func @transform_4(%arg0: i32, %arg1: i32) -> (i32, i32) {
    %c0_i32 = arith.constant 0 : i32
    %c0_i32_0 = arith.constant 0 : i32
    return %arg0, %c0_i32 : i32, i32
  }
}

</mosaic_0001>

<bundles_post_ra>
// kernel: tpu_custom_call.1
= control target key start
LH: loop header
LB: loop body
LE: loop exit
PB: predicated region body
PF: predicated region fallthrough
CT: control target
= control target key end

     0   :  { %9 = vsyncpa [#allocation6], 0  ;;  %s4509_s0 = inlined_call_operand.hbm [shape: f32[8,8,32], index: 0, kind: input, shape index: {}]   ;;  %s4510_s1 = inlined_call_operand.hbm [shape: f32[32,512], index: 1, kind: input, shape index: {}]   ;;  %s4511_s2 = inlined_call_operand.hbm [shape: f32[128,512], index: 2, kind: input, shape index: {}]   ;;  %s4512_s3 = inlined_call_operand.vmem [shape: f32[1,512], index: 3, kind: input, shape index: {}]   ;;  %s4513_s4 = inlined_call_operand.hbm [shape: f32[8,128], index: 4, kind: output, shape index: {}]  }
   0x1   :  { %10 = vsyncpa [#allocation9], 0 }
   0x2   :  { %11 = vsyncpa [#allocation7], 0  ;;  %s3274_s15 = smov [#allocation8]  }
   0x3   :  { %s29_s16 = sshll.u32 %s3274_s15, 4  ;;  %s30_s16 = int_to_ptr.vmem [resolvable:$true] %s29_s16 }
   0x4   :  { %s3196_s17 = scalar_lea.vmem %s30_s16, 2048  ;;  %p3201_p1 = scmp.lt.s32.totalorder %s30_s16, %s30_s16 }
   0x5   :  { %p3197_p0 = scmp.ne.s32.totalorder %s30_s16, %s3196_s17  ;;  %p3202_p2 = scmp.lt.s32.totalorder %s3196_s17, %s3196_s17 }
   0x7   :  { %p3203_p3 = por %p3202_p2, %p3201_p1 }
   0x9   :  { %p3204_p4 = pnand %p3203_p3, %p3197_p0 }
   0xb   :  { %3207 = shalt.err (!%p3204_p4)
}
   0xc   :  { %s3275_s18 = smov 512   ;;  %s3276_s19 = smov 32  }
   0xd   :  { %35 = dma.hbm_to_vmem [thread:$0]  %s4510_s1, 2048, %s30_s16, [#allocation9], %s3275_s18, %s3275_s18, %s3276_s19  }
   0xe   :  { %s3277_s22 = smov [#allocation5]  }
   0xf   :  { %s17_s23 = sshll.u32 %s3277_s22, 4  ;;  %s18_s23 = int_to_ptr.vmem [resolvable:$true] %s17_s23 }
  0x10   :  { %s3216_s24 = scalar_lea.vmem %s18_s23, 1024  ;;  %p3221_p6 = scmp.lt.s32.totalorder %s18_s23, %s18_s23 }
  0x11   :  { %p3217_p5 = scmp.ne.s32.totalorder %s18_s23, %s3216_s24  ;;  %p3222_p7 = scmp.lt.s32.totalorder %s3216_s24, %s3216_s24 }
  0x13   :  { %p3223_p8 = por %p3222_p7, %p3221_p6 }
  0x15   :  { %p3224_p9 = pnand %p3223_p8, %p3217_p5 }
  0x17   :  { %3227 = shalt.err (!%p3224_p9)
}
  0x18   :  { %s3278_s25 = smov 128   ;;  %s3279_s26 = smov 8  }
  0x19   :  { %23 = dma.hbm_to_vmem [thread:$0]  %s4509_s0, 1024, %s18_s23, [#allocation6], %s3278_s25, %s3278_s25, %s3279_s26  }
  0x1a   :  { %s3280_s29 = smov [#allocation10]  }
  0x1b   :  { %s41_s30 = sshll.u32 %s3280_s29, 4  ;;  %s42_s30 = int_to_ptr.vmem [resolvable:$true] %s41_s30 }
  0x1c   :  { %s3236_s1 = scalar_lea.vmem %s42_s30, 8192  ;;  %p3241_p11 = scmp.lt.s32.totalorder %s42_s30, %s42_s30 }
  0x1d   :  { %p3237_p10 = scmp.ne.s32.totalorder %s42_s30, %s3236_s1  ;;  %p3242_p12 = scmp.lt.s32.totalorder %s3236_s1, %s3236_s1 }
  0x1f   :  { %p3243_p13 = por %p3242_p12, %p3241_p11 }
  0x21   :  { %p3244_p0 = pnand %p3243_p13, %p3237_p10 }
  0x23   :  { %3247 = shalt.err (!%p3244_p0)
}
  0x24   :  { %47 = dma.hbm_to_vmem [thread:$0]  %s4511_s2, 8192, %s42_s30, [#allocation9], %s3275_s18, %s3275_s18, %s3276_s19  }
  0x25   :  { %3268 = dma.done.wait [#allocation6], 1024  }
  0x26   :  { %3269 = vsyncadd [#allocation6], 4294966272 }
  0x27   :  { %3270 = dma.done.wait [#allocation9], 10240  }
  0x28   :  { %3271 = vsyncadd [#allocation9], 4294957056  ;;  %v4514_v0 = vmov 0.0   ;;  %v3319_v1 = vld [vmem:[#allocation8 + $0x68] sm:$0xff]  ;;  %v3321_v2 = vld [vmem:[#allocation8 + $0x78] sm:$0xff]  ;;  %vm104_vm0 = vcmask 261120  }
  0x29   :  { %172 = vmatprep.mubr.f32.mxu0 %v4514_v0  ;;  %243 = vmatprep.mubr.f32.mxu1 %v4514_v0  ;;  %v3323_v3 = vld [vmem:[#allocation8 + $0x60] sm:$0xff]  ;;  %v3327_v4 = vld [vmem:[#allocation8 + $0x70] sm:$0xff]  ;;  %v3329_v5 = vld [vmem:[#allocation8 + $0x48] sm:$0xff] }
  0x2a   :  { %132 = vmatprep.subr.mxu0 %v3319_v1  ;;  %203 = vmatprep.subr.mxu1 %v3321_v2  ;;  %v3331_v6 = vld [vmem:[#allocation8 + $0x58] sm:$0xff]  ;;  %v3335_v7 = vld [vmem:[#allocation8 + $0x40] sm:$0xff]  ;;  %v3337_v8 = vld [vmem:[#allocation8 + $0x50] sm:$0xff] }
  0x2b   :  { %133 = vmatpush1.msra.mxu0 %v3323_v3  ;;  %204 = vmatpush1.msra.mxu1 %v3327_v4  ;;  %v3339_v9 = vld [vmem:[#allocation8 + $0x28] sm:$0xff]  ;;  %v3343_v10 = vld [vmem:[#allocation8 + $0x38] sm:$0xff]  ;;  %v3345_v11 = vld [vmem:[#allocation8 + $0x20] sm:$0xff] }
  0x2c   :  { %134 = vmatprep.subr.mxu0 %v3329_v5  ;;  %205 = vmatprep.subr.mxu1 %v3331_v6  ;;  %v3347_v12 = vld [vmem:[#allocation8 + $0x30] sm:$0xff]  ;;  %v3351_v13 = vld [vmem:[#allocation8 + $0x8] sm:$0xff]  ;;  %v3353_v14 = vld [vmem:[#allocation8 + $0x18] sm:$0xff] }
  0x2d   :  { %135 = vmatpush1.msra.mxu0 %v3335_v7  ;;  %206 = vmatpush1.msra.mxu1 %v3337_v8  ;;  %v3357_v15 = vld [vmem:[#allocation8] sm:$0xff]  ;;  %v3359_v16 = vld [vmem:[#allocation8 + $0x10] sm:$0xff]  ;;  %v255_v18 = vld [vmem:[#allocation5 + $0x8] sm:$0xff] }
  0x2e   :  { %136 = vmatprep.subr.mxu0 %v3339_v9  ;;  %207 = vmatprep.subr.mxu1 %v3343_v10  ;;  %v65_v17 = vld [vmem:[#allocation5] sm:$0xff]  ;;  %v445_v19 = vld [vmem:[#allocation5 + $0x10] sm:$0xff]  ;;  %v635_v20 = vld [vmem:[#allocation5 + $0x18] sm:$0xff] }
  0x2f   :  { %137 = vmatpush1.msra.mxu0 %v3345_v11  ;;  %208 = vmatpush1.msra.mxu1 %v3347_v12  ;;  %v825_v21 = vld [vmem:[#allocation5 + $0x20] sm:$0xff]  ;;  %v1015_v22 = vld [vmem:[#allocation5 + $0x28] sm:$0xff]  ;;  %v1205_v23 = vld [vmem:[#allocation5 + $0x30] sm:$0xff] }
  0x30   :  { %138 = vmatprep.subr.mxu0 %v3351_v13  ;;  %209 = vmatprep.subr.mxu1 %v3353_v14  ;;  %v1395_v24 = vld [vmem:[#allocation5 + $0x38] sm:$0xff]  ;;  %v3503_v25 = vld [vmem:[#allocation10 + $0x1e8] sm:$0xff]  ;;  %v3511_v27 = vld [vmem:[#allocation10 + $0x1e0] sm:$0xff] }
  0x31   :  { %139 = vmatpush1.msra.mxu0 %v3357_v15  ;;  %210 = vmatpush1.msra.mxu1 %v3359_v16  ;;  %4630 = vst [vmem:[#allocation15_spill] sm:$0xff] %v3503_v25  ;;  %v3507_v26 = vld [vmem:[#allocation10 + $0x1f8] sm:$0xff]  ;;  %v3513_v28 = vld [vmem:[#allocation10 + $0x1f0] sm:$0xff]  ;;  %v3517_v29 = vld [vmem:[#allocation10 + $0x1c8] sm:$0xff] }
  0x32   :  { %3016 = vmatmul.mubr.msk.f32.vlgmr.msra.gmra.mxu0 %vm104_vm0, %v65_v17  ;;  %321 = vmatprep.subr.mxu0 %v3319_v1  ;;  %4631 = vst [vmem:[#allocation16_spill] sm:$0xff] %v3507_v26  ;;  %v3519_v30 = vld [vmem:[#allocation10 + $0x1d8] sm:$0xff]  ;;  %v3523_v31 = vld [vmem:[#allocation10 + $0x1c0] sm:$0xff]  ;;  %v3525_v32 = vld [vmem:[#allocation10 + $0x1d0] sm:$0xff] }
  0x33   :  { %392 = vmatprep.subr.mxu1 %v3321_v2  ;;  %3017 = vmatmul.mubr.msk.f32.vlgmr.msra.gmra.mxu1 %vm104_vm0, %v65_v17  ;;  %v3529_v33 = vld [vmem:[#allocation10 + $0x1a8] sm:$0xff]  ;;  %v3531_v34 = vld [vmem:[#allocation10 + $0x1b8] sm:$0xff]  ;;  %v3535_v35 = vld [vmem:[#allocation10 + $0x1a0] sm:$0xff] }
  0x34   :  { %322 = vmatpush1.msra.mxu0 %v3323_v3  ;;  %393 = vmatpush1.msra.mxu1 %v3327_v4  ;;  %v3537_v36 = vld [vmem:[#allocation10 + $0x1b0] sm:$0xff]  ;;  %v3541_v37 = vld [vmem:[#allocation10 + $0x188] sm:$0xff]  ;;  %v3543_v38 = vld [vmem:[#allocation10 + $0x198] sm:$0xff] }
  0x35   :  { %323 = vmatprep.subr.mxu0 %v3329_v5  ;;  %394 = vmatprep.subr.mxu1 %v3331_v6  ;;  %v3547_v39 = vld [vmem:[#allocation10 + $0x180] sm:$0xff]  ;;  %v3549_v40 = vld [vmem:[#allocation10 + $0x190] sm:$0xff]  ;;  %v3553_v41 = vld [vmem:[#allocation10 + $0x168] sm:$0xff] }
  0x36   :  { %324 = vmatpush1.msra.mxu0 %v3335_v7  ;;  %395 = vmatpush1.msra.mxu1 %v3337_v8  ;;  %v3555_v42 = vld [vmem:[#allocation10 + $0x178] sm:$0xff]  ;;  %v3559_v43 = vld [vmem:[#allocation10 + $0x160] sm:$0xff]  ;;  %v3561_v44 = vld [vmem:[#allocation10 + $0x170] sm:$0xff] }
  0x37   :  { %325 = vmatprep.subr.mxu0 %v3339_v9  ;;  %396 = vmatprep.subr.mxu1 %v3343_v10  ;;  %v3565_v45 = vld [vmem:[#allocation10 + $0x148] sm:$0xff]  ;;  %v3567_v46 = vld [vmem:[#allocation10 + $0x158] sm:$0xff]  ;;  %v3571_v47 = vld [vmem:[#allocation10 + $0x140] sm:$0xff] }
  0x38   :  { %326 = vmatpush1.msra.mxu0 %v3345_v11  ;;  %397 = vmatpush1.msra.mxu1 %v3347_v12  ;;  %v3573_v48 = vld [vmem:[#allocation10 + $0x150] sm:$0xff]  ;;  %v3577_v49 = vld [vmem:[#allocation10 + $0x128] sm:$0xff]  ;;  %v3579_v50 = vld [vmem:[#allocation10 + $0x138] sm:$0xff] }
  0x39   :  { %327 = vmatprep.subr.mxu0 %v3351_v13  ;;  %398 = vmatprep.subr.mxu1 %v3353_v14  ;;  %v3583_v51 = vld [vmem:[#allocation10 + $0x120] sm:$0xff]  ;;  %v3585_v52 = vld [vmem:[#allocation10 + $0x130] sm:$0xff]  ;;  %v3589_v53 = vld [vmem:[#allocation10 + $0x108] sm:$0xff] }
  0x3a   :  { %328 = vmatpush1.msra.mxu0 %v3357_v15  ;;  %361 = vmatprep.mubr.f32.mxu0 %v4514_v0  ;;  %v3591_v54 = vld [vmem:[#allocation10 + $0x118] sm:$0xff]  ;;  %v3595_v55 = vld [vmem:[#allocation10 + $0x100] sm:$0xff]  ;;  %v3597_v56 = vld [vmem:[#allocation10 + $0x110] sm:$0xff] }
  0x3b   :  { %399 = vmatpush1.msra.mxu1 %v3359_v16  ;;  %3018 = vmatmul.mubr.msk.f32.vlgmr.msra.gmra.mxu0 %vm104_vm0, %v255_v18  ;;  %v3601_v57 = vld [vmem:[#allocation10 + $0xe8] sm:$0xff]  ;;  %v3603_v58 = vld [vmem:[#allocation10 + $0xf8] sm:$0xff]  ;;  %v3607_v59 = vld [vmem:[#allocation10 + $0xe0] sm:$0xff] }
  0x3c   :  { %432 = vmatprep.mubr.f32.mxu1 %v4514_v0  ;;  %511 = vmatprep.subr.mxu0 %v3319_v1  ;;  %v3609_v60 = vld [vmem:[#allocation10 + $0xf0] sm:$0xff]  ;;  %v3613_v61 = vld [vmem:[#allocation10 + $0xc8] sm:$0xff]  ;;  %v3615_v62 = vld [vmem:[#allocation10 + $0xd8] sm:$0xff] }
  0x3d   :  { %582 = vmatprep.subr.mxu1 %v3321_v2  ;;  %3019 = vmatmul.mubr.msk.f32.vlgmr.msra.gmra.mxu1 %vm104_vm0, %v255_v18  ;;  %v3619_v63 = vld [vmem:[#allocation10 + $0xc0] sm:$0xff]  ;;  %v3669_v17 = vld [vmem:[#allocation10 + $0x50] sm:$0xff]  ;;  %v3673_v18 = vld [vmem:[#allocation10 + $0x28] sm:$0xff] }
  0x3e   :  { %512 = vmatpush1.msra.mxu0 %v3323_v3  ;;  %583 = vmatpush1.msra.mxu1 %v3327_v4  ;;  %4645 = vst [vmem:[#allocation30_spill] sm:$0xff] %v3669_v17  ;;  %4646 = vst [vmem:[#allocation31_spill] sm:$0xff] %v3673_v18 }
  0x3f   :  { %513 = vmatprep.subr.mxu0 %v3329_v5  ;;  %584 = vmatprep.subr.mxu1 %v3331_v6 }
  0x40   :  { %514 = vmatpush1.msra.mxu0 %v3335_v7  ;;  %585 = vmatpush1.msra.mxu1 %v3337_v8 }
  0x41   :  { %515 = vmatprep.subr.mxu0 %v3339_v9  ;;  %586 = vmatprep.subr.mxu1 %v3343_v10 }
  0x42   :  { %516 = vmatpush1.msra.mxu0 %v3345_v11  ;;  %587 = vmatpush1.msra.mxu1 %v3347_v12 }
  0x43   :  { %517 = vmatprep.subr.mxu0 %v3351_v13  ;;  %588 = vmatprep.subr.mxu1 %v3353_v14 }
  0x44   :  { %518 = vmatpush1.msra.mxu0 %v3357_v15  ;;  %551 = vmatprep.mubr.f32.mxu0 %v4514_v0 }
  0x45   :  { %589 = vmatpush1.msra.mxu1 %v3359_v16  ;;  %3020 = vmatmul.mubr.msk.f32.vlgmr.msra.gmra.mxu0 %vm104_vm0, %v445_v19 }
  0x46   :  { %622 = vmatprep.mubr.f32.mxu1 %v4514_v0  ;;  %701 = vmatprep.subr.mxu0 %v3319_v1 }
  0x47   :  { %772 = vmatprep.subr.mxu1 %v3321_v2  ;;  %3021 = vmatmul.mubr.msk.f32.vlgmr.msra.gmra.mxu1 %vm104_vm0, %v445_v19  ;;  %v3675_v19 = vld [vmem:[#allocation10 + $0x38] sm:$0xff] }
  0x48   :  { %702 = vmatpush1.msra.mxu0 %v3323_v3  ;;  %773 = vmatpush1.msra.mxu1 %v3327_v4  ;;  %4647 = vst [vmem:[#allocation32_spill] sm:$0xff] %v3675_v19 }
  0x49   :  { %703 = vmatprep.subr.mxu0 %v3329_v5  ;;  %774 = vmatprep.subr.mxu1 %v3331_v6 }
  0x4a   :  { %704 = vmatpush1.msra.mxu0 %v3335_v7  ;;  %775 = vmatpush1.msra.mxu1 %v3337_v8 }
  0x4b   :  { %705 = vmatprep.subr.mxu0 %v3339_v9  ;;  %776 = vmatprep.subr.mxu1 %v3343_v10 }
  0x4c   :  { %706 = vmatpush1.msra.mxu0 %v3345_v11  ;;  %777 = vmatpush1.msra.mxu1 %v3347_v12 }
  0x4d   :  { %707 = vmatprep.subr.mxu0 %v3351_v13  ;;  %778 = vmatprep.subr.mxu1 %v3353_v14 }
  0x4e   :  { %708 = vmatpush1.msra.mxu0 %v3357_v15  ;;  %741 = vmatprep.mubr.f32.mxu0 %v4514_v0 }
  0x4f   :  { %779 = vmatpush1.msra.mxu1 %v3359_v16  ;;  %3022 = vmatmul.mubr.msk.f32.vlgmr.msra.gmra.mxu0 %vm104_vm0, %v635_v20 }
  0x50   :  { %812 = vmatprep.mubr.f32.mxu1 %v4514_v0  ;;  %891 = vmatprep.subr.mxu0 %v3319_v1 }
  0x51   :  { %962 = vmatprep.subr.mxu1 %v3321_v2  ;;  %3023 = vmatmul.mubr.msk.f32.vlgmr.msra.gmra.mxu1 %vm104_vm0, %v635_v20  ;;  %v3679_v20 = vld [vmem:[#allocation10 + $0x20] sm:$0xff] }
  0x52   :  { %892 = vmatpush1.msra.mxu0 %v3323_v3  ;;  %963 = vmatpush1.msra.mxu1 %v3327_v4  ;;  %4648 = vst [vmem:[#allocation33_spill] sm:$0xff] %v3679_v20 }
  0x53   :  { %893 = vmatprep.subr.mxu0 %v3329_v5  ;;  %964 = vmatprep.subr.mxu1 %v3331_v6 }
  0x54   :  { %894 = vmatpush1.msra.mxu0 %v3335_v7  ;;  %965 = vmatpush1.msra.mxu1 %v3337_v8 }
  0x55   :  { %895 = vmatprep.subr.mxu0 %v3339_v9  ;;  %966 = vmatprep.subr.mxu1 %v3343_v10 }
  0x56   :  { %896 = vmatpush1.msra.mxu0 %v3345_v11  ;;  %967 = vmatpush1.msra.mxu1 %v3347_v12 }
  0x57   :  { %897 = vmatprep.subr.mxu0 %v3351_v13  ;;  %968 = vmatprep.subr.mxu1 %v3353_v14 }
  0x58   :  { %898 = vmatpush1.msra.mxu0 %v3357_v15  ;;  %931 = vmatprep.mubr.f32.mxu0 %v4514_v0 }
  0x59   :  { %969 = vmatpush1.msra.mxu1 %v3359_v16  ;;  %3024 = vmatmul.mubr.msk.f32.vlgmr.msra.gmra.mxu0 %vm104_vm0, %v825_v21 }
  0x5a   :  { %1002 = vmatprep.mubr.f32.mxu1 %v4514_v0  ;;  %1081 = vmatprep.subr.mxu0 %v3319_v1 }
  0x5b   :  { %1152 = vmatprep.subr.mxu1 %v3321_v2  ;;  %3025 = vmatmul.mubr.msk.f32.vlgmr.msra.gmra.mxu1 %vm104_vm0, %v825_v21  ;;  %v3681_v21 = vld [vmem:[#allocation10 + $0x30] sm:$0xff] }
  0x5c   :  { %1082 = vmatpush1.msra.mxu0 %v3323_v3  ;;  %1153 = vmatpush1.msra.mxu1 %v3327_v4  ;;  %4649 = vst [vmem:[#allocation34_spill] sm:$0xff] %v3681_v21 }
  0x5d   :  { %1083 = vmatprep.subr.mxu0 %v3329_v5  ;;  %1154 = vmatprep.subr.mxu1 %v3331_v6 }
  0x5e   :  { %1084 = vmatpush1.msra.mxu0 %v3335_v7  ;;  %1155 = vmatpush1.msra.mxu1 %v3337_v8 }
  0x5f   :  { %1085 = vmatprep.subr.mxu0 %v3339_v9  ;;  %1156 = vmatprep.subr.mxu1 %v3343_v10 }
  0x60   :  { %1086 = vmatpush1.msra.mxu0 %v3345_v11  ;;  %1157 = vmatpush1.msra.mxu1 %v3347_v12 }
  0x61   :  { %1087 = vmatprep.subr.mxu0 %v3351_v13  ;;  %1158 = vmatprep.subr.mxu1 %v3353_v14 }
  0x62   :  { %1088 = vmatpush1.msra.mxu0 %v3357_v15  ;;  %1121 = vmatprep.mubr.f32.mxu0 %v4514_v0 }
  0x63   :  { %1159 = vmatpush1.msra.mxu1 %v3359_v16  ;;  %3026 = vmatmul.mubr.msk.f32.vlgmr.msra.gmra.mxu0 %vm104_vm0, %v1015_v22 }
  0x64   :  { %1192 = vmatprep.mubr.f32.mxu1 %v4514_v0  ;;  %1271 = vmatprep.subr.mxu0 %v3319_v1 }
  0x65   :  { %1342 = vmatprep.subr.mxu1 %v3321_v2  ;;  %3027 = vmatmul.mubr.msk.f32.vlgmr.msra.gmra.mxu1 %vm104_vm0, %v1015_v22  ;;  %v3685_v22 = vld [vmem:[#allocation10 + $0x8] sm:$0xff] }
  0x66   :  { %1272 = vmatpush1.msra.mxu0 %v3323_v3  ;;  %1343 = vmatpush1.msra.mxu1 %v3327_v4  ;;  %4650 = vst [vmem:[#allocation35_spill] sm:$0xff] %v3685_v22 }
  0x67   :  { %1273 = vmatprep.subr.mxu0 %v3329_v5  ;;  %1344 = vmatprep.subr.mxu1 %v3331_v6 }
  0x68   :  { %1274 = vmatpush1.msra.mxu0 %v3335_v7  ;;  %1345 = vmatpush1.msra.mxu1 %v3337_v8 }
  0x69   :  { %1275 = vmatprep.subr.mxu0 %v3339_v9  ;;  %1346 = vmatprep.subr.mxu1 %v3343_v10 }
  0x6a   :  { %1276 = vmatpush1.msra.mxu0 %v3345_v11  ;;  %1347 = vmatpush1.msra.mxu1 %v3347_v12 }
  0x6b   :  { %1277 = vmatprep.subr.mxu0 %v3351_v13  ;;  %1348 = vmatprep.subr.mxu1 %v3353_v14 }
  0x6c   :  { %1278 = vmatpush1.msra.mxu0 %v3357_v15  ;;  %1311 = vmatprep.mubr.f32.mxu0 %v4514_v0 }
  0x6d   :  { %1349 = vmatpush1.msra.mxu1 %v3359_v16  ;;  %3028 = vmatmul.mubr.msk.f32.vlgmr.msra.gmra.mxu0 %vm104_vm0, %v1205_v23 }
  0x6e   :  { %1382 = vmatprep.mubr.f32.mxu1 %v4514_v0  ;;  %1461 = vmatprep.subr.mxu0 %v3319_v1  ;;  %v3621_v1 = vld [vmem:[#allocation10 + $0xd0] sm:$0xff] }
  0x6f   :  { %1532 = vmatprep.subr.mxu1 %v3321_v2  ;;  %3029 = vmatmul.mubr.msk.f32.vlgmr.msra.gmra.mxu1 %vm104_vm0, %v1205_v23  ;;  %v3625_v2 = vld [vmem:[#allocation10 + $0xa8] sm:$0xff]  ;;  %v3687_v23 = vld [vmem:[#allocation10 + $0x18] sm:$0xff] }
  0x70   :  { %1462 = vmatpush1.msra.mxu0 %v3323_v3  ;;  %1533 = vmatpush1.msra.mxu1 %v3327_v4  ;;  %v3627_v3 = vld [vmem:[#allocation10 + $0xb8] sm:$0xff]  ;;  %v3631_v4 = vld [vmem:[#allocation10 + $0xa0] sm:$0xff]  ;;  %4651 = vst [vmem:[#allocation36_spill] sm:$0xff] %v3687_v23 }
  0x71   :  { %1463 = vmatprep.subr.mxu0 %v3329_v5  ;;  %1534 = vmatprep.subr.mxu1 %v3331_v6  ;;  %4632 = vst [vmem:[#allocation17_spill] sm:$0xff] %v3631_v4  ;;  %v3633_v5 = vld [vmem:[#allocation10 + $0xb0] sm:$0xff]  ;;  %v3637_v6 = vld [vmem:[#allocation10 + $0x88] sm:$0xff] }
  0x72   :  { %1464 = vmatpush1.msra.mxu0 %v3335_v7  ;;  %1535 = vmatpush1.msra.mxu1 %v3337_v8  ;;  %4633 = vst [vmem:[#allocation18_spill] sm:$0xff] %v3633_v5  ;;  %4634 = vst [vmem:[#allocation19_spill] sm:$0xff] %v3637_v6  ;;  %v3639_v7 = vld [vmem:[#allocation10 + $0x98] sm:$0xff]  ;;  %v3643_v8 = vld [vmem:[#allocation10 + $0x80] sm:$0xff] }
  0x73   :  { %1465 = vmatprep.subr.mxu0 %v3339_v9  ;;  %1536 = vmatprep.subr.mxu1 %v3343_v10  ;;  %4635 = vst [vmem:[#allocation20_spill] sm:$0xff] %v3639_v7  ;;  %4636 = vst [vmem:[#allocation21_spill] sm:$0xff] %v3643_v8  ;;  %v3645_v9 = vld [vmem:[#allocation10 + $0x90] sm:$0xff]  ;;  %v3649_v10 = vld [vmem:[#allocation10 + $0x68] sm:$0xff] }
  0x74   :  { %1466 = vmatpush1.msra.mxu0 %v3345_v11  ;;  %1537 = vmatpush1.msra.mxu1 %v3347_v12  ;;  %4637 = vst [vmem:[#allocation22_spill] sm:$0xff] %v3645_v9  ;;  %4638 = vst [vmem:[#allocation23_spill] sm:$0xff] %v3649_v10  ;;  %v3651_v11 = vld [vmem:[#allocation10 + $0x78] sm:$0xff]  ;;  %v3655_v12 = vld [vmem:[#allocation10 + $0x60] sm:$0xff] }
  0x75   :  { %1467 = vmatprep.subr.mxu0 %v3351_v13  ;;  %1538 = vmatprep.subr.mxu1 %v3353_v14  ;;  %4639 = vst [vmem:[#allocation24_spill] sm:$0xff] %v3651_v11  ;;  %4640 = vst [vmem:[#allocation25_spill] sm:$0xff] %v3655_v12  ;;  %v3657_v13 = vld [vmem:[#allocation10 + $0x70] sm:$0xff]  ;;  %v3661_v14 = vld [vmem:[#allocation10 + $0x48] sm:$0xff] }
  0x76   :  { %1468 = vmatpush1.msra.mxu0 %v3357_v15  ;;  %1501 = vmatprep.mubr.f32.mxu0 %v4514_v0  ;;  %4641 = vst [vmem:[#allocation26_spill] sm:$0xff] %v3657_v13  ;;  %4642 = vst [vmem:[#allocation27_spill] sm:$0xff] %v3661_v14  ;;  %v3663_v15 = vld [vmem:[#allocation10 + $0x58] sm:$0xff] }
  0x77   :  { %1539 = vmatpush1.msra.mxu1 %v3359_v16  ;;  %3030 = vmatmul.mubr.msk.f32.vlgmr.msra.gmra.mxu0 %vm104_vm0, %v1395_v24  ;;  %4643 = vst [vmem:[#allocation28_spill] sm:$0xff] %v3663_v15  ;;  %v3667_v16 = vld [vmem:[#allocation10 + $0x40] sm:$0xff] }
  0x78   :  { %1572 = vmatprep.mubr.f32.mxu1 %v4514_v0  ;;  %1654 = vmatprep.subr.mxu0 %v3503_v25  ;;  %4644 = vst [vmem:[#allocation29_spill] sm:$0xff] %v3667_v16  ;;  %v3695_v0 = vld [vmem:[#allocation10 + $0x10] sm:$0xff] }
  0x79   :  { %1725 = vmatprep.subr.mxu1 %v3507_v26  ;;  %3031 = vmatmul.mubr.msk.f32.vlgmr.msra.gmra.mxu1 %vm104_vm0, %v1395_v24  ;;  %v3691_v24 = vld [vmem:[#allocation10] sm:$0xff]  ;;  %4653 = vst [vmem:[#allocation38_spill] sm:$0xff] %v3695_v0 }
  0x7a   :  { %1655 = vmatpush1.msra.mxu0 %v3511_v27  ;;  %1726 = vmatpush1.msra.mxu1 %v3513_v28  ;;  %4652 = vst [vmem:[#allocation37_spill] sm:$0xff] %v3691_v24 }
  0x7b   :  { %1656 = vmatprep.subr.mxu0 %v3517_v29  ;;  %1727 = vmatprep.subr.mxu1 %v3519_v30 }
  0x7c   :  { %1657 = vmatpush1.msra.mxu0 %v3523_v31  ;;  %1728 = vmatpush1.msra.mxu1 %v3525_v32 }
  0x7d   :  { %1658 = vmatprep.subr.mxu0 %v3529_v33  ;;  %1729 = vmatprep.subr.mxu1 %v3531_v34 }
  0x7e   :  { %1659 = vmatpush1.msra.mxu0 %v3535_v35  ;;  %1730 = vmatpush1.msra.mxu1 %v3537_v36 }
  0x7f   :  { %1660 = vmatprep.subr.mxu0 %v3541_v37  ;;  %1731 = vmatprep.subr.mxu1 %v3543_v38 }
  0x80   :  { %1661 = vmatpush1.msra.mxu0 %v3547_v39  ;;  %1732 = vmatpush1.msra.mxu1 %v3549_v40 }
  0x81   :  { %1662 = vmatprep.subr.mxu0 %v3553_v41  ;;  %1733 = vmatprep.subr.mxu1 %v3555_v42 }
  0x82   :  { %1663 = vmatpush1.msra.mxu0 %v3559_v43  ;;  %1734 = vmatpush1.msra.mxu1 %v3561_v44 }
  0x83   :  { %1664 = vmatprep.subr.mxu0 %v3565_v45  ;;  %1735 = vmatprep.subr.mxu1 %v3567_v46 }
  0x84   :  { %1665 = vmatpush1.msra.mxu0 %v3571_v47  ;;  %1736 = vmatpush1.msra.mxu1 %v3573_v48 }
  0x85   :  { %1666 = vmatprep.subr.mxu0 %v3577_v49  ;;  %1737 = vmatprep.subr.mxu1 %v3579_v50 }
  0x86   :  { %1667 = vmatpush1.msra.mxu0 %v3583_v51  ;;  %1738 = vmatpush1.msra.mxu1 %v3585_v52 }
  0x87   :  { %1668 = vmatprep.subr.mxu0 %v3589_v53  ;;  %1739 = vmatprep.subr.mxu1 %v3591_v54 }
  0x88   :  { %1669 = vmatpush1.msra.mxu0 %v3595_v55  ;;  %1740 = vmatpush1.msra.mxu1 %v3597_v56 }
  0x89   :  { %1670 = vmatprep.subr.mxu0 %v3601_v57  ;;  %1741 = vmatprep.subr.mxu1 %v3603_v58 }
  0x8a   :  { %1671 = vmatpush1.msra.mxu0 %v3607_v59  ;;  %1742 = vmatpush1.msra.mxu1 %v3609_v60 }
  0x8b   :  { %1672 = vmatprep.subr.mxu0 %v3613_v61  ;;  %1743 = vmatprep.subr.mxu1 %v3615_v62 }
  0x8c   :  { %1673 = vmatpush1.msra.mxu0 %v3619_v63  ;;  %1744 = vmatpush1.msra.mxu1 %v3621_v1 }
  0x8d   :  { %1674 = vmatprep.subr.mxu0 %v3625_v2  ;;  %1745 = vmatprep.subr.mxu1 %v3627_v3 }
  0x8e   :  { %1675 = vmatpush1.msra.mxu0 %v3631_v4  ;;  %1746 = vmatpush1.msra.mxu1 %v3633_v5 }
  0x8f   :  { %1676 = vmatprep.subr.mxu0 %v3637_v6  ;;  %1747 = vmatprep.subr.mxu1 %v3639_v7 }
  0x90   :  { %1677 = vmatpush1.msra.mxu0 %v3643_v8  ;;  %1748 = vmatpush1.msra.mxu1 %v3645_v9 }
  0x91   :  { %1678 = vmatprep.subr.mxu0 %v3649_v10  ;;  %1749 = vmatprep.subr.mxu1 %v3651_v11 }
  0x92   :  { %1679 = vmatpush1.msra.mxu0 %v3655_v12  ;;  %1750 = vmatpush1.msra.mxu1 %v3657_v13 }
  0x93   :  { %1680 = vmatprep.subr.mxu0 %v3661_v14  ;;  %1751 = vmatprep.subr.mxu1 %v3663_v15 }
  0x94   :  { %1681 = vmatpush1.msra.mxu0 %v3667_v16  ;;  %1752 = vmatpush1.msra.mxu1 %v3669_v17  ;;  %v4654_v17 = vmov 0.0  }
  0x95   :  { %1682 = vmatprep.subr.mxu0 %v3673_v18  ;;  %1753 = vmatprep.subr.mxu1 %v3675_v19 }
  0x96   :  { %1683 = vmatpush1.msra.mxu0 %v3679_v20  ;;  %1754 = vmatpush1.msra.mxu1 %v3681_v21 }
  0x97   :  { %1684 = vmatprep.subr.mxu0 %v3685_v22  ;;  %1755 = vmatprep.subr.mxu1 %v3687_v23 }
  0x98   :  { %1685 = vmatpush1.msra.mxu0 %v3691_v24  ;;  %1718 = vmatprep.mubr.f32.mxu0 %v4654_v17 }
  0x99   :  { %1756 = vmatpush1.msra.mxu1 %v3695_v0  ;;  %1789 = vmatprep.mubr.f32.mxu1 %v4654_v17 }
  0x9a   :  { %1719 = vmatmul.mubr.f32.vlgmr.msra.gmra.mxu0 %v4654_v17  ;;  %1790 = vmatmul.mubr.f32.vlgmr.msra.gmra.mxu1 %v4654_v17 }
  0x9b   :  { %1822 = vmatprep.subr.mxu0 %v3503_v25  ;;  %1893 = vmatprep.subr.mxu1 %v3507_v26 }
  0x9c   :  { %1823 = vmatpush1.msra.mxu0 %v3511_v27  ;;  %1894 = vmatpush1.msra.mxu1 %v3513_v28 }
  0x9d   :  { %1824 = vmatprep.subr.mxu0 %v3517_v29  ;;  %1895 = vmatprep.subr.mxu1 %v3519_v30 }
  0x9e   :  { %1825 = vmatpush1.msra.mxu0 %v3523_v31  ;;  %1896 = vmatpush1.msra.mxu1 %v3525_v32 }
  0x9f   :  { %1826 = vmatprep.subr.mxu0 %v3529_v33  ;;  %1897 = vmatprep.subr.mxu1 %v3531_v34 }
  0xa0   :  { %1827 = vmatpush1.msra.mxu0 %v3535_v35  ;;  %1898 = vmatpush1.msra.mxu1 %v3537_v36 }
  0xa1   :  { %1828 = vmatprep.subr.mxu0 %v3541_v37  ;;  %1899 = vmatprep.subr.mxu1 %v3543_v38 }
  0xa2   :  { %1829 = vmatpush1.msra.mxu0 %v3547_v39  ;;  %1900 = vmatpush1.msra.mxu1 %v3549_v40 }
  0xa3   :  { %1830 = vmatprep.subr.mxu0 %v3553_v41  ;;  %1901 = vmatprep.subr.mxu1 %v3555_v42 }
  0xa4   :  { %1831 = vmatpush1.msra.mxu0 %v3559_v43  ;;  %1902 = vmatpush1.msra.mxu1 %v3561_v44 }
  0xa5   :  { %1832 = vmatprep.subr.mxu0 %v3565_v45  ;;  %1903 = vmatprep.subr.mxu1 %v3567_v46 }
  0xa6   :  { %1833 = vmatpush1.msra.mxu0 %v3571_v47  ;;  %1904 = vmatpush1.msra.mxu1 %v3573_v48 }
  0xa7   :  { %1834 = vmatprep.subr.mxu0 %v3577_v49  ;;  %1905 = vmatprep.subr.mxu1 %v3579_v50 }
  0xa8   :  { %1835 = vmatpush1.msra.mxu0 %v3583_v51  ;;  %1906 = vmatpush1.msra.mxu1 %v3585_v52 }
  0xa9   :  { %1836 = vmatprep.subr.mxu0 %v3589_v53  ;;  %1907 = vmatprep.subr.mxu1 %v3591_v54 }
  0xaa   :  { %1837 = vmatpush1.msra.mxu0 %v3595_v55  ;;  %1908 = vmatpush1.msra.mxu1 %v3597_v56 }
  0xab   :  { %1838 = vmatprep.subr.mxu0 %v3601_v57  ;;  %1909 = vmatprep.subr.mxu1 %v3603_v58 }
  0xac   :  { %1839 = vmatpush1.msra.mxu0 %v3607_v59  ;;  %1910 = vmatpush1.msra.mxu1 %v3609_v60 }
  0xad   :  { %1840 = vmatprep.subr.mxu0 %v3613_v61  ;;  %1911 = vmatprep.subr.mxu1 %v3615_v62 }
  0xae   :  { %1841 = vmatpush1.msra.mxu0 %v3619_v63  ;;  %1912 = vmatpush1.msra.mxu1 %v3621_v1 }
  0xaf   :  { %1842 = vmatprep.subr.mxu0 %v3625_v2  ;;  %1913 = vmatprep.subr.mxu1 %v3627_v3 }
  0xb0   :  { %1843 = vmatpush1.msra.mxu0 %v3631_v4  ;;  %1914 = vmatpush1.msra.mxu1 %v3633_v5 }
  0xb1   :  { %1844 = vmatprep.subr.mxu0 %v3637_v6  ;;  %1915 = vmatprep.subr.mxu1 %v3639_v7  ;;  %v4655_v6 = vld [vmem:[#allocation30_spill] sm:$0xff] }
  0xb2   :  { %1845 = vmatpush1.msra.mxu0 %v3643_v8  ;;  %1916 = vmatpush1.msra.mxu1 %v3645_v9 }
  0xb3   :  { %1846 = vmatprep.subr.mxu0 %v3649_v10  ;;  %1917 = vmatprep.subr.mxu1 %v3651_v11 }
  0xb4   :  { %1847 = vmatpush1.msra.mxu0 %v3655_v12  ;;  %1918 = vmatpush1.msra.mxu1 %v3657_v13 }
  0xb5   :  { %1848 = vmatprep.subr.mxu0 %v3661_v14  ;;  %1919 = vmatprep.subr.mxu1 %v3663_v15 }
  0xb6   :  { %1849 = vmatpush1.msra.mxu0 %v3667_v16  ;;  %1920 = vmatpush1.msra.mxu1 %v4655_v6 }
  0xb7   :  { %1850 = vmatprep.subr.mxu0 %v3673_v18  ;;  %1921 = vmatprep.subr.mxu1 %v3675_v19  ;;  %v84_v19 = vlaneseq }
  0xb8   :  { %1851 = vmatpush1.msra.mxu0 %v3679_v20  ;;  %1922 = vmatpush1.msra.mxu1 %v3681_v21 }
  0xb9   :  { %1852 = vmatprep.subr.mxu0 %v3685_v22  ;;  %1923 = vmatprep.subr.mxu1 %v3687_v23  ;;  %v85_v21 = vshrl.u32 %v84_v19, 7  ;;  %v3793_v19 = vld [vmem:[%s4512_s3] sm:$0xf] }
  0xba   :  { %1853 = vmatpush1.msra.mxu0 %v3691_v24  ;;  %1886 = vmatprep.mubr.f32.mxu0 %v4654_v17  ;;  %v3780_v24 = vld [vmem:[%s4512_s3] sm:$0xf]  ;;  %4659 = vst [vmem:[#allocation42_spill] sm:$0xff] %v3793_v19 }
  0xbb   :  { %1924 = vmatpush1.msra.mxu1 %v3695_v0  ;;  %1957 = vmatprep.mubr.f32.mxu1 %v4654_v17  ;;  %v3775_v18 = vsub.s32 3, %v85_v21  ;;  %4656 = vst [vmem:[#allocation39_spill] sm:$0xff] %v3780_v24 }
  0xbc   :  { %1990 = vmatprep.subr.mxu0 %v3503_v25  ;;  %2061 = vmatprep.subr.mxu1 %v3507_v26 }
  0xbd   :  { %v289_v0 = vrot.slane %v3780_v24, %v3775_v18  ;;  %v479_v22 = vrot.slane %v3793_v19, %v3775_v18 }
  0xf2   :  { %v174_v14 = vpop.f32.mrf.mxu0 }
  0xf3   :  { %v3773_v20 = vpop.f32.mrf.mxu1 }
  0xf5   :  { %v3782_v23 = vpop.f32.mrf.mxu1 }
  0xfd   :  { %v3786_v17 = vpop.f32.mrf.mxu1 }
  0xfe   :  { %4657 = vst [vmem:[#allocation40_spill] sm:$0xff] %v3786_v17  ;;  %v3804_v17 = vld [vmem:[%s4512_s3] sm:$0xf] }
  0xff   :  { %v436_v25 = vpop.f32.mrf.mxu1  ;;  %4662 = vst [vmem:[#allocation45_spill] sm:$0xff] %v3804_v17 }
 0x100   :  { %v3788_v26 = vadd.f32 %v436_v25, %v289_v0  ;;  %v669_v0 = vrot.slane %v3804_v17, %v3775_v18 }
 0x102   :  { %4658 = vst [vmem:[#allocation41_spill] sm:$0xff] %v3788_v26 }
 0x107   :  { %v3797_v6 = vpop.f32.mrf.mxu1 }
 0x108   :  { %4660 = vst [vmem:[#allocation43_spill] sm:$0xff] %v3797_v6  ;;  %v3815_v6 = vld [vmem:[%s4512_s3] sm:$0xf] }
 0x109   :  { %v626_v16 = vpop.f32.mrf.mxu1  ;;  %4665 = vst [vmem:[#allocation48_spill] sm:$0xff] %v3815_v6 }
 0x10a   :  { %v3799_v15 = vadd.f32 %v626_v16, %v479_v22  ;;  %v859_v16 = vrot.slane %v3815_v6, %v3775_v18  ;;  %v1222_v6 = vld [vmem:[%s4512_s3] sm:$0xf] }
 0x10c   :  { %4661 = vst [vmem:[#allocation44_spill] sm:$0xff] %v3799_v15 }
 0x111   :  { %v3808_v25 = vpop.f32.mrf.mxu1 }
 0x112   :  { %4663 = vst [vmem:[#allocation46_spill] sm:$0xff] %v3808_v25  ;;  %v1032_v25 = vld [vmem:[%s4512_s3] sm:$0xf] }
 0x113   :  { %v816_v26 = vpop.f32.mrf.mxu1 }
 0x114   :  { %v3810_v24 = vadd.f32 %v816_v26, %v669_v0  ;;  %v1049_v26 = vrot.slane %v1032_v25, %v3775_v18 }
 0x116   :  { %4664 = vst [vmem:[#allocation47_spill] sm:$0xff] %v3810_v24 }
 0x11b   :  { %v3819_v22 = vpop.f32.mrf.mxu1 }
 0x11c   :  { %4666 = vst [vmem:[#allocation49_spill] sm:$0xff] %v3819_v22  ;;  %v176_v22 = vpop.f32.mrf.mxu0 }
 0x11d   :  { %v1006_v15 = vpop.f32.mrf.mxu1 }
 0x11e   :  { %v3821_v19 = vadd.f32 %v1006_v15, %v859_v16  ;;  %v1239_v15 = vrot.slane %v1222_v6, %v3775_v18 }
 0x120   :  { %4667 = vst [vmem:[#allocation50_spill] sm:$0xff] %v3821_v19  ;;  %v3837_v19 = vpop.f32.mrf.mxu0 }
 0x121   :  { %4671 = vst [vmem:[#allocation54_spill] sm:$0xff] %v3837_v19 }
 0x122   :  { %v3841_v25 = vpop.f32.mrf.mxu0 }
 0x123   :  { %4673 = vst [vmem:[#allocation56_spill] sm:$0xff] %v3841_v25 }
 0x125   :  { %v3827_v0 = vpop.f32.mrf.mxu1 }
 0x126   :  { %4668 = vst [vmem:[#allocation51_spill] sm:$0xff] %v3827_v0  ;;  %v3843_v0 = vpop.f32.mrf.mxu0 }
 0x127   :  { %v1196_v24 = vpop.f32.mrf.mxu1  ;;  %4674 = vst [vmem:[#allocation57_spill] sm:$0xff] %v3843_v0 }
 0x128   :  { %v3829_v17 = vadd.f32 %v1196_v24, %v1049_v26  ;;  %v1412_v24 = vld [vmem:[%s4512_s3] sm:$0xf]  ;;  %v3851_v6 = vpop.f32.mrf.mxu0 }
 0x129   :  { %v1429_v26 = vrot.slane %v1412_v24, %v3775_v18  ;;  %4676 = vst [vmem:[#allocation59_spill] sm:$0xff] %v3851_v6 }
 0x12a   :  { %4669 = vst [vmem:[#allocation52_spill] sm:$0xff] %v3829_v17  ;;  %v3853_v11 = vpop.f32.mrf.mxu0 }
 0x12b   :  { %4677 = vst [vmem:[#allocation60_spill] sm:$0xff] %v3853_v11  ;;  %v82_v11 = vld [vmem:[%s4512_s3] sm:$0xf] }
 0x12f   :  { %v3835_v16 = vpop.f32.mrf.mxu1 }
 0x130   :  { %4670 = vst [vmem:[#allocation53_spill] sm:$0xff] %v3835_v16 }
 0x131   :  { %v1386_v13 = vpop.f32.mrf.mxu1 }
 0x132   :  { %v3839_v12 = vadd.f32 %v1386_v13, %v1239_v15  ;;  %v3857_v13 = vpop.f32.mrf.mxu0 }
 0x133   :  { %4679 = vst [vmem:[#allocation62_spill] sm:$0xff] %v3857_v13 }
 0x134   :  { %4672 = vst [vmem:[#allocation55_spill] sm:$0xff] %v3839_v12  ;;  %v3859_v15 = vpop.f32.mrf.mxu0 }
 0x135   :  { %4680 = vst [vmem:[#allocation63_spill] sm:$0xff] %v3859_v15  ;;  %v3882_v15 = vsub.s32 2, %v85_v21 }
 0x136   :  { %v3861_v12 = vpop.f32.mrf.mxu0 }
 0x137   :  { %4681 = vst [vmem:[#allocation64_spill] sm:$0xff] %v3861_v12  ;;  %4689 = vst [vmem:[#allocation72_spill] sm:$0xff] %v3882_v15  ;;  %v95_v10 = vrot.slane %v82_v11, %v3882_v15 }
 0x138   :  { %v3863_v0 = vpop.f32.mrf.mxu0 }
 0x139   :  { %v3849_v17 = vpop.f32.mrf.mxu1  ;;  %4682 = vst [vmem:[#allocation65_spill] sm:$0xff] %v3863_v0 }
 0x13a   :  { %4675 = vst [vmem:[#allocation58_spill] sm:$0xff] %v3849_v17  ;;  %v3865_v25 = vpop.f32.mrf.mxu0  ;;  %v3869_v17 = vsub.s32 0, %v85_v21 }
 0x13b   :  { %v1576_v16 = vpop.f32.mrf.mxu1  ;;  %4683 = vst [vmem:[#allocation66_spill] sm:$0xff] %v3865_v25 }
 0x13c   :  { %v3855_v19 = vadd.f32 %v1576_v16, %v1429_v26  ;;  %v3867_v24 = vpop.f32.mrf.mxu0  ;;  %4685 = vst [vmem:[#allocation68_spill] sm:$0xff] %v3869_v17  ;;  %v3876_v26 = vsub.s32 1, %v85_v21  ;;  %v87_v12 = vrot.slane %v82_v11, %v3869_v17 }
 0x13d   :  { %4684 = vst [vmem:[#allocation67_spill] sm:$0xff] %v3867_v24 }
 0x13e   :  { %4678 = vst [vmem:[#allocation61_spill] sm:$0xff] %v3855_v19  ;;  %v3874_v16 = vpop.f32.mrf.mxu0  ;;  %4687 = vst [vmem:[#allocation70_spill] sm:$0xff] %v3876_v26  ;;  %v91_v0 = vrot.slane %v82_v11, %v3876_v26  ;;  %v175_v24 = vadd.f32 %v174_v14, %v87_v12  ;;  %v99_v26 = vrot.slane %v82_v11, %v3775_v18 }
 0x13f   :  { %4686 = vst [vmem:[#allocation69_spill] sm:$0xff] %v3874_v16 }
 0x140   :  { %v3878_v19 = vpop.f32.mrf.mxu0  ;;  %v177_v6 = vadd.f32 %v176_v22, %v91_v0  ;;  %v248_v12 = vadd.f32 %v3782_v23, %v99_v26  ;;  %v4691_v23 = vld [vmem:[#allocation17_spill] sm:$0xff]  ;;  %v4693_v26 = vld [vmem:[#allocation19_spill] sm:$0xff] }
 0x141   :  { %4688 = vst [vmem:[#allocation71_spill] sm:$0xff] %v3878_v19  ;;  %v246_v19 = vadd.f32 %v3773_v20, %v95_v10 }
 0x142   :  { %v3884_v25 = vpop.f32.mrf.mxu0 }
 0x143   :  { %4690 = vst [vmem:[#allocation73_spill] sm:$0xff] %v3884_v25  ;;  %v4712_v25 = vmov 0.0  }
 0x15a   :  { %v1720_v13 = vpop.f32.mrf.mxu0  ;;  %v1791_v5 = vpop.f32.mrf.mxu1 }
 0x15b   :  { %v1796_v9 = vadd.f32 %v1720_v13, %v175_v24  ;;  %v1798_v21 = vadd.f32 %v1791_v5, %v246_v19  ;;  %v4692_v19 = vld [vmem:[#allocation18_spill] sm:$0xff] }
 0x15c   :  { %v1722_v8 = vpop.f32.mrf.mxu0  ;;  %v1793_v4 = vpop.f32.mrf.mxu1 }
 0x15d   :  { %v1800_v16 = vmul.f32 0.5, %v1796_v9  ;;  %v1797_v7 = vadd.f32 %v1722_v8, %v177_v6  ;;  %v1799_v14 = vadd.f32 %v1793_v4, %v248_v12  ;;  %v4695_v12 = vld [vmem:[#allocation21_spill] sm:$0xff] }
 0x15f   :  { %3041 = vtanh.f32 %v1800_v16  ;;  %v1804_v17 = vmul.f32 0.5, %v1797_v7  ;;  %v1809_v22 = vmul.f32 0.5, %v1799_v14  ;;  %v4696_v14 = vld [vmem:[#allocation22_spill] sm:$0xff] }
 0x161   :  { %3043 = vtanh.f32 %v1804_v17 }
 0x162   :  { %3045 = vtanh.f32 %v1798_v21  ;;  %v4694_v21 = vld [vmem:[#allocation20_spill] sm:$0xff] }
 0x163   :  { %3047 = vtanh.f32 %v1809_v22  ;;  %v4697_v22 = vld [vmem:[#allocation23_spill] sm:$0xff] }
 0x16c   :  { %v3042_v0 = vpop.eup %3041 }
 0x16d   :  { %v1802_v13 = vmul.f32 0.5, %v3042_v0  ;;  %v4698_v0 = vld [vmem:[#allocation24_spill] sm:$0xff] }
 0x16e   :  { %v3044_v24 = vpop.eup %3043 }
 0x16f   :  { %v1803_v9 = vadd.f32 0.5, %v1802_v13  ;;  %v1806_v8 = vmul.f32 0.5, %v3044_v24  ;;  %v3046_v10 = vpop.eup %3045  ;;  %v4699_v13 = vld [vmem:[#allocation25_spill] sm:$0xff]  ;;  %v4700_v24 = vld [vmem:[#allocation26_spill] sm:$0xff] }
 0x170   :  { %v3048_v5 = vpop.eup %3047 }
 0x171   :  { %v1807_v6 = vadd.f32 0.5, %v1806_v8  ;;  %v1814_v7 = vmul.f32 %v3046_v10, %v1803_v9  ;;  %v1811_v11 = vmul.f32 0.5, %v3048_v5  ;;  %v4701_v9 = vld [vmem:[#allocation27_spill] sm:$0xff]  ;;  %v4702_v8 = vld [vmem:[#allocation28_spill] sm:$0xff]  ;;  %v4704_v10 = vld [vmem:[#allocation30_spill] sm:$0xff] }
 0x172   :  { %v4707_v5 = vld [vmem:[#allocation33_spill] sm:$0xff] }
 0x173   :  { %v1813_v20 = vmul.f32 0.0, %v1807_v6  ;;  %v1812_v17 = vadd.f32 0.5, %v1811_v11  ;;  %v4703_v6 = vld [vmem:[#allocation29_spill] sm:$0xff]  ;;  %v4708_v11 = vld [vmem:[#allocation34_spill] sm:$0xff] }
 0x175   :  { %v3890_v16 = vadd.f32 %v1814_v7, %v1813_v20  ;;  %v4705_v20 = vld [vmem:[#allocation31_spill] sm:$0xff]  ;;  %v4706_v7 = vld [vmem:[#allocation32_spill] sm:$0xff] }
 0x177   :  { %3049 = vtanh.f32 %v3890_v16 }
 0x184   :  { %v3050_v18 = vpop.eup %3049 }
 0x185   :  { %v1817_v4 = vmul.f32 %v3050_v18, %v1812_v17  ;;  %v4709_v17 = vld [vmem:[#allocation35_spill] sm:$0xff]  ;;  %v4710_v18 = vld [vmem:[#allocation36_spill] sm:$0xff] }
 0x187   :  { %1887 = vmatmul.mubr.f32.vlgmr.msra.gmra.mxu0 %v1817_v4  ;;  %1958 = vmatmul.mubr.f32.vlgmr.msra.gmra.mxu1 %v1817_v4  ;;  %v4711_v4 = vld [vmem:[#allocation37_spill] sm:$0xff] }
 0x188   :  { %1991 = vmatpush1.msra.mxu0 %v3511_v27  ;;  %2062 = vmatpush1.msra.mxu1 %v3513_v28 }
 0x189   :  { %1992 = vmatprep.subr.mxu0 %v3517_v29  ;;  %2063 = vmatprep.subr.mxu1 %v3519_v30 }
 0x18a   :  { %1993 = vmatpush1.msra.mxu0 %v3523_v31  ;;  %2064 = vmatpush1.msra.mxu1 %v3525_v32 }
 0x18b   :  { %1994 = vmatprep.subr.mxu0 %v3529_v33  ;;  %2065 = vmatprep.subr.mxu1 %v3531_v34 }
 0x18c   :  { %1995 = vmatpush1.msra.mxu0 %v3535_v35  ;;  %2066 = vmatpush1.msra.mxu1 %v3537_v36 }
 0x18d   :  { %1996 = vmatprep.subr.mxu0 %v3541_v37  ;;  %2067 = vmatprep.subr.mxu1 %v3543_v38 }
 0x18e   :  { %1997 = vmatpush1.msra.mxu0 %v3547_v39  ;;  %2068 = vmatpush1.msra.mxu1 %v3549_v40 }
 0x18f   :  { %1998 = vmatprep.subr.mxu0 %v3553_v41  ;;  %2069 = vmatprep.subr.mxu1 %v3555_v42 }
 0x190   :  { %1999 = vmatpush1.msra.mxu0 %v3559_v43  ;;  %2070 = vmatpush1.msra.mxu1 %v3561_v44 }
 0x191   :  { %2000 = vmatprep.subr.mxu0 %v3565_v45  ;;  %2071 = vmatprep.subr.mxu1 %v3567_v46 }
 0x192   :  { %2001 = vmatpush1.msra.mxu0 %v3571_v47  ;;  %2072 = vmatpush1.msra.mxu1 %v3573_v48 }
 0x193   :  { %2002 = vmatprep.subr.mxu0 %v3577_v49  ;;  %2073 = vmatprep.subr.mxu1 %v3579_v50 }
 0x194   :  { %2003 = vmatpush1.msra.mxu0 %v3583_v51  ;;  %2074 = vmatpush1.msra.mxu1 %v3585_v52 }
 0x195   :  { %2004 = vmatprep.subr.mxu0 %v3589_v53  ;;  %2075 = vmatprep.subr.mxu1 %v3591_v54 }
 0x196   :  { %2005 = vmatpush1.msra.mxu0 %v3595_v55  ;;  %2076 = vmatpush1.msra.mxu1 %v3597_v56 }
 0x197   :  { %2006 = vmatprep.subr.mxu0 %v3601_v57  ;;  %2077 = vmatprep.subr.mxu1 %v3603_v58 }
 0x198   :  { %2007 = vmatpush1.msra.mxu0 %v3607_v59  ;;  %2078 = vmatpush1.msra.mxu1 %v3609_v60 }
 0x199   :  { %2008 = vmatprep.subr.mxu0 %v3613_v61  ;;  %2079 = vmatprep.subr.mxu1 %v3615_v62 }
 0x19a   :  { %2009 = vmatpush1.msra.mxu0 %v3619_v63  ;;  %2080 = vmatpush1.msra.mxu1 %v3621_v1 }
 0x19b   :  { %2010 = vmatprep.subr.mxu0 %v3625_v2  ;;  %2081 = vmatprep.subr.mxu1 %v3627_v3 }
 0x19c   :  { %2011 = vmatpush1.msra.mxu0 %v4691_v23  ;;  %2082 = vmatpush1.msra.mxu1 %v4692_v19 }
 0x19d   :  { %2012 = vmatprep.subr.mxu0 %v4693_v26  ;;  %2083 = vmatprep.subr.mxu1 %v4694_v21 }
 0x19e   :  { %2013 = vmatpush1.msra.mxu0 %v4695_v12  ;;  %2084 = vmatpush1.msra.mxu1 %v4696_v14 }
 0x19f   :  { %2014 = vmatprep.subr.mxu0 %v4697_v22  ;;  %2085 = vmatprep.subr.mxu1 %v4698_v0 }
 0x1a0   :  { %2015 = vmatpush1.msra.mxu0 %v4699_v13  ;;  %2086 = vmatpush1.msra.mxu1 %v4700_v24  ;;  %v4720_v13 = vld [vmem:[#allocation56_spill] sm:$0xff] }
 0x1a1   :  { %2016 = vmatprep.subr.mxu0 %v4701_v9  ;;  %2087 = vmatprep.subr.mxu1 %v4702_v8  ;;  %v4713_v8 = vld [vmem:[#allocation38_spill] sm:$0xff] }
 0x1a2   :  { %2017 = vmatpush1.msra.mxu0 %v4703_v6  ;;  %2088 = vmatpush1.msra.mxu1 %v4704_v10  ;;  %v4714_v10 = vld [vmem:[#allocation15_spill] sm:$0xff]  ;;  %v4719_v9 = vld [vmem:[#allocation54_spill] sm:$0xff] }
 0x1a3   :  { %2018 = vmatprep.subr.mxu0 %v4705_v20  ;;  %2089 = vmatprep.subr.mxu1 %v4706_v7  ;;  %v4715_v20 = vld [vmem:[#allocation16_spill] sm:$0xff] }
 0x1a4   :  { %2019 = vmatpush1.msra.mxu0 %v4707_v5  ;;  %2090 = vmatpush1.msra.mxu1 %v4708_v11  ;;  %v4716_v7 = vld [vmem:[#allocation68_spill] sm:$0xff]  ;;  %v4717_v5 = vld [vmem:[#allocation39_spill] sm:$0xff]  ;;  %v4718_v11 = vld [vmem:[#allocation70_spill] sm:$0xff] }
 0x1a5   :  { %2020 = vmatprep.subr.mxu0 %v4709_v17  ;;  %2091 = vmatprep.subr.mxu1 %v4710_v18  ;;  %v277_v6 = vrot.slane %v4717_v5, %v4716_v7  ;;  %v281_v17 = vrot.slane %v4717_v5, %v4718_v11 }
 0x1a6   :  { %2021 = vmatpush1.msra.mxu0 %v4711_v4  ;;  %2054 = vmatprep.mubr.f32.mxu0 %v4712_v25  ;;  %v285_v4 = vrot.slane %v4717_v5, %v3882_v15 }
 0x1a7   :  { %2092 = vmatpush1.msra.mxu1 %v4713_v8  ;;  %2125 = vmatprep.mubr.f32.mxu1 %v4712_v25  ;;  %v364_v18 = vadd.f32 %v4719_v9, %v277_v6  ;;  %v366_v8 = vadd.f32 %v4720_v13, %v281_v17  ;;  %v4722_v9 = vld [vmem:[#allocation41_spill] sm:$0xff] }
 0x1a8   :  { %2158 = vmatprep.subr.mxu0 %v4714_v10  ;;  %2229 = vmatprep.subr.mxu1 %v4715_v20  ;;  %v4721_v10 = vld [vmem:[#allocation40_spill] sm:$0xff] }
 0x1a9   :  { %v435_v14 = vadd.f32 %v4721_v10, %v285_v4  ;;  %v4730_v4 = vld [vmem:[#allocation25_spill] sm:$0xff] }
 0x247   :  { %v1888_v24 = vpop.f32.mrf.mxu0  ;;  %v1959_v25 = vpop.f32.mrf.mxu1 }
 0x248   :  { %v1964_v0 = vadd.f32 %v1888_v24, %v364_v18  ;;  %v1966_v7 = vadd.f32 %v1959_v25, %v435_v14 }
 0x249   :  { %v1890_v22 = vpop.f32.mrf.mxu0  ;;  %v1961_v11 = vpop.f32.mrf.mxu1 }
 0x24a   :  { %v1968_v20 = vmul.f32 0.5, %v1964_v0  ;;  %v1965_v12 = vadd.f32 %v1890_v22, %v366_v8  ;;  %v1967_v6 = vadd.f32 %v1961_v11, %v4722_v9  ;;  %v4729_v11 = vld [vmem:[#allocation24_spill] sm:$0xff]  ;;  %v4731_v9 = vld [vmem:[#allocation26_spill] sm:$0xff] }
 0x24c   :  { %3051 = vtanh.f32 %v1968_v20  ;;  %v1972_v21 = vmul.f32 0.5, %v1965_v12  ;;  %v1977_v26 = vmul.f32 0.5, %v1967_v6  ;;  %v4727_v20 = vld [vmem:[#allocation22_spill] sm:$0xff]  ;;  %v4732_v6 = vld [vmem:[#allocation27_spill] sm:$0xff] }
 0x24e   :  { %3053 = vtanh.f32 %v1972_v21 }
 0x24f   :  { %3055 = vtanh.f32 %v1966_v7  ;;  %v4728_v7 = vld [vmem:[#allocation23_spill] sm:$0xff] }
 0x250   :  { %3057 = vtanh.f32 %v1977_v26  ;;  %v4726_v26 = vld [vmem:[#allocation21_spill] sm:$0xff] }
 0x259   :  { %v3052_v5 = vpop.eup %3051 }
 0x25a   :  { %v1970_v15 = vmul.f32 0.5, %v3052_v5  ;;  %v4733_v5 = vld [vmem:[#allocation28_spill] sm:$0xff] }
 0x25b   :  { %v3054_v19 = vpop.eup %3053 }
 0x25c   :  { %v1971_v13 = vadd.f32 0.5, %v1970_v15  ;;  %v1974_v24 = vmul.f32 0.5, %v3054_v19  ;;  %v3056_v17 = vpop.eup %3055  ;;  %v4723_v15 = vld [vmem:[#allocation18_spill] sm:$0xff]  ;;  %v4725_v19 = vld [vmem:[#allocation20_spill] sm:$0xff] }
 0x25d   :  { %v3058_v25 = vpop.eup %3057 }
 0x25e   :  { %v1975_v18 = vadd.f32 0.5, %v1974_v24  ;;  %v1982_v10 = vmul.f32 %v3056_v17, %v1971_v13  ;;  %v1979_v21 = vmul.f32 0.5, %v3058_v25  ;;  %v4734_v13 = vld [vmem:[#allocation29_spill] sm:$0xff]  ;;  %v4735_v24 = vld [vmem:[#allocation30_spill] sm:$0xff]  ;;  %v4736_v17 = vld [vmem:[#allocation31_spill] sm:$0xff] }
 0x25f   :  { %v4740_v25 = vld [vmem:[#allocation35_spill] sm:$0xff] }
 0x260   :  { %v1981_v22 = vmul.f32 %v1975_v18, %v3890_v16  ;;  %v1980_v12 = vadd.f32 0.5, %v1979_v21  ;;  %v4724_v16 = vld [vmem:[#allocation19_spill] sm:$0xff]  ;;  %v4737_v18 = vld [vmem:[#allocation32_spill] sm:$0xff] }
 0x261   :  { %v4741_v21 = vld [vmem:[#allocation36_spill] sm:$0xff] }
 0x262   :  { %v3970_v0 = vadd.f32 %v1982_v10, %v1981_v22  ;;  %v4738_v10 = vld [vmem:[#allocation33_spill] sm:$0xff]  ;;  %v4739_v22 = vld [vmem:[#allocation34_spill] sm:$0xff] }
 0x264   :  { %3059 = vtanh.f32 %v3970_v0 }
 0x271   :  { %v3060_v14 = vpop.eup %3059 }
 0x272   :  { %v1985_v8 = vmul.f32 %v3060_v14, %v1980_v12  ;;  %v4742_v12 = vld [vmem:[#allocation37_spill] sm:$0xff]  ;;  %v4743_v14 = vmov 0.0  }
 0x274   :  { %2055 = vmatmul.mubr.f32.vlgmr.msra.gmra.mxu0 %v1985_v8  ;;  %2126 = vmatmul.mubr.f32.vlgmr.msra.gmra.mxu1 %v1985_v8  ;;  %v4744_v8 = vld [vmem:[#allocation38_spill] sm:$0xff] }
 0x275   :  { %2159 = vmatpush1.msra.mxu0 %v3511_v27  ;;  %2230 = vmatpush1.msra.mxu1 %v3513_v28 }
 0x276   :  { %2160 = vmatprep.subr.mxu0 %v3517_v29  ;;  %2231 = vmatprep.subr.mxu1 %v3519_v30 }
 0x277   :  { %2161 = vmatpush1.msra.mxu0 %v3523_v31  ;;  %2232 = vmatpush1.msra.mxu1 %v3525_v32 }
 0x278   :  { %2162 = vmatprep.subr.mxu0 %v3529_v33  ;;  %2233 = vmatprep.subr.mxu1 %v3531_v34 }
 0x279   :  { %2163 = vmatpush1.msra.mxu0 %v3535_v35  ;;  %2234 = vmatpush1.msra.mxu1 %v3537_v36 }
 0x27a   :  { %2164 = vmatprep.subr.mxu0 %v3541_v37  ;;  %2235 = vmatprep.subr.mxu1 %v3543_v38 }
 0x27b   :  { %2165 = vmatpush1.msra.mxu0 %v3547_v39  ;;  %2236 = vmatpush1.msra.mxu1 %v3549_v40 }
 0x27c   :  { %2166 = vmatprep.subr.mxu0 %v3553_v41  ;;  %2237 = vmatprep.subr.mxu1 %v3555_v42 }
 0x27d   :  { %2167 = vmatpush1.msra.mxu0 %v3559_v43  ;;  %2238 = vmatpush1.msra.mxu1 %v3561_v44 }
 0x27e   :  { %2168 = vmatprep.subr.mxu0 %v3565_v45  ;;  %2239 = vmatprep.subr.mxu1 %v3567_v46 }
 0x27f   :  { %2169 = vmatpush1.msra.mxu0 %v3571_v47  ;;  %2240 = vmatpush1.msra.mxu1 %v3573_v48 }
 0x280   :  { %2170 = vmatprep.subr.mxu0 %v3577_v49  ;;  %2241 = vmatprep.subr.mxu1 %v3579_v50 }
 0x281   :  { %2171 = vmatpush1.msra.mxu0 %v3583_v51  ;;  %2242 = vmatpush1.msra.mxu1 %v3585_v52 }
 0x282   :  { %2172 = vmatprep.subr.mxu0 %v3589_v53  ;;  %2243 = vmatprep.subr.mxu1 %v3591_v54 }
 0x283   :  { %2173 = vmatpush1.msra.mxu0 %v3595_v55  ;;  %2244 = vmatpush1.msra.mxu1 %v3597_v56 }
 0x284   :  { %2174 = vmatprep.subr.mxu0 %v3601_v57  ;;  %2245 = vmatprep.subr.mxu1 %v3603_v58 }
 0x285   :  { %2175 = vmatpush1.msra.mxu0 %v3607_v59  ;;  %2246 = vmatpush1.msra.mxu1 %v3609_v60 }
 0x286   :  { %2176 = vmatprep.subr.mxu0 %v3613_v61  ;;  %2247 = vmatprep.subr.mxu1 %v3615_v62 }
 0x287   :  { %2177 = vmatpush1.msra.mxu0 %v3619_v63  ;;  %2248 = vmatpush1.msra.mxu1 %v3621_v1 }
 0x288   :  { %2178 = vmatprep.subr.mxu0 %v3625_v2  ;;  %2249 = vmatprep.subr.mxu1 %v3627_v3 }
 0x289   :  { %2179 = vmatpush1.msra.mxu0 %v4691_v23  ;;  %2250 = vmatpush1.msra.mxu1 %v4723_v15 }
 0x28a   :  { %2180 = vmatprep.subr.mxu0 %v4724_v16  ;;  %2251 = vmatprep.subr.mxu1 %v4725_v19 }
 0x28b   :  { %2181 = vmatpush1.msra.mxu0 %v4726_v26  ;;  %2252 = vmatpush1.msra.mxu1 %v4727_v20 }
 0x28c   :  { %2182 = vmatprep.subr.mxu0 %v4728_v7  ;;  %2253 = vmatprep.subr.mxu1 %v4729_v11 }
 0x28d   :  { %2183 = vmatpush1.msra.mxu0 %v4730_v4  ;;  %2254 = vmatpush1.msra.mxu1 %v4731_v9  ;;  %v4752_v4 = vld [vmem:[#allocation59_spill] sm:$0xff] }
 0x28e   :  { %2184 = vmatprep.subr.mxu0 %v4732_v6  ;;  %2255 = vmatprep.subr.mxu1 %v4733_v5  ;;  %v4750_v5 = vld [vmem:[#allocation57_spill] sm:$0xff]  ;;  %v4751_v6 = vld [vmem:[#allocation72_spill] sm:$0xff] }
 0x28f   :  { %2185 = vmatpush1.msra.mxu0 %v4734_v13  ;;  %2256 = vmatpush1.msra.mxu1 %v4735_v24  ;;  %v4745_v24 = vld [vmem:[#allocation15_spill] sm:$0xff] }
 0x290   :  { %2186 = vmatprep.subr.mxu0 %v4736_v17  ;;  %2257 = vmatprep.subr.mxu1 %v4737_v18  ;;  %v4746_v17 = vld [vmem:[#allocation16_spill] sm:$0xff] }
 0x291   :  { %2187 = vmatpush1.msra.mxu0 %v4738_v10  ;;  %2258 = vmatpush1.msra.mxu1 %v4739_v22  ;;  %v4747_v18 = vld [vmem:[#allocation68_spill] sm:$0xff]  ;;  %v4748_v10 = vld [vmem:[#allocation42_spill] sm:$0xff] }
 0x292   :  { %2188 = vmatprep.subr.mxu0 %v4740_v25  ;;  %2259 = vmatprep.subr.mxu1 %v4741_v21  ;;  %v467_v13 = vrot.slane %v4748_v10, %v4747_v18  ;;  %v4749_v22 = vld [vmem:[#allocation70_spill] sm:$0xff] }
 0x293   :  { %2189 = vmatpush1.msra.mxu0 %v4742_v12  ;;  %2222 = vmatprep.mubr.f32.mxu0 %v4743_v14  ;;  %v471_v25 = vrot.slane %v4748_v10, %v4749_v22  ;;  %v475_v12 = vrot.slane %v4748_v10, %v4751_v6 }
 0x294   :  { %2260 = vmatpush1.msra.mxu1 %v4744_v8  ;;  %2293 = vmatprep.mubr.f32.mxu1 %v4743_v14  ;;  %v554_v21 = vadd.f32 %v4750_v5, %v467_v13  ;;  %v4754_v5 = vld [vmem:[#allocation44_spill] sm:$0xff] }
 0x295   :  { %2326 = vmatprep.subr.mxu0 %v4745_v24  ;;  %2397 = vmatprep.subr.mxu1 %v4746_v17  ;;  %v556_v8 = vadd.f32 %v4752_v4, %v471_v25  ;;  %v4753_v24 = vld [vmem:[#allocation43_spill] sm:$0xff] }
 0x296   :  { %v625_v20 = vadd.f32 %v4753_v24, %v475_v12 }
 0x334   :  { %v2056_v9 = vpop.f32.mrf.mxu0  ;;  %v2127_v14 = vpop.f32.mrf.mxu1 }
 0x335   :  { %v2132_v11 = vadd.f32 %v2056_v9, %v554_v21  ;;  %v2134_v18 = vadd.f32 %v2127_v14, %v625_v20 }
 0x336   :  { %v2058_v7 = vpop.f32.mrf.mxu0  ;;  %v2129_v22 = vpop.f32.mrf.mxu1 }
 0x337   :  { %v2136_v17 = vmul.f32 0.5, %v2132_v11  ;;  %v2133_v26 = vadd.f32 %v2058_v7, %v556_v8  ;;  %v2135_v13 = vadd.f32 %v2129_v22, %v4754_v5  ;;  %v4786_v8 = vld [vmem:[#allocation47_spill] sm:$0xff] }
 0x339   :  { %3061 = vtanh.f32 %v2136_v17  ;;  %v2140_v19 = vmul.f32 0.5, %v2133_v26  ;;  %v2145_v16 = vmul.f32 0.5, %v2135_v13 }
 0x33b   :  { %3063 = vtanh.f32 %v2140_v19 }
 0x33c   :  { %3065 = vtanh.f32 %v2134_v18 }
 0x33d   :  { %3067 = vtanh.f32 %v2145_v16 }
 0x346   :  { %v3062_v10 = vpop.eup %3061 }
 0x347   :  { %v2138_v6 = vmul.f32 0.5, %v3062_v10 }
 0x348   :  { %v3064_v15 = vpop.eup %3063 }
 0x349   :  { %v2139_v4 = vadd.f32 0.5, %v2138_v6  ;;  %v2142_v9 = vmul.f32 0.5, %v3064_v15  ;;  %v3066_v25 = vpop.eup %3065 }
 0x34a   :  { %v3068_v19 = vpop.eup %3067 }
 0x34b   :  { %v2143_v21 = vadd.f32 0.5, %v2142_v9  ;;  %v2150_v12 = vmul.f32 %v3066_v25, %v2139_v4  ;;  %v2147_v26 = vmul.f32 0.5, %v3068_v19 }
 0x34d   :  { %v2149_v7 = vmul.f32 %v2143_v21, %v3970_v0  ;;  %v2148_v20 = vadd.f32 0.5, %v2147_v26 }
 0x34f   :  { %v4050_v11 = vadd.f32 %v2150_v12, %v2149_v7 }
 0x351   :  { %3069 = vtanh.f32 %v4050_v11 }
 0x35e   :  { %v3070_v18 = vpop.eup %3069 }
 0x35f   :  { %v2153_v22 = vmul.f32 %v3070_v18, %v2148_v20 }
 0x361   :  { %2223 = vmatmul.mubr.f32.vlgmr.msra.gmra.mxu0 %v2153_v22  ;;  %2294 = vmatmul.mubr.f32.vlgmr.msra.gmra.mxu1 %v2153_v22 }
 0x362   :  { %2327 = vmatpush1.msra.mxu0 %v3511_v27  ;;  %2398 = vmatpush1.msra.mxu1 %v3513_v28  ;;  %v4755_v27 = vld [vmem:[#allocation18_spill] sm:$0xff]  ;;  %v4756_v28 = vld [vmem:[#allocation19_spill] sm:$0xff] }
 0x363   :  { %2328 = vmatprep.subr.mxu0 %v3517_v29  ;;  %2399 = vmatprep.subr.mxu1 %v3519_v30  ;;  %v4757_v29 = vld [vmem:[#allocation20_spill] sm:$0xff]  ;;  %v4758_v30 = vld [vmem:[#allocation21_spill] sm:$0xff] }
 0x364   :  { %2329 = vmatpush1.msra.mxu0 %v3523_v31  ;;  %2400 = vmatpush1.msra.mxu1 %v3525_v32  ;;  %v4759_v31 = vld [vmem:[#allocation22_spill] sm:$0xff]  ;;  %v4760_v32 = vld [vmem:[#allocation23_spill] sm:$0xff] }
 0x365   :  { %2330 = vmatprep.subr.mxu0 %v3529_v33  ;;  %2401 = vmatprep.subr.mxu1 %v3531_v34  ;;  %v4761_v33 = vld [vmem:[#allocation24_spill] sm:$0xff]  ;;  %v4762_v34 = vld [vmem:[#allocation25_spill] sm:$0xff] }
 0x366   :  { %2331 = vmatpush1.msra.mxu0 %v3535_v35  ;;  %2402 = vmatpush1.msra.mxu1 %v3537_v36  ;;  %v4763_v35 = vld [vmem:[#allocation26_spill] sm:$0xff]  ;;  %v4764_v36 = vld [vmem:[#allocation27_spill] sm:$0xff] }
 0x367   :  { %2332 = vmatprep.subr.mxu0 %v3541_v37  ;;  %2403 = vmatprep.subr.mxu1 %v3543_v38  ;;  %v4765_v37 = vld [vmem:[#allocation28_spill] sm:$0xff]  ;;  %v4766_v38 = vld [vmem:[#allocation29_spill] sm:$0xff] }
 0x368   :  { %2333 = vmatpush1.msra.mxu0 %v3547_v39  ;;  %2404 = vmatpush1.msra.mxu1 %v3549_v40  ;;  %v4767_v39 = vld [vmem:[#allocation30_spill] sm:$0xff]  ;;  %v4768_v40 = vld [vmem:[#allocation31_spill] sm:$0xff] }
 0x369   :  { %2334 = vmatprep.subr.mxu0 %v3553_v41  ;;  %2405 = vmatprep.subr.mxu1 %v3555_v42  ;;  %v4769_v41 = vld [vmem:[#allocation32_spill] sm:$0xff]  ;;  %v4770_v42 = vld [vmem:[#allocation33_spill] sm:$0xff] }
 0x36a   :  { %2335 = vmatpush1.msra.mxu0 %v3559_v43  ;;  %2406 = vmatpush1.msra.mxu1 %v3561_v44  ;;  %v4771_v43 = vld [vmem:[#allocation34_spill] sm:$0xff]  ;;  %v4772_v44 = vld [vmem:[#allocation35_spill] sm:$0xff] }
 0x36b   :  { %2336 = vmatprep.subr.mxu0 %v3565_v45  ;;  %2407 = vmatprep.subr.mxu1 %v3567_v46  ;;  %v4773_v45 = vld [vmem:[#allocation36_spill] sm:$0xff]  ;;  %v4774_v46 = vld [vmem:[#allocation37_spill] sm:$0xff] }
 0x36c   :  { %2337 = vmatpush1.msra.mxu0 %v3571_v47  ;;  %2408 = vmatpush1.msra.mxu1 %v3573_v48  ;;  %v4775_v47 = vmov 0.0   ;;  %v4776_v48 = vld [vmem:[#allocation38_spill] sm:$0xff] }
 0x36d   :  { %2338 = vmatprep.subr.mxu0 %v3577_v49  ;;  %2409 = vmatprep.subr.mxu1 %v3579_v50  ;;  %v4117_v49 = vld [vmem:[#allocation10 + $0x1e8] sm:$0xff]  ;;  %v4120_v50 = vld [vmem:[#allocation10 + $0x1f8] sm:$0xff] }
 0x36e   :  { %2339 = vmatpush1.msra.mxu0 %v3583_v51  ;;  %2410 = vmatpush1.msra.mxu1 %v3585_v52  ;;  %4777 = vst [vmem:[#allocation17_spill] sm:$0xff] %v4117_v49  ;;  %4778 = vst [vmem:[#allocation39_spill] sm:$0xff] %v4120_v50  ;;  %v4779_v51 = vld [vmem:[#allocation68_spill] sm:$0xff]  ;;  %v4780_v52 = vld [vmem:[#allocation45_spill] sm:$0xff] }
 0x36f   :  { %2340 = vmatprep.subr.mxu0 %v3589_v53  ;;  %2411 = vmatprep.subr.mxu1 %v3591_v54  ;;  %v657_v53 = vrot.slane %v4780_v52, %v4779_v51  ;;  %v4781_v54 = vld [vmem:[#allocation70_spill] sm:$0xff] }
 0x370   :  { %2341 = vmatpush1.msra.mxu0 %v3595_v55  ;;  %2412 = vmatpush1.msra.mxu1 %v3597_v56  ;;  %v661_v55 = vrot.slane %v4780_v52, %v4781_v54  ;;  %v4782_v56 = vld [vmem:[#allocation60_spill] sm:$0xff] }
 0x371   :  { %2342 = vmatprep.subr.mxu0 %v3601_v57  ;;  %2413 = vmatprep.subr.mxu1 %v3603_v58  ;;  %v744_v57 = vadd.f32 %v4782_v56, %v657_v53  ;;  %v4783_v58 = vld [vmem:[#allocation72_spill] sm:$0xff]  ;;  %v4203_v53 = vld [vmem:[#allocation10 + $0x128] sm:$0xff]  ;;  %v4209_v56 = vld [vmem:[#allocation10 + $0x120] sm:$0xff] }
 0x372   :  { %2343 = vmatpush1.msra.mxu0 %v3607_v59  ;;  %2414 = vmatpush1.msra.mxu1 %v3609_v60  ;;  %v665_v59 = vrot.slane %v4780_v52, %v4783_v58  ;;  %v4200_v52 = vld [vmem:[#allocation10 + $0x150] sm:$0xff] }
 0x373   :  { %2344 = vmatprep.subr.mxu0 %v3613_v61  ;;  %2415 = vmatprep.subr.mxu1 %v3615_v62  ;;  %v4784_v61 = vld [vmem:[#allocation62_spill] sm:$0xff] }
 0x374   :  { %2345 = vmatpush1.msra.mxu0 %v3619_v63  ;;  %2416 = vmatpush1.msra.mxu1 %v3621_v1  ;;  %v746_v62 = vadd.f32 %v4784_v61, %v661_v55  ;;  %v4206_v55 = vld [vmem:[#allocation10 + $0x138] sm:$0xff]  ;;  %v4221_v61 = vld [vmem:[#allocation10 + $0x100] sm:$0xff] }
 0x375   :  { %2346 = vmatprep.subr.mxu0 %v3625_v2  ;;  %2417 = vmatprep.subr.mxu1 %v3627_v3  ;;  %v4785_v3 = vld [vmem:[#allocation46_spill] sm:$0xff] }
 0x376   :  { %2347 = vmatpush1.msra.mxu0 %v4691_v23  ;;  %2418 = vmatpush1.msra.mxu1 %v4755_v27  ;;  %v815_v23 = vadd.f32 %v4785_v3, %v665_v59  ;;  %v4215_v59 = vld [vmem:[#allocation10 + $0x108] sm:$0xff]  ;;  %v4236_v3 = vld [vmem:[#allocation10 + $0xf0] sm:$0xff] }
 0x377   :  { %2348 = vmatprep.subr.mxu0 %v4756_v28  ;;  %2419 = vmatprep.subr.mxu1 %v4757_v29  ;;  %v4137_v28 = vld [vmem:[#allocation10 + $0x1e0] sm:$0xff]  ;;  %v4140_v29 = vld [vmem:[#allocation10 + $0x1f0] sm:$0xff] }
 0x378   :  { %2349 = vmatpush1.msra.mxu0 %v4758_v30  ;;  %2420 = vmatpush1.msra.mxu1 %v4759_v31  ;;  %v4146_v30 = vld [vmem:[#allocation10 + $0x1d8] sm:$0xff]  ;;  %v4149_v31 = vld [vmem:[#allocation10 + $0x1c0] sm:$0xff] }
 0x379   :  { %2350 = vmatprep.subr.mxu0 %v4760_v32  ;;  %2421 = vmatprep.subr.mxu1 %v4761_v33  ;;  %v4152_v32 = vld [vmem:[#allocation10 + $0x1d0] sm:$0xff]  ;;  %v4155_v33 = vld [vmem:[#allocation10 + $0x1a8] sm:$0xff] }
 0x37a   :  { %2351 = vmatpush1.msra.mxu0 %v4762_v34  ;;  %2422 = vmatpush1.msra.mxu1 %v4763_v35  ;;  %v4158_v34 = vld [vmem:[#allocation10 + $0x1b8] sm:$0xff]  ;;  %v4161_v35 = vld [vmem:[#allocation10 + $0x1a0] sm:$0xff] }
 0x37b   :  { %2352 = vmatprep.subr.mxu0 %v4764_v36  ;;  %2423 = vmatprep.subr.mxu1 %v4765_v37  ;;  %v4164_v36 = vld [vmem:[#allocation10 + $0x1b0] sm:$0xff]  ;;  %v4167_v37 = vld [vmem:[#allocation10 + $0x188] sm:$0xff] }
 0x37c   :  { %2353 = vmatpush1.msra.mxu0 %v4766_v38  ;;  %2424 = vmatpush1.msra.mxu1 %v4767_v39  ;;  %v4170_v38 = vld [vmem:[#allocation10 + $0x198] sm:$0xff]  ;;  %v4173_v39 = vld [vmem:[#allocation10 + $0x180] sm:$0xff] }
 0x37d   :  { %2354 = vmatprep.subr.mxu0 %v4768_v40  ;;  %2425 = vmatprep.subr.mxu1 %v4769_v41  ;;  %v4176_v40 = vld [vmem:[#allocation10 + $0x190] sm:$0xff]  ;;  %v4179_v41 = vld [vmem:[#allocation10 + $0x168] sm:$0xff] }
 0x37e   :  { %2355 = vmatpush1.msra.mxu0 %v4770_v42  ;;  %2426 = vmatpush1.msra.mxu1 %v4771_v43  ;;  %v4182_v42 = vld [vmem:[#allocation10 + $0x178] sm:$0xff]  ;;  %v4185_v43 = vld [vmem:[#allocation10 + $0x160] sm:$0xff] }
 0x37f   :  { %2356 = vmatprep.subr.mxu0 %v4772_v44  ;;  %2427 = vmatprep.subr.mxu1 %v4773_v45  ;;  %v4188_v44 = vld [vmem:[#allocation10 + $0x170] sm:$0xff]  ;;  %v4191_v45 = vld [vmem:[#allocation10 + $0x148] sm:$0xff] }
 0x380   :  { %2357 = vmatpush1.msra.mxu0 %v4774_v46  ;;  %2390 = vmatprep.mubr.f32.mxu0 %v4775_v47  ;;  %v4194_v46 = vld [vmem:[#allocation10 + $0x158] sm:$0xff] }
 0x381   :  { %2428 = vmatpush1.msra.mxu1 %v4776_v48  ;;  %2461 = vmatprep.mubr.f32.mxu1 %v4775_v47  ;;  %v4197_v48 = vld [vmem:[#allocation10 + $0x140] sm:$0xff] }
 0x382   :  { %2494 = vmatprep.subr.mxu0 %v4117_v49  ;;  %2565 = vmatprep.subr.mxu1 %v4120_v50 }
 0x421   :  { %v2224_v60 = vpop.f32.mrf.mxu0  ;;  %v2295_v1 = vpop.f32.mrf.mxu1 }
 0x422   :  { %v2300_v63 = vadd.f32 %v2224_v60, %v744_v57  ;;  %v2302_v16 = vadd.f32 %v2295_v1, %v815_v23  ;;  %v4212_v57 = vld [vmem:[#allocation10 + $0x130] sm:$0xff]  ;;  %v4218_v60 = vld [vmem:[#allocation10 + $0x118] sm:$0xff]  ;;  %v4239_v23 = vld [vmem:[#allocation10 + $0xc8] sm:$0xff] }
 0x423   :  { %v2226_v2 = vpop.f32.mrf.mxu0  ;;  %v2297_v14 = vpop.f32.mrf.mxu1  ;;  %v4230_v1 = vld [vmem:[#allocation10 + $0xf8] sm:$0xff] }
 0x424   :  { %v2304_v0 = vmul.f32 0.5, %v2300_v63  ;;  %v2301_v15 = vadd.f32 %v2226_v2, %v746_v62  ;;  %v2303_v24 = vadd.f32 %v2297_v14, %v4786_v8  ;;  %v4224_v62 = vld [vmem:[#allocation10 + $0x110] sm:$0xff]  ;;  %v4227_v63 = vld [vmem:[#allocation10 + $0xe8] sm:$0xff]  ;;  %v4233_v2 = vld [vmem:[#allocation10 + $0xe0] sm:$0xff] }
 0x425   :  { %v4254_v14 = vld [vmem:[#allocation10 + $0xb8] sm:$0xff]  ;;  %v4257_v8 = vld [vmem:[#allocation10 + $0xa0] sm:$0xff] }
 0x426   :  { %3071 = vtanh.f32 %v2304_v0  ;;  %v2308_v6 = vmul.f32 0.5, %v2301_v15  ;;  %v2313_v17 = vmul.f32 0.5, %v2303_v24  ;;  %v4242_v0 = vld [vmem:[#allocation10 + $0xd8] sm:$0xff]  ;;  %v4245_v15 = vld [vmem:[#allocation10 + $0xc0] sm:$0xff]  ;;  %v4260_v24 = vld [vmem:[#allocation10 + $0xb0] sm:$0xff] }
 0x427   :  { %4787 = vst [vmem:[#allocation54_spill] sm:$0xff] %v4260_v24 }
 0x428   :  { %3073 = vtanh.f32 %v2308_v6  ;;  %v4251_v6 = vld [vmem:[#allocation10 + $0xa8] sm:$0xff] }
 0x429   :  { %3075 = vtanh.f32 %v2302_v16  ;;  %v4248_v16 = vld [vmem:[#allocation10 + $0xd0] sm:$0xff] }
 0x42a   :  { %3077 = vtanh.f32 %v2313_v17  ;;  %v4263_v17 = vld [vmem:[#allocation10 + $0x88] sm:$0xff] }
 0x42b   :  { %4788 = vst [vmem:[#allocation56_spill] sm:$0xff] %v4263_v17 }
 0x433   :  { %v3072_v5 = vpop.eup %3071 }
 0x434   :  { %v2306_v13 = vmul.f32 0.5, %v3072_v5  ;;  %v4266_v5 = vld [vmem:[#allocation10 + $0x98] sm:$0xff] }
 0x435   :  { %v3074_v10 = vpop.eup %3073  ;;  %4789 = vst [vmem:[#allocation40_spill] sm:$0xff] %v4266_v5 }
 0x436   :  { %v2307_v4 = vadd.f32 0.5, %v2306_v13  ;;  %v2310_v9 = vmul.f32 0.5, %v3074_v10  ;;  %v3076_v25 = vpop.eup %3075  ;;  %v4269_v13 = vld [vmem:[#allocation10 + $0x80] sm:$0xff]  ;;  %v4272_v10 = vld [vmem:[#allocation10 + $0x90] sm:$0xff] }
 0x437   :  { %v3078_v26 = vpop.eup %3077  ;;  %4790 = vst [vmem:[#allocation41_spill] sm:$0xff] %v4269_v13  ;;  %4791 = vst [vmem:[#allocation15_spill] sm:$0xff] %v4272_v10 }
 0x438   :  { %v2311_v21 = vadd.f32 0.5, %v2310_v9  ;;  %v2318_v12 = vmul.f32 %v3076_v25, %v2307_v4  ;;  %v2315_v20 = vmul.f32 0.5, %v3078_v26  ;;  %v4275_v4 = vld [vmem:[#allocation10 + $0x68] sm:$0xff]  ;;  %v4278_v9 = vld [vmem:[#allocation10 + $0x78] sm:$0xff]  ;;  %v4281_v25 = vld [vmem:[#allocation10 + $0x60] sm:$0xff] }
 0x439   :  { %4792 = vst [vmem:[#allocation16_spill] sm:$0xff] %v4275_v4  ;;  %4793 = vst [vmem:[#allocation42_spill] sm:$0xff] %v4278_v9  ;;  %v4293_v26 = vld [vmem:[#allocation10 + $0x40] sm:$0xff] }
 0x43a   :  { %v2317_v7 = vmul.f32 %v2311_v21, %v4050_v11  ;;  %v2316_v18 = vadd.f32 0.5, %v2315_v20  ;;  %v4143_v11 = vld [vmem:[#allocation10 + $0x1c8] sm:$0xff]  ;;  %4794 = vst [vmem:[#allocation57_spill] sm:$0xff] %v4281_v25  ;;  %v4284_v21 = vld [vmem:[#allocation10 + $0x70] sm:$0xff]  ;;  %4798 = vst [vmem:[#allocation18_spill] sm:$0xff] %v4293_v26 }
 0x43b   :  { %4795 = vst [vmem:[#allocation59_spill] sm:$0xff] %v4284_v21  ;;  %v4296_v20 = vld [vmem:[#allocation10 + $0x50] sm:$0xff] }
 0x43c   :  { %v4134_v19 = vadd.f32 %v2318_v12, %v2317_v7  ;;  %v4287_v12 = vld [vmem:[#allocation10 + $0x48] sm:$0xff]  ;;  %v4290_v7 = vld [vmem:[#allocation10 + $0x58] sm:$0xff]  ;;  %4799 = vst [vmem:[#allocation19_spill] sm:$0xff] %v4296_v20 }
 0x43d   :  { %4796 = vst [vmem:[#allocation43_spill] sm:$0xff] %v4287_v12  ;;  %4797 = vst [vmem:[#allocation44_spill] sm:$0xff] %v4290_v7 }
 0x43e   :  { %3079 = vtanh.f32 %v4134_v19 }
 0x44b   :  { %v3080_v22 = vpop.eup %3079 }
 0x44c   :  { %v2321_v27 = vmul.f32 %v3080_v22, %v2316_v18  ;;  %v4299_v18 = vld [vmem:[#allocation10 + $0x28] sm:$0xff]  ;;  %v4302_v22 = vld [vmem:[#allocation10 + $0x38] sm:$0xff] }
 0x44d   :  { %4800 = vst [vmem:[#allocation20_spill] sm:$0xff] %v4299_v18  ;;  %4801 = vst [vmem:[#allocation21_spill] sm:$0xff] %v4302_v22 }
 0x44e   :  { %2391 = vmatmul.mubr.f32.vlgmr.msra.gmra.mxu0 %v2321_v27  ;;  %2462 = vmatmul.mubr.f32.vlgmr.msra.gmra.mxu1 %v2321_v27  ;;  %v4305_v27 = vld [vmem:[#allocation10 + $0x20] sm:$0xff] }
 0x44f   :  { %2495 = vmatpush1.msra.mxu0 %v4137_v28  ;;  %2566 = vmatpush1.msra.mxu1 %v4140_v29  ;;  %4802 = vst [vmem:[#allocation22_spill] sm:$0xff] %v4305_v27 }
 0x450   :  { %2496 = vmatprep.subr.mxu0 %v4143_v11  ;;  %2567 = vmatprep.subr.mxu1 %v4146_v30 }
 0x451   :  { %2497 = vmatpush1.msra.mxu0 %v4149_v31  ;;  %2568 = vmatpush1.msra.mxu1 %v4152_v32 }
 0x452   :  { %2498 = vmatprep.subr.mxu0 %v4155_v33  ;;  %2569 = vmatprep.subr.mxu1 %v4158_v34 }
 0x453   :  { %2499 = vmatpush1.msra.mxu0 %v4161_v35  ;;  %2570 = vmatpush1.msra.mxu1 %v4164_v36 }
 0x454   :  { %2500 = vmatprep.subr.mxu0 %v4167_v37  ;;  %2571 = vmatprep.subr.mxu1 %v4170_v38 }
 0x455   :  { %2501 = vmatpush1.msra.mxu0 %v4173_v39  ;;  %2572 = vmatpush1.msra.mxu1 %v4176_v40 }
 0x456   :  { %2502 = vmatprep.subr.mxu0 %v4179_v41  ;;  %2573 = vmatprep.subr.mxu1 %v4182_v42 }
 0x457   :  { %2503 = vmatpush1.msra.mxu0 %v4185_v43  ;;  %2574 = vmatpush1.msra.mxu1 %v4188_v44 }
 0x458   :  { %2504 = vmatprep.subr.mxu0 %v4191_v45  ;;  %2575 = vmatprep.subr.mxu1 %v4194_v46 }
 0x459   :  { %2505 = vmatpush1.msra.mxu0 %v4197_v48  ;;  %2576 = vmatpush1.msra.mxu1 %v4200_v52 }
 0x45a   :  { %2506 = vmatprep.subr.mxu0 %v4203_v53  ;;  %2577 = vmatprep.subr.mxu1 %v4206_v55 }
 0x45b   :  { %2507 = vmatpush1.msra.mxu0 %v4209_v56  ;;  %2578 = vmatpush1.msra.mxu1 %v4212_v57 }
 0x45c   :  { %2508 = vmatprep.subr.mxu0 %v4215_v59  ;;  %2579 = vmatprep.subr.mxu1 %v4218_v60 }
 0x45d   :  { %2509 = vmatpush1.msra.mxu0 %v4221_v61  ;;  %2580 = vmatpush1.msra.mxu1 %v4224_v62 }
 0x45e   :  { %2510 = vmatprep.subr.mxu0 %v4227_v63  ;;  %2581 = vmatprep.subr.mxu1 %v4230_v1 }
 0x45f   :  { %2511 = vmatpush1.msra.mxu0 %v4233_v2  ;;  %2582 = vmatpush1.msra.mxu1 %v4236_v3 }
 0x460   :  { %2512 = vmatprep.subr.mxu0 %v4239_v23  ;;  %2583 = vmatprep.subr.mxu1 %v4242_v0 }
 0x461   :  { %2513 = vmatpush1.msra.mxu0 %v4245_v15  ;;  %2584 = vmatpush1.msra.mxu1 %v4248_v16 }
 0x462   :  { %2514 = vmatprep.subr.mxu0 %v4251_v6  ;;  %2585 = vmatprep.subr.mxu1 %v4254_v14 }
 0x463   :  { %2515 = vmatpush1.msra.mxu0 %v4257_v8  ;;  %2586 = vmatpush1.msra.mxu1 %v4260_v24 }
 0x464   :  { %2516 = vmatprep.subr.mxu0 %v4263_v17  ;;  %2587 = vmatprep.subr.mxu1 %v4266_v5 }
 0x465   :  { %2517 = vmatpush1.msra.mxu0 %v4269_v13  ;;  %2588 = vmatpush1.msra.mxu1 %v4272_v10 }
 0x466   :  { %2518 = vmatprep.subr.mxu0 %v4275_v4  ;;  %2589 = vmatprep.subr.mxu1 %v4278_v9 }
 0x467   :  { %2519 = vmatpush1.msra.mxu0 %v4281_v25  ;;  %2590 = vmatpush1.msra.mxu1 %v4284_v21  ;;  %v4810_v25 = vld [vmem:[#allocation64_spill] sm:$0xff] }
 0x468   :  { %2520 = vmatprep.subr.mxu0 %v4287_v12  ;;  %2591 = vmatprep.subr.mxu1 %v4290_v7  ;;  %v4308_v7 = vld [vmem:[#allocation10 + $0x30] sm:$0xff] }
 0x469   :  { %2521 = vmatpush1.msra.mxu0 %v4293_v26  ;;  %2592 = vmatpush1.msra.mxu1 %v4296_v20  ;;  %4803 = vst [vmem:[#allocation23_spill] sm:$0xff] %v4308_v7  ;;  %v4311_v26 = vld [vmem:[#allocation10 + $0x8] sm:$0xff]  ;;  %v4314_v20 = vld [vmem:[#allocation10 + $0x18] sm:$0xff] }
 0x46a   :  { %2522 = vmatprep.subr.mxu0 %v4299_v18  ;;  %2593 = vmatprep.subr.mxu1 %v4302_v22  ;;  %4804 = vst [vmem:[#allocation24_spill] sm:$0xff] %v4311_v26  ;;  %4805 = vst [vmem:[#allocation25_spill] sm:$0xff] %v4314_v20  ;;  %v4317_v18 = vld [vmem:[#allocation10] sm:$0xff]  ;;  %v4321_v22 = vld [vmem:[#allocation10 + $0x10] sm:$0xff] }
 0x46b   :  { %2523 = vmatpush1.msra.mxu0 %v4305_v27  ;;  %2594 = vmatpush1.msra.mxu1 %v4308_v7  ;;  %4806 = vst [vmem:[#allocation26_spill] sm:$0xff] %v4317_v18  ;;  %4807 = vst [vmem:[#allocation27_spill] sm:$0xff] %v4321_v22  ;;  %v4809_v27 = vld [vmem:[#allocation63_spill] sm:$0xff] }
 0x46c   :  { %2524 = vmatprep.subr.mxu0 %v4311_v26  ;;  %2595 = vmatprep.subr.mxu1 %v4314_v20  ;;  %v4808_v26 = vld [vmem:[#allocation48_spill] sm:$0xff] }
 0x46d   :  { %2525 = vmatpush1.msra.mxu0 %v4317_v18  ;;  %2558 = vmatprep.mubr.f32.mxu0 %v4775_v47  ;;  %v847_v7 = vrot.slane %v4808_v26, %v4779_v51  ;;  %v851_v20 = vrot.slane %v4808_v26, %v4781_v54  ;;  %v855_v12 = vrot.slane %v4808_v26, %v4783_v58 }
 0x46e   :  { %2596 = vmatpush1.msra.mxu1 %v4321_v22  ;;  %2629 = vmatprep.mubr.f32.mxu1 %v4775_v47 }
 0x46f   :  { %2662 = vmatprep.subr.mxu0 %v4117_v49  ;;  %2733 = vmatprep.subr.mxu1 %v4120_v50  ;;  %v934_v18 = vadd.f32 %v4809_v27, %v847_v7  ;;  %v936_v22 = vadd.f32 %v4810_v25, %v851_v20  ;;  %v4811_v49 = vld [vmem:[#allocation49_spill] sm:$0xff]  ;;  %v4812_v7 = vld [vmem:[#allocation50_spill] sm:$0xff] }
 0x470   :  { %v1005_v10 = vadd.f32 %v4811_v49, %v855_v12  ;;  %v4819_v12 = vld [vmem:[#allocation42_spill] sm:$0xff] }
 0x50e   :  { %v2392_v21 = vpop.f32.mrf.mxu0  ;;  %v2463_v47 = vpop.f32.mrf.mxu1 }
 0x50f   :  { %v2468_v9 = vadd.f32 %v2392_v21, %v934_v18  ;;  %v2470_v51 = vadd.f32 %v2463_v47, %v1005_v10  ;;  %v4817_v10 = vld [vmem:[#allocation15_spill] sm:$0xff] }
 0x510   :  { %v2394_v4 = vpop.f32.mrf.mxu0  ;;  %v2465_v54 = vpop.f32.mrf.mxu1 }
 0x511   :  { %v2472_v50 = vmul.f32 0.5, %v2468_v9  ;;  %v2469_v13 = vadd.f32 %v2394_v4, %v936_v22  ;;  %v2471_v27 = vadd.f32 %v2465_v54, %v4812_v7  ;;  %v4818_v9 = vld [vmem:[#allocation16_spill] sm:$0xff]  ;;  %v4820_v22 = vld [vmem:[#allocation57_spill] sm:$0xff]  ;;  %v4821_v7 = vld [vmem:[#allocation59_spill] sm:$0xff] }
 0x513   :  { %3081 = vtanh.f32 %v2472_v50  ;;  %v2476_v5 = vmul.f32 0.5, %v2469_v13  ;;  %v2481_v17 = vmul.f32 0.5, %v2471_v27  ;;  %v4822_v27 = vld [vmem:[#allocation43_spill] sm:$0xff] }
 0x515   :  { %3083 = vtanh.f32 %v2476_v5 }
 0x516   :  { %3085 = vtanh.f32 %v2470_v51 }
 0x517   :  { %3087 = vtanh.f32 %v2481_v17  ;;  %v4816_v17 = vld [vmem:[#allocation41_spill] sm:$0xff] }
 0x520   :  { %v3082_v26 = vpop.eup %3081 }
 0x521   :  { %v2474_v58 = vmul.f32 0.5, %v3082_v26  ;;  %v4823_v26 = vld [vmem:[#allocation44_spill] sm:$0xff] }
 0x522   :  { %v3084_v24 = vpop.eup %3083 }
 0x523   :  { %v2475_v25 = vadd.f32 0.5, %v2474_v58  ;;  %v2478_v21 = vmul.f32 0.5, %v3084_v24  ;;  %v3086_v20 = vpop.eup %3085  ;;  %v4813_v58 = vld [vmem:[#allocation54_spill] sm:$0xff]  ;;  %v4815_v24 = vld [vmem:[#allocation40_spill] sm:$0xff] }
 0x524   :  { %v3088_v47 = vpop.eup %3087 }
 0x525   :  { %v2479_v18 = vadd.f32 0.5, %v2478_v21  ;;  %v2486_v49 = vmul.f32 %v3086_v20, %v2475_v25  ;;  %v2483_v51 = vmul.f32 0.5, %v3088_v47  ;;  %v4824_v25 = vld [vmem:[#allocation18_spill] sm:$0xff]  ;;  %v4825_v21 = vld [vmem:[#allocation19_spill] sm:$0xff]  ;;  %v4826_v20 = vld [vmem:[#allocation20_spill] sm:$0xff] }
 0x526   :  { %v4830_v47 = vld [vmem:[#allocation24_spill] sm:$0xff] }
 0x527   :  { %v2485_v4 = vmul.f32 %v2479_v18, %v4134_v19  ;;  %v2484_v5 = vadd.f32 0.5, %v2483_v51  ;;  %v4814_v19 = vld [vmem:[#allocation56_spill] sm:$0xff]  ;;  %v4827_v18 = vld [vmem:[#allocation21_spill] sm:$0xff] }
 0x528   :  { %v4831_v51 = vld [vmem:[#allocation25_spill] sm:$0xff] }
 0x529   :  { %v4338_v50 = vadd.f32 %v2486_v49, %v2485_v4  ;;  %v4828_v49 = vld [vmem:[#allocation22_spill] sm:$0xff]  ;;  %v4829_v4 = vld [vmem:[#allocation23_spill] sm:$0xff] }
 0x52b   :  { %3089 = vtanh.f32 %v4338_v50 }
 0x538   :  { %v3090_v54 = vpop.eup %3089 }
 0x539   :  { %v2489_v13 = vmul.f32 %v3090_v54, %v2484_v5  ;;  %v4832_v5 = vld [vmem:[#allocation26_spill] sm:$0xff]  ;;  %v4833_v54 = vmov 0.0  }
 0x53b   :  { %2559 = vmatmul.mubr.f32.vlgmr.msra.gmra.mxu0 %v2489_v13  ;;  %2630 = vmatmul.mubr.f32.vlgmr.msra.gmra.mxu1 %v2489_v13  ;;  %v4834_v13 = vld [vmem:[#allocation27_spill] sm:$0xff] }
 0x53c   :  { %2663 = vmatpush1.msra.mxu0 %v4137_v28  ;;  %2734 = vmatpush1.msra.mxu1 %v4140_v29 }
 0x53d   :  { %2664 = vmatprep.subr.mxu0 %v4143_v11  ;;  %2735 = vmatprep.subr.mxu1 %v4146_v30 }
 0x53e   :  { %2665 = vmatpush1.msra.mxu0 %v4149_v31  ;;  %2736 = vmatpush1.msra.mxu1 %v4152_v32 }
 0x53f   :  { %2666 = vmatprep.subr.mxu0 %v4155_v33  ;;  %2737 = vmatprep.subr.mxu1 %v4158_v34 }
 0x540   :  { %2667 = vmatpush1.msra.mxu0 %v4161_v35  ;;  %2738 = vmatpush1.msra.mxu1 %v4164_v36 }
 0x541   :  { %2668 = vmatprep.subr.mxu0 %v4167_v37  ;;  %2739 = vmatprep.subr.mxu1 %v4170_v38 }
 0x542   :  { %2669 = vmatpush1.msra.mxu0 %v4173_v39  ;;  %2740 = vmatpush1.msra.mxu1 %v4176_v40 }
 0x543   :  { %2670 = vmatprep.subr.mxu0 %v4179_v41  ;;  %2741 = vmatprep.subr.mxu1 %v4182_v42 }
 0x544   :  { %2671 = vmatpush1.msra.mxu0 %v4185_v43  ;;  %2742 = vmatpush1.msra.mxu1 %v4188_v44 }
 0x545   :  { %2672 = vmatprep.subr.mxu0 %v4191_v45  ;;  %2743 = vmatprep.subr.mxu1 %v4194_v46 }
 0x546   :  { %2673 = vmatpush1.msra.mxu0 %v4197_v48  ;;  %2744 = vmatpush1.msra.mxu1 %v4200_v52 }
 0x547   :  { %2674 = vmatprep.subr.mxu0 %v4203_v53  ;;  %2745 = vmatprep.subr.mxu1 %v4206_v55 }
 0x548   :  { %2675 = vmatpush1.msra.mxu0 %v4209_v56  ;;  %2746 = vmatpush1.msra.mxu1 %v4212_v57 }
 0x549   :  { %2676 = vmatprep.subr.mxu0 %v4215_v59  ;;  %2747 = vmatprep.subr.mxu1 %v4218_v60 }
 0x54a   :  { %2677 = vmatpush1.msra.mxu0 %v4221_v61  ;;  %2748 = vmatpush1.msra.mxu1 %v4224_v62 }
 0x54b   :  { %2678 = vmatprep.subr.mxu0 %v4227_v63  ;;  %2749 = vmatprep.subr.mxu1 %v4230_v1 }
 0x54c   :  { %2679 = vmatpush1.msra.mxu0 %v4233_v2  ;;  %2750 = vmatpush1.msra.mxu1 %v4236_v3 }
 0x54d   :  { %2680 = vmatprep.subr.mxu0 %v4239_v23  ;;  %2751 = vmatprep.subr.mxu1 %v4242_v0 }
 0x54e   :  { %2681 = vmatpush1.msra.mxu0 %v4245_v15  ;;  %2752 = vmatpush1.msra.mxu1 %v4248_v16 }
 0x54f   :  { %2682 = vmatprep.subr.mxu0 %v4251_v6  ;;  %2753 = vmatprep.subr.mxu1 %v4254_v14 }
 0x550   :  { %2683 = vmatpush1.msra.mxu0 %v4257_v8  ;;  %2754 = vmatpush1.msra.mxu1 %v4813_v58 }
 0x551   :  { %2684 = vmatprep.subr.mxu0 %v4814_v19  ;;  %2755 = vmatprep.subr.mxu1 %v4815_v24 }
 0x552   :  { %2685 = vmatpush1.msra.mxu0 %v4816_v17  ;;  %2756 = vmatpush1.msra.mxu1 %v4817_v10 }
 0x553   :  { %2686 = vmatprep.subr.mxu0 %v4818_v9  ;;  %2757 = vmatprep.subr.mxu1 %v4819_v12  ;;  %v4842_v9 = vld [vmem:[#allocation51_spill] sm:$0xff] }
 0x554   :  { %2687 = vmatpush1.msra.mxu0 %v4820_v22  ;;  %2758 = vmatpush1.msra.mxu1 %v4821_v7 }
 0x555   :  { %2688 = vmatprep.subr.mxu0 %v4822_v27  ;;  %2759 = vmatprep.subr.mxu1 %v4823_v26  ;;  %v4840_v26 = vld [vmem:[#allocation72_spill] sm:$0xff] }
 0x556   :  { %2689 = vmatpush1.msra.mxu0 %v4824_v25  ;;  %2760 = vmatpush1.msra.mxu1 %v4825_v21  ;;  %v4835_v21 = vld [vmem:[#allocation17_spill] sm:$0xff] }
 0x557   :  { %2690 = vmatprep.subr.mxu0 %v4826_v20  ;;  %2761 = vmatprep.subr.mxu1 %v4827_v18  ;;  %v4836_v20 = vld [vmem:[#allocation39_spill] sm:$0xff]  ;;  %v4838_v18 = vld [vmem:[#allocation70_spill] sm:$0xff]  ;;  %v4839_v25 = vld [vmem:[#allocation65_spill] sm:$0xff] }
 0x558   :  { %2691 = vmatpush1.msra.mxu0 %v4828_v49  ;;  %2762 = vmatpush1.msra.mxu1 %v4829_v4  ;;  %v3185_v4 = vld [vmem:[%s4512_s3] sm:$0xf]  ;;  %v4837_v49 = vld [vmem:[#allocation68_spill] sm:$0xff] }
 0x559   :  { %2692 = vmatprep.subr.mxu0 %v4830_v47  ;;  %2763 = vmatprep.subr.mxu1 %v4831_v51  ;;  %v1037_v47 = vrot.slane %v3185_v4, %v4837_v49  ;;  %v1041_v51 = vrot.slane %v3185_v4, %v4838_v18  ;;  %v1045_v27 = vrot.slane %v3185_v4, %v4840_v26  ;;  %v4843_v49 = vld [vmem:[#allocation52_spill] sm:$0xff] }
 0x55a   :  { %2693 = vmatpush1.msra.mxu0 %v4832_v5  ;;  %2726 = vmatprep.mubr.f32.mxu0 %v4833_v54 }
 0x55b   :  { %2764 = vmatpush1.msra.mxu1 %v4834_v13  ;;  %2797 = vmatprep.mubr.f32.mxu1 %v4833_v54  ;;  %v1124_v5 = vadd.f32 %v4839_v25, %v1037_v47  ;;  %v4841_v13 = vld [vmem:[#allocation66_spill] sm:$0xff] }
 0x55c   :  { %2830 = vmatprep.subr.mxu0 %v4835_v21  ;;  %2901 = vmatprep.subr.mxu1 %v4836_v20  ;;  %v1126_v22 = vadd.f32 %v4841_v13, %v1041_v51  ;;  %v1195_v20 = vadd.f32 %v4842_v9, %v1045_v27 }
 0x5fb   :  { %v2560_v7 = vpop.f32.mrf.mxu0  ;;  %v2631_v12 = vpop.f32.mrf.mxu1 }
 0x5fc   :  { %v2636_v54 = vadd.f32 %v2560_v7, %v1124_v5  ;;  %v2638_v24 = vadd.f32 %v2631_v12, %v1195_v20 }
 0x5fd   :  { %v2562_v21 = vpop.f32.mrf.mxu0  ;;  %v2633_v18 = vpop.f32.mrf.mxu1 }
 0x5fe   :  { %v2640_v10 = vmul.f32 0.5, %v2636_v54  ;;  %v2637_v17 = vadd.f32 %v2562_v21, %v1126_v22  ;;  %v2639_v25 = vadd.f32 %v2633_v18, %v4843_v49  ;;  %v4872_v18 = vld [vmem:[#allocation55_spill] sm:$0xff] }
 0x600   :  { %3091 = vtanh.f32 %v2640_v10  ;;  %v2644_v19 = vmul.f32 0.5, %v2637_v17  ;;  %v2649_v47 = vmul.f32 0.5, %v2639_v25 }
 0x602   :  { %3093 = vtanh.f32 %v2644_v19 }
 0x603   :  { %3095 = vtanh.f32 %v2638_v24 }
 0x604   :  { %3097 = vtanh.f32 %v2649_v47 }
 0x60d   :  { %v3092_v4 = vpop.eup %3091 }
 0x60e   :  { %v2642_v26 = vmul.f32 0.5, %v3092_v4 }
 0x60f   :  { %v3094_v58 = vpop.eup %3093 }
 0x610   :  { %v2643_v51 = vadd.f32 0.5, %v2642_v26  ;;  %v2646_v7 = vmul.f32 0.5, %v3094_v58  ;;  %v3096_v5 = vpop.eup %3095 }
 0x611   :  { %v3098_v19 = vpop.eup %3097 }
 0x612   :  { %v2647_v13 = vadd.f32 0.5, %v2646_v7  ;;  %v2654_v9 = vmul.f32 %v3096_v5, %v2643_v51  ;;  %v2651_v24 = vmul.f32 0.5, %v3098_v19 }
 0x614   :  { %v2653_v22 = vmul.f32 %v2647_v13, %v4338_v50  ;;  %v2652_v17 = vadd.f32 0.5, %v2651_v24 }
 0x616   :  { %v4418_v10 = vadd.f32 %v2654_v9, %v2653_v22 }
 0x618   :  { %3099 = vtanh.f32 %v4418_v10 }
 0x625   :  { %v3100_v12 = vpop.eup %3099 }
 0x626   :  { %v2657_v27 = vmul.f32 %v3100_v12, %v2652_v17 }
 0x628   :  { %2727 = vmatmul.mubr.f32.vlgmr.msra.gmra.mxu0 %v2657_v27  ;;  %2798 = vmatmul.mubr.f32.vlgmr.msra.gmra.mxu1 %v2657_v27  ;;  %v3187_v27 = vld [vmem:[%s4512_s3] sm:$0xf] }
 0x629   :  { %2831 = vmatpush1.msra.mxu0 %v4137_v28  ;;  %2902 = vmatpush1.msra.mxu1 %v4140_v29  ;;  %v4844_v28 = vld [vmem:[#allocation54_spill] sm:$0xff]  ;;  %v4845_v29 = vld [vmem:[#allocation56_spill] sm:$0xff] }
 0x62a   :  { %2832 = vmatprep.subr.mxu0 %v4143_v11  ;;  %2903 = vmatprep.subr.mxu1 %v4146_v30  ;;  %v4846_v11 = vld [vmem:[#allocation40_spill] sm:$0xff]  ;;  %v4847_v30 = vld [vmem:[#allocation41_spill] sm:$0xff] }
 0x62b   :  { %2833 = vmatpush1.msra.mxu0 %v4149_v31  ;;  %2904 = vmatpush1.msra.mxu1 %v4152_v32  ;;  %v4848_v31 = vld [vmem:[#allocation15_spill] sm:$0xff]  ;;  %v4849_v32 = vld [vmem:[#allocation16_spill] sm:$0xff] }
 0x62c   :  { %2834 = vmatprep.subr.mxu0 %v4155_v33  ;;  %2905 = vmatprep.subr.mxu1 %v4158_v34  ;;  %v4850_v33 = vld [vmem:[#allocation42_spill] sm:$0xff]  ;;  %v4851_v34 = vld [vmem:[#allocation57_spill] sm:$0xff] }
 0x62d   :  { %2835 = vmatpush1.msra.mxu0 %v4161_v35  ;;  %2906 = vmatpush1.msra.mxu1 %v4164_v36  ;;  %v4852_v35 = vld [vmem:[#allocation59_spill] sm:$0xff] }
 0x62e   :  { %2836 = vmatprep.subr.mxu0 %v4167_v37  ;;  %2907 = vmatprep.subr.mxu1 %v4170_v38  ;;  %v4853_v36 = vld [vmem:[#allocation43_spill] sm:$0xff]  ;;  %v4854_v37 = vld [vmem:[#allocation44_spill] sm:$0xff]  ;;  %v4855_v38 = vld [vmem:[#allocation18_spill] sm:$0xff] }
 0x62f   :  { %2837 = vmatpush1.msra.mxu0 %v4173_v39  ;;  %2908 = vmatpush1.msra.mxu1 %v4176_v40  ;;  %v4856_v39 = vld [vmem:[#allocation19_spill] sm:$0xff]  ;;  %v4857_v40 = vld [vmem:[#allocation20_spill] sm:$0xff] }
 0x630   :  { %2838 = vmatprep.subr.mxu0 %v4179_v41  ;;  %2909 = vmatprep.subr.mxu1 %v4182_v42  ;;  %v4858_v41 = vld [vmem:[#allocation21_spill] sm:$0xff]  ;;  %v4859_v42 = vld [vmem:[#allocation22_spill] sm:$0xff] }
 0x631   :  { %2839 = vmatpush1.msra.mxu0 %v4185_v43  ;;  %2910 = vmatpush1.msra.mxu1 %v4188_v44  ;;  %v4860_v43 = vld [vmem:[#allocation23_spill] sm:$0xff]  ;;  %v4861_v44 = vld [vmem:[#allocation24_spill] sm:$0xff] }
 0x632   :  { %2840 = vmatprep.subr.mxu0 %v4191_v45  ;;  %2911 = vmatprep.subr.mxu1 %v4194_v46  ;;  %v4862_v45 = vld [vmem:[#allocation25_spill] sm:$0xff]  ;;  %v4863_v46 = vld [vmem:[#allocation26_spill] sm:$0xff] }
 0x633   :  { %2841 = vmatpush1.msra.mxu0 %v4197_v48  ;;  %2912 = vmatpush1.msra.mxu1 %v4200_v52  ;;  %v4864_v48 = vmov 0.0   ;;  %v4865_v52 = vld [vmem:[#allocation27_spill] sm:$0xff] }
 0x634   :  { %2842 = vmatprep.subr.mxu0 %v4203_v53  ;;  %2913 = vmatprep.subr.mxu1 %v4206_v55  ;;  %v3186_v53 = vld [vmem:[%s4512_s3] sm:$0xf]  ;;  %v4866_v55 = vld [vmem:[#allocation68_spill] sm:$0xff]  ;;  %s3282_s3 = smov [#allocation11]  }
 0x635   :  { %2843 = vmatpush1.msra.mxu0 %v4209_v56  ;;  %2914 = vmatpush1.msra.mxu1 %v4212_v57  ;;  %v1227_v56 = vrot.slane %v3186_v53, %v4866_v55  ;;  %v4867_v57 = vld [vmem:[#allocation70_spill] sm:$0xff]  ;;  %s3006_s27 = sshll.u32 %s3282_s3, 4  ;;  %s3007_s27 = int_to_ptr.vmem [resolvable:$true] %s3006_s27 }
 0x636   :  { %2844 = vmatprep.subr.mxu0 %v4215_v59  ;;  %2915 = vmatprep.subr.mxu1 %v4218_v60  ;;  %v1231_v59 = vrot.slane %v3186_v53, %v4867_v57  ;;  %v4868_v60 = vld [vmem:[#allocation67_spill] sm:$0xff]  ;;  %s3248_s28 = scalar_lea.vmem %s3007_s27, 128  ;;  %p3253_p2 = scmp.lt.s32.totalorder %s3007_s27, %s3007_s27 }
 0x637   :  { %2845 = vmatpush1.msra.mxu0 %v4221_v61  ;;  %2916 = vmatpush1.msra.mxu1 %v4224_v62  ;;  %v1314_v61 = vadd.f32 %v4868_v60, %v1227_v56  ;;  %v4869_v62 = vld [vmem:[#allocation72_spill] sm:$0xff]  ;;  %p3249_p1 = scmp.ne.s32.totalorder %s3007_s27, %s3248_s28  ;;  %p3254_p3 = scmp.lt.s32.totalorder %s3248_s28, %s3248_s28 }
 0x638   :  { %2846 = vmatprep.subr.mxu0 %v4227_v63  ;;  %2917 = vmatprep.subr.mxu1 %v4230_v1  ;;  %v1235_v63 = vrot.slane %v3186_v53, %v4869_v62 }
 0x639   :  { %2847 = vmatpush1.msra.mxu0 %v4233_v2  ;;  %2918 = vmatpush1.msra.mxu1 %v4236_v3  ;;  %v4870_v2 = vld [vmem:[#allocation69_spill] sm:$0xff]  ;;  %p3255_p4 = por %p3254_p3, %p3253_p2 }
 0x63a   :  { %2848 = vmatprep.subr.mxu0 %v4239_v23  ;;  %2919 = vmatprep.subr.mxu1 %v4242_v0  ;;  %v1316_v3 = vadd.f32 %v4870_v2, %v1231_v59 }
 0x63b   :  { %2849 = vmatpush1.msra.mxu0 %v4245_v15  ;;  %2920 = vmatpush1.msra.mxu1 %v4248_v16  ;;  %v4871_v16 = vld [vmem:[#allocation53_spill] sm:$0xff]  ;;  %p3256_p5 = pnand %p3255_p4, %p3249_p1 }
 0x63c   :  { %2850 = vmatprep.subr.mxu0 %v4251_v6  ;;  %2921 = vmatprep.subr.mxu1 %v4254_v14  ;;  %v1385_v6 = vadd.f32 %v4871_v16, %v1235_v63 }
 0x63d   :  { %2851 = vmatpush1.msra.mxu0 %v4257_v8  ;;  %2922 = vmatpush1.msra.mxu1 %v4844_v28  ;;  %v1417_v28 = vrot.slane %v3187_v27, %v4866_v55 }
 0x63e   :  { %2852 = vmatprep.subr.mxu0 %v4845_v29  ;;  %2923 = vmatprep.subr.mxu1 %v4846_v11  ;;  %v1421_v29 = vrot.slane %v3187_v27, %v4867_v57  ;;  %v4873_v11 = vld [vmem:[#allocation71_spill] sm:$0xff] }
 0x63f   :  { %2853 = vmatpush1.msra.mxu0 %v4847_v30  ;;  %2924 = vmatpush1.msra.mxu1 %v4848_v31  ;;  %v1504_v30 = vadd.f32 %v4873_v11, %v1417_v28 }
 0x640   :  { %2854 = vmatprep.subr.mxu0 %v4849_v32  ;;  %2925 = vmatprep.subr.mxu1 %v4850_v33  ;;  %v4874_v32 = vld [vmem:[#allocation73_spill] sm:$0xff] }
 0x641   :  { %2855 = vmatpush1.msra.mxu0 %v4851_v34  ;;  %2926 = vmatpush1.msra.mxu1 %v4852_v35  ;;  %v1506_v33 = vadd.f32 %v4874_v32, %v1421_v29 }
 0x642   :  { %2856 = vmatprep.subr.mxu0 %v4853_v36  ;;  %2927 = vmatprep.subr.mxu1 %v4854_v37  ;;  %v4875_v37 = vld [vmem:[#allocation58_spill] sm:$0xff] }
 0x643   :  { %2857 = vmatpush1.msra.mxu0 %v4855_v38  ;;  %2928 = vmatpush1.msra.mxu1 %v4856_v39 }
 0x644   :  { %2858 = vmatprep.subr.mxu0 %v4857_v40  ;;  %2929 = vmatprep.subr.mxu1 %v4858_v41 }
 0x645   :  { %2859 = vmatpush1.msra.mxu0 %v4859_v42  ;;  %2930 = vmatpush1.msra.mxu1 %v4860_v43 }
 0x646   :  { %2860 = vmatprep.subr.mxu0 %v4861_v44  ;;  %2931 = vmatprep.subr.mxu1 %v4862_v45  ;;  %v4876_v44 = vld [vmem:[#allocation61_spill] sm:$0xff] }
 0x647   :  { %2861 = vmatpush1.msra.mxu0 %v4863_v46  ;;  %2894 = vmatprep.mubr.f32.mxu0 %v4864_v48 }
 0x648   :  { %2932 = vmatpush1.msra.mxu1 %v4865_v52  ;;  %2965 = vmatprep.mubr.f32.mxu1 %v4864_v48 }
 0x6e8   :  { %v2728_v1 = vpop.f32.mrf.mxu0  ;;  %v2799_v0 = vpop.f32.mrf.mxu1 }
 0x6e9   :  { %v2804_v23 = vadd.f32 %v2728_v1, %v1314_v61  ;;  %v2806_v50 = vadd.f32 %v2799_v0, %v1385_v6 }
 0x6ea   :  { %v2730_v15 = vpop.f32.mrf.mxu0  ;;  %v2801_v26 = vpop.f32.mrf.mxu1 }
 0x6eb   :  { %v2808_v14 = vmul.f32 0.5, %v2804_v23  ;;  %v2805_v8 = vadd.f32 %v2730_v15, %v1316_v3  ;;  %v2807_v49 = vadd.f32 %v2801_v26, %v4872_v18 }
 0x6ed   :  { %3101 = vtanh.f32 %v2808_v14  ;;  %v2812_v58 = vmul.f32 0.5, %v2805_v8  ;;  %v2817_v54 = vmul.f32 0.5, %v2807_v49 }
 0x6ef   :  { %3103 = vtanh.f32 %v2812_v58 }
 0x6f0   :  { %3105 = vtanh.f32 %v2806_v50 }
 0x6f1   :  { %3107 = vtanh.f32 %v2817_v54 }
 0x6fa   :  { %v3102_v21 = vpop.eup %3101 }
 0x6fb   :  { %v2810_v20 = vmul.f32 0.5, %v3102_v21 }
 0x6fc   :  { %v3104_v25 = vpop.eup %3103 }
 0x6fd   :  { %v2811_v47 = vadd.f32 0.5, %v2810_v20  ;;  %v2814_v4 = vmul.f32 0.5, %v3104_v25  ;;  %v3106_v51 = vpop.eup %3105 }
 0x6fe   :  { %v3108_v22 = vpop.eup %3107 }
 0x6ff   :  { %v2815_v7 = vadd.f32 0.5, %v2814_v4  ;;  %v2822_v5 = vmul.f32 %v3106_v51, %v2811_v47  ;;  %v2819_v19 = vmul.f32 0.5, %v3108_v22 }
 0x701   :  { %v2821_v13 = vmul.f32 %v2815_v7, %v4418_v10  ;;  %v2820_v24 = vadd.f32 0.5, %v2819_v19  ;;  %v1425_v10 = vrot.slane %v3187_v27, %v4869_v62 }
 0x703   :  { %v2823_v9 = vadd.f32 %v2822_v5, %v2821_v13  ;;  %v1575_v38 = vadd.f32 %v4875_v37, %v1425_v10 }
 0x705   :  { %3109 = vtanh.f32 %v2823_v9 }
 0x712   :  { %v3110_v17 = vpop.eup %3109 }
 0x713   :  { %v2825_v12 = vmul.f32 %v3110_v17, %v2820_v24 }
 0x715   :  { %2895 = vmatmul.mubr.f32.vlgmr.msra.gmra.mxu0 %v2825_v12  ;;  %2966 = vmatmul.mubr.f32.vlgmr.msra.gmra.mxu1 %v2825_v12 }
 0x7d5   :  { %v2896_v31 = vpop.f32.mrf.mxu0  ;;  %v2967_v35 = vpop.f32.mrf.mxu1 }
 0x7d6   :  { %v2972_v34 = vadd.f32 %v2896_v31, %v1504_v30  ;;  %v2974_v41 = vadd.f32 %v2967_v35, %v1575_v38 }
 0x7d7   :  { %v2898_v36 = vpop.f32.mrf.mxu0  ;;  %v2969_v43 = vpop.f32.mrf.mxu1 }
 0x7d8   :  { %v2976_v39 = vmul.f32 0.5, %v2972_v34  ;;  %v2973_v40 = vadd.f32 %v2898_v36, %v1506_v33  ;;  %v2975_v45 = vadd.f32 %v2969_v43, %v4876_v44 }
 0x7da   :  { %3111 = vtanh.f32 %v2976_v39  ;;  %v2980_v42 = vmul.f32 0.5, %v2973_v40  ;;  %v2985_v46 = vmul.f32 0.5, %v2975_v45 }
 0x7dc   :  { %3113 = vtanh.f32 %v2980_v42 }
 0x7dd   :  { %3115 = vtanh.f32 %v2974_v41 }
 0x7de   :  { %3117 = vtanh.f32 %v2985_v46 }
 0x7e7   :  { %v3112_v48 = vpop.eup %3111 }
 0x7e8   :  { %v2978_v52 = vmul.f32 0.5, %v3112_v48 }
 0x7e9   :  { %v3114_v53 = vpop.eup %3113 }
 0x7ea   :  { %v2979_v55 = vadd.f32 0.5, %v2978_v52  ;;  %v2982_v56 = vmul.f32 0.5, %v3114_v53  ;;  %v3116_v57 = vpop.eup %3115 }
 0x7eb   :  { %v3118_v63 = vpop.eup %3117 }
 0x7ec   :  { %v2983_v59 = vadd.f32 0.5, %v2982_v56  ;;  %v2990_v60 = vmul.f32 %v3116_v57, %v2979_v55  ;;  %v2987_v1 = vmul.f32 0.5, %v3118_v63 }
 0x7ee   :  { %v2989_v61 = vmul.f32 %v2983_v59, %v2823_v9  ;;  %v2988_v2 = vadd.f32 0.5, %v2987_v1 }
 0x7f0   :  { %v2991_v62 = vadd.f32 %v2990_v60, %v2989_v61 }
 0x7f2   :  { %3119 = vtanh.f32 %v2991_v62 }
 0x7ff   :  { %v3120_v3 = vpop.eup %3119 }
 0x800   :  { %v2993_v23 = vmul.f32 %v3120_v3, %v2988_v2 }
 0x802   :  { %2999 = vst [vmem:[#allocation11] sm:$0xff] %v2993_v23 }
 0x803   :  { %3259 = shalt.err (!%p3256_p5)
}
 0x804   :  { %3009 = dma.vmem_to_hbm [thread:$0]  %s3007_s27, 128, %s4513_s4, [#allocation7]  }
 0x805   :  { %3272 = dma.done.wait [#allocation7], 128  }
 0x806   :  { %3273 = vsyncadd [#allocation7], 4294967168 }
 0x807   :  { %3013 = vsyncpa [#allocation6], 1 }
 0x808   :  { %3014 = vsyncpa [#allocation9], 1 }
 0x809   :  { %3015 = vsyncpa [#allocation7], 1 }

</bundles_post_ra>
